<compile_context>
chip_gen: v5e
topology: v5e:2x2
jax: 0.10.0
libtpu: 0.0.40
codegen_flags: <defaults>
</compile_context>

<pallas_src>
import functools

import jax
import jax.numpy as jnp
from jax.experimental import pallas as pl
from jax.experimental.pallas import tpu as pltpu


# ------------------------------ fused kernel --------------------------------

def _fused_feature_kernel(slab_ref, wconv_ref, bconv_ref, mask_ref,
                          wproj_ref, bproj_ref, out_ref, acc_ref, *, wp, q):
    """Fused conv3x3(+bias,+ReLU) -> masked mean-pool -> 512-d projection.

    Grid = (batch, row_tile); the row_tile axis is a reduction: per-batch
    channel sums accumulate in acc_ref and the projection runs on the last
    row tile.

    slab_ref : (1, 1, S, Cin) bf16  flattened padded row slab, S = (TH+3)*Wp
    wconv_ref: (9, Cin, Cmid) bf16  conv weights, offset-major (o = dy*3+dx)
    bconv_ref: (1, Cmid)      f32
    mask_ref : (1, Q)         f32   1/(H*W) at valid flattened columns, else 0
    wproj_ref: (Cmid, F)      bf16
    bproj_ref: (1, F)         f32
    out_ref  : (1, 1, F)      f32
    acc_ref  : (1, Cmid)      f32   VMEM scratch accumulator
    """
    t = pl.program_id(1)

    @pl.when(t == 0)
    def _init():
        acc_ref[...] = jnp.zeros_like(acc_ref)

    # conv3x3 as 9 accumulated (Q, Cin) x (Cin, Cmid) MXU dots over shifted,
    # statically sliced views of the flattened slab (in-kernel "im2col").
    conv = jnp.dot(slab_ref[0, 0, 0:q, :], wconv_ref[0],
                   preferred_element_type=jnp.float32)
    for o in range(1, 9):
        dy, dx = divmod(o, 3)
        shift = dy * wp + dx
        lhs = slab_ref[0, 0, shift:shift + q, :]            # (Q, Cin) bf16
        conv = conv + jnp.dot(lhs, wconv_ref[o],
                              preferred_element_type=jnp.float32)

    act = jnp.maximum(conv + bconv_ref[...], 0.0)           # f32 epilogue (VPU)

    # Masked mean-pool partial sum on the MXU: (1, Q) @ (Q, Cmid).
    acc_ref[...] += jnp.dot(mask_ref[...], act,
                            preferred_element_type=jnp.float32)

    @pl.when(t == pl.num_programs(1) - 1)
    def _finalize():
        pooled = acc_ref[...].astype(jnp.bfloat16)          # (1, Cmid)
        feats = jnp.dot(pooled, wproj_ref[...],
                        preferred_element_type=jnp.float32) + bproj_ref[...]
        out_ref[0] = feats                                  # (1, F) lane-dense


# ------------------------------- wrapper -------------------------------------

def _pick_tile_rows(h, w, cin, cmid, vmem_budget_bytes=8 << 20):
    """Largest divisor of H whose per-tile working set fits the VMEM budget."""
    wp = w + 3
    best = 1
    for th in range(1, h + 1):
        if h % th:
            continue
        s = (th + 3) * wp
        q = th * wp
        # double-buffered bf16 slab + f32 conv/act tiles + f32 mask row
        working = 2 * (s * cin * 2) + 2 * (q * cmid * 4) + q * 4
        if working <= vmem_budget_bytes:
            best = th
    return best


def network_forward(x_nchw, params, *, tile_rows=None):
    """Equivalent of network.forward(input): returns (B, 512) features."""
    B, Cin, H, W = x_nchw.shape
    w_conv = params["w_conv"]                     # (9, Cin, Cmid)
    cmid = w_conv.shape[-1]
    F = params["w_proj"].shape[-1]

    TH = tile_rows if tile_rows is not None else _pick_tile_rows(H, W, Cin, cmid)
    if H % TH != 0:
        raise ValueError(f"tile_rows={TH} must divide H={H}")
    n_t = H // TH
    Wp = W + 3                      # 1 left + 2 right zero-pad columns
    S = (TH + 3) * Wp               # slab rows: TH output rows + 3 halo rows
    Q = TH * Wp                     # flattened conv positions per tile

    # ---- plain-JAX glue: NCHW -> NHWC, zero-pad, halo'd row slabs (bf16) ----
    x_nhwc = jnp.transpose(x_nchw, (0, 2, 3, 1))
    xp = jnp.pad(x_nhwc, ((0, 0), (1, 2), (1, 2), (0, 0)))   # (B, H+3, W+3, Cin)
    if n_t == 1:
        slabs = xp.reshape(B, 1, S, Cin)          # no halo duplication needed
    else:
        slabs = jnp.stack(
            [xp[:, t * TH:t * TH + TH + 3] for t in range(n_t)], axis=1
        ).reshape(B, n_t, S, Cin)                 # (B, n_t, S, Cin)
    slabs = slabs.astype(jnp.bfloat16)

    # 1/(H*W) at valid flattened columns (x < W); 0 at the halo columns.
    qx = jnp.arange(Q, dtype=jnp.int32) % Wp
    mask = jnp.where(qx < W, 1.0 / (H * W), 0.0).astype(jnp.float32).reshape(1, Q)

    w_conv_bf = w_conv.astype(jnp.bfloat16)
    w_proj_bf = params["w_proj"].astype(jnp.bfloat16)
    b_conv_f32 = params["b_conv"].astype(jnp.float32)
    b_proj_f32 = params["b_proj"].astype(jnp.float32)

    kernel = functools.partial(_fused_feature_kernel, wp=Wp, q=Q)

    flops = (2 * B * n_t * Q * 9 * Cin * cmid       # conv dots
             + 2 * B * n_t * Q * cmid               # masked pool dot
             + 2 * B * cmid * F)                    # projection
    bytes_accessed = (slabs.size * 2 + w_conv_bf.size * 2 + w_proj_bf.size * 2
                      + b_conv_f32.size * 4 + b_proj_f32.size * 4
                      + mask.size * 4 + B * F * 4)

    out3 = pl.pallas_call(
        kernel,
        out_shape=jax.ShapeDtypeStruct((B, 1, F), jnp.float32),
        grid_spec=pltpu.PrefetchScalarGridSpec(
            num_scalar_prefetch=0,
            grid=(B, n_t),                                   # reduction axis last
            in_specs=[
                pl.BlockSpec((1, 1, S, Cin), lambda b, t: (b, t, 0, 0)),
                pl.BlockSpec((9, Cin, cmid), lambda b, t: (0, 0, 0)),
                pl.BlockSpec((1, cmid), lambda b, t: (0, 0)),
                pl.BlockSpec((1, Q), lambda b, t: (0, 0)),
                pl.BlockSpec((cmid, F), lambda b, t: (0, 0)),
                pl.BlockSpec((1, F), lambda b, t: (0, 0)),
            ],
            out_specs=pl.BlockSpec((1, 1, F), lambda b, t: (b, 0, 0)),
            scratch_shapes=[pltpu.VMEM((1, cmid), jnp.float32)],
        ),
        compiler_params=pltpu.CompilerParams(
            dimension_semantics=("parallel", "arbitrary"),
            vmem_limit_bytes=32 * 1024 * 1024,
        ),
        cost_estimate=pl.CostEstimate(flops=int(flops), transcendentals=0,
                                      bytes_accessed=int(bytes_accessed)),
    )(slabs, w_conv_bf, b_conv_f32, mask, w_proj_bf, b_proj_f32)

    return out3.reshape(B, F)   # (B, 512) — exactly what network.forward returns


# ---------------------------- params / reference -----------------------------

def make_params(cin=3, cmid=128, feat_dim=512, key=jax.random.PRNGKey(42)):
    k1, k2, k3, k4 = jax.random.split(key, 4)
    return dict(
        w_conv=jax.random.normal(k1, (9, cin, cmid), jnp.float32) * 0.05,
        b_conv=jax.random.normal(k2, (1, cmid), jnp.float32) * 0.01,
        w_proj=jax.random.normal(k3, (cmid, feat_dim), jnp.float32) * 0.05,
        b_proj=jax.random.normal(k4, (1, feat_dim), jnp.float32) * 0.01,
    )


def _reference_forward(x_nchw, params):
    """Pure-JAX f32 reference of the same feature extractor (for validation)."""
    B, Cin, H, W = x_nchw.shape
    x_nhwc = jnp.transpose(x_nchw, (0, 2, 3, 1))
    xp = jnp.pad(x_nhwc, ((0, 0), (1, 1), (1, 1), (0, 0)))
    cols = [xp[:, dy:dy + H, dx:dx + W, :] for dy in range(3) for dx in range(3)]
    patches = jnp.stack(cols, axis=3)                        # (B, H, W, 9, Cin)
    conv = jnp.einsum("bhwkc,kcm->bhwm", patches, params["w_conv"])
    act = jnp.maximum(conv + params["b_conv"][0], 0.0)
    pooled = act.mean(axis=(1, 2))                           # (B, Cmid)
    return pooled @ params["w_proj"] + params["b_proj"]


# NOTE: self.fc (Linear(512, numclass)) and Incremental_learning are defined in
# the PyTorch module but NOT used by forward(), so they are not in the hot path.
# TODO(synk): clip_extractor (CLIP image encoder) has no in-script equivalent.


if __name__ == "__main__":
    key = jax.random.PRNGKey(0)
    x = jax.random.normal(key, (2, 3, 16, 16), jnp.float32)   # NCHW, like PyTorch

    params = make_params(cin=3, cmid=128, feat_dim=512)

    fwd = jax.jit(lambda xx: network_forward(xx, params))     # auto tile_rows
    out = fwd(x)
    jax.block_until_ready(out)

    assert out.shape == (2, 512) and out.dtype == jnp.float32
    assert bool(jnp.all(jnp.isfinite(out)))

    # Loose check vs the pure-JAX f32 reference (kernel streams bf16 into MXU).
    ref = _reference_forward(x, params)
    max_abs_err = float(jnp.max(jnp.abs(out - ref)))
    assert max_abs_err < 5e-2, f"max |err| = {max_abs_err}"

    print("KERNEL_OK")
</pallas_src>

<mosaic_0001>
module attributes {stable_mosaic.version = 11 : i64} {
  func.func @_fused_feature_kernel(%arg0: i32, %arg1: i32, %arg2: memref<1x1x361x3xbf16, #tpu.memory_space<vmem>>, %arg3: memref<9x3x128xbf16, #tpu.memory_space<vmem>>, %arg4: memref<1x128xf32, #tpu.memory_space<vmem>>, %arg5: memref<1x304xf32, #tpu.memory_space<vmem>>, %arg6: memref<128x512xbf16, #tpu.memory_space<vmem>>, %arg7: memref<1x512xf32, #tpu.memory_space<vmem>>, %arg8: memref<1x1x512xf32, #tpu.memory_space<vmem>>, %arg9: memref<1x128xf32, #tpu.memory_space<vmem>>) attributes {dimension_semantics = [#tpu.dimension_semantics<parallel>, #tpu.dimension_semantics<arbitrary>], iteration_bounds = array<i64: 2, 1>, scalar_prefetch = 0 : i64, scratch_operands = 1 : i64, tpu.core_type = #tpu.core_type<tc>, window_params = [{transform_indices = @transform_0, window_bounds = array<i64: 1, 1, 361, 3>}, {pipeline_mode = #tpu.pipeline_mode<synchronous>, transform_indices = @transform_1, window_bounds = array<i64: 9, 3, 128>}, {pipeline_mode = #tpu.pipeline_mode<synchronous>, transform_indices = @transform_2, window_bounds = array<i64: 1, 128>}, {pipeline_mode = #tpu.pipeline_mode<synchronous>, transform_indices = @transform_3, window_bounds = array<i64: 1, 304>}, {pipeline_mode = #tpu.pipeline_mode<synchronous>, transform_indices = @transform_4, window_bounds = array<i64: 128, 512>}, {pipeline_mode = #tpu.pipeline_mode<synchronous>, transform_indices = @transform_5, window_bounds = array<i64: 1, 512>}, {transform_indices = @transform_6, window_bounds = array<i64: 1, 1, 512>}]} {
    %c0_i32 = arith.constant 0 : i32
    %0 = arith.cmpi eq, %arg1, %c0_i32 : i32
    %1 = arith.extui %0 : i1 to i32
    %c0_i32_0 = arith.constant 0 : i32
    %2 = arith.cmpi ne, %1, %c0_i32_0 : i32
    scf.if %2 {
      %cst_69 = arith.constant 0.000000e+00 : f32
      %69 = vector.broadcast %cst_69 : f32 to vector<1x128xf32>
      %c0_70 = arith.constant 0 : index
      %c0_71 = arith.constant 0 : index
      %70 = vector.load %arg9[%c0_70, %c0_71] : memref<1x128xf32, #tpu.memory_space<vmem>>, vector<1x128xf32>
      tpu.vector_store %arg9[%c0_70, %c0_71], %69 {strides = array<i32>} : memref<1x128xf32, #tpu.memory_space<vmem>>, vector<1x128xf32>,
    } else {
    }
    %c0 = arith.constant 0 : index
    %c0_1 = arith.constant 0 : index
    %c0_2 = arith.constant 0 : index
    %c0_3 = arith.constant 0 : index
    %3 = vector.load %arg2[%c0, %c0_1, %c0_2, %c0_3] : memref<1x1x361x3xbf16, #tpu.memory_space<vmem>>, vector<1x1x304x3xbf16>
    %4 = vector.shape_cast %3 : vector<1x1x304x3xbf16> to vector<304x3xbf16>
    %c0_4 = arith.constant 0 : index
    %c0_5 = arith.constant 0 : index
    %c0_6 = arith.constant 0 : index
    %5 = vector.load %arg3[%c0_4, %c0_5, %c0_6] : memref<9x3x128xbf16, #tpu.memory_space<vmem>>, vector<1x3x128xbf16>
    %6 = vector.shape_cast %5 : vector<1x3x128xbf16> to vector<3x128xbf16>
    %cst = arith.constant dense<0.000000e+00> : vector<304x128xf32>
    %7 = tpu.matmul %4, %6, %cst {dimension_numbers = #tpu.dot_dimension_numbers<[1], [0], [0], [1], [0, 0, 1, 1], [], []>} : vector<304x3xbf16>, vector<3x128xbf16>, vector<304x128xf32> -> vector<304x128xf32>
    %c0_7 = arith.constant 0 : index
    %c0_8 = arith.constant 0 : index
    %c1 = arith.constant 1 : index
    %c0_9 = arith.constant 0 : index
    %8 = vector.load %arg2[%c0_7, %c0_8, %c1, %c0_9] : memref<1x1x361x3xbf16, #tpu.memory_space<vmem>>, vector<1x1x304x3xbf16>
    %9 = vector.shape_cast %8 : vector<1x1x304x3xbf16> to vector<304x3xbf16>
    %c1_10 = arith.constant 1 : index
    %c0_11 = arith.constant 0 : index
    %c0_12 = arith.constant 0 : index
    %10 = vector.load %arg3[%c1_10, %c0_11, %c0_12] : memref<9x3x128xbf16, #tpu.memory_space<vmem>>, vector<1x3x128xbf16>
    %11 = vector.shape_cast %10 : vector<1x3x128xbf16> to vector<3x128xbf16>
    %cst_13 = arith.constant dense<0.000000e+00> : vector<304x128xf32>
    %12 = tpu.matmul %9, %11, %cst_13 {dimension_numbers = #tpu.dot_dimension_numbers<[1], [0], [0], [1], [0, 0, 1, 1], [], []>} : vector<304x3xbf16>, vector<3x128xbf16>, vector<304x128xf32> -> vector<304x128xf32>
    %13 = arith.addf %7, %12 : vector<304x128xf32>
    %c0_14 = arith.constant 0 : index
    %c0_15 = arith.constant 0 : index
    %c2 = arith.constant 2 : index
    %c0_16 = arith.constant 0 : index
    %14 = vector.load %arg2[%c0_14, %c0_15, %c2, %c0_16] : memref<1x1x361x3xbf16, #tpu.memory_space<vmem>>, vector<1x1x304x3xbf16>
    %15 = vector.shape_cast %14 : vector<1x1x304x3xbf16> to vector<304x3xbf16>
    %c2_17 = arith.constant 2 : index
    %c0_18 = arith.constant 0 : index
    %c0_19 = arith.constant 0 : index
    %16 = vector.load %arg3[%c2_17, %c0_18, %c0_19] : memref<9x3x128xbf16, #tpu.memory_space<vmem>>, vector<1x3x128xbf16>
    %17 = vector.shape_cast %16 : vector<1x3x128xbf16> to vector<3x128xbf16>
    %cst_20 = arith.constant dense<0.000000e+00> : vector<304x128xf32>
    %18 = tpu.matmul %15, %17, %cst_20 {dimension_numbers = #tpu.dot_dimension_numbers<[1], [0], [0], [1], [0, 0, 1, 1], [], []>} : vector<304x3xbf16>, vector<3x128xbf16>, vector<304x128xf32> -> vector<304x128xf32>
    %19 = arith.addf %13, %18 : vector<304x128xf32>
    %c0_21 = arith.constant 0 : index
    %c0_22 = arith.constant 0 : index
    %c19 = arith.constant 19 : index
    %c0_23 = arith.constant 0 : index
    %20 = vector.load %arg2[%c0_21, %c0_22, %c19, %c0_23] : memref<1x1x361x3xbf16, #tpu.memory_space<vmem>>, vector<1x1x304x3xbf16>
    %21 = vector.shape_cast %20 : vector<1x1x304x3xbf16> to vector<304x3xbf16>
    %c3 = arith.constant 3 : index
    %c0_24 = arith.constant 0 : index
    %c0_25 = arith.constant 0 : index
    %22 = vector.load %arg3[%c3, %c0_24, %c0_25] : memref<9x3x128xbf16, #tpu.memory_space<vmem>>, vector<1x3x128xbf16>
    %23 = vector.shape_cast %22 : vector<1x3x128xbf16> to vector<3x128xbf16>
    %cst_26 = arith.constant dense<0.000000e+00> : vector<304x128xf32>
    %24 = tpu.matmul %21, %23, %cst_26 {dimension_numbers = #tpu.dot_dimension_numbers<[1], [0], [0], [1], [0, 0, 1, 1], [], []>} : vector<304x3xbf16>, vector<3x128xbf16>, vector<304x128xf32> -> vector<304x128xf32>
    %25 = arith.addf %19, %24 : vector<304x128xf32>
    %c0_27 = arith.constant 0 : index
    %c0_28 = arith.constant 0 : index
    %c20 = arith.constant 20 : index
    %c0_29 = arith.constant 0 : index
    %26 = vector.load %arg2[%c0_27, %c0_28, %c20, %c0_29] : memref<1x1x361x3xbf16, #tpu.memory_space<vmem>>, vector<1x1x304x3xbf16>
    %27 = vector.shape_cast %26 : vector<1x1x304x3xbf16> to vector<304x3xbf16>
    %c4 = arith.constant 4 : index
    %c0_30 = arith.constant 0 : index
    %c0_31 = arith.constant 0 : index
    %28 = vector.load %arg3[%c4, %c0_30, %c0_31] : memref<9x3x128xbf16, #tpu.memory_space<vmem>>, vector<1x3x128xbf16>
    %29 = vector.shape_cast %28 : vector<1x3x128xbf16> to vector<3x128xbf16>
    %cst_32 = arith.constant dense<0.000000e+00> : vector<304x128xf32>
    %30 = tpu.matmul %27, %29, %cst_32 {dimension_numbers = #tpu.dot_dimension_numbers<[1], [0], [0], [1], [0, 0, 1, 1], [], []>} : vector<304x3xbf16>, vector<3x128xbf16>, vector<304x128xf32> -> vector<304x128xf32>
    %31 = arith.addf %25, %30 : vector<304x128xf32>
    %c0_33 = arith.constant 0 : index
    %c0_34 = arith.constant 0 : index
    %c21 = arith.constant 21 : index
    %c0_35 = arith.constant 0 : index
    %32 = vector.load %arg2[%c0_33, %c0_34, %c21, %c0_35] : memref<1x1x361x3xbf16, #tpu.memory_space<vmem>>, vector<1x1x304x3xbf16>
    %33 = vector.shape_cast %32 : vector<1x1x304x3xbf16> to vector<304x3xbf16>
    %c5 = arith.constant 5 : index
    %c0_36 = arith.constant 0 : index
    %c0_37 = arith.constant 0 : index
    %34 = vector.load %arg3[%c5, %c0_36, %c0_37] : memref<9x3x128xbf16, #tpu.memory_space<vmem>>, vector<1x3x128xbf16>
    %35 = vector.shape_cast %34 : vector<1x3x128xbf16> to vector<3x128xbf16>
    %cst_38 = arith.constant dense<0.000000e+00> : vector<304x128xf32>
    %36 = tpu.matmul %33, %35, %cst_38 {dimension_numbers = #tpu.dot_dimension_numbers<[1], [0], [0], [1], [0, 0, 1, 1], [], []>} : vector<304x3xbf16>, vector<3x128xbf16>, vector<304x128xf32> -> vector<304x128xf32>
    %37 = arith.addf %31, %36 : vector<304x128xf32>
    %c0_39 = arith.constant 0 : index
    %c0_40 = arith.constant 0 : index
    %c38 = arith.constant 38 : index
    %c0_41 = arith.constant 0 : index
    %38 = vector.load %arg2[%c0_39, %c0_40, %c38, %c0_41] : memref<1x1x361x3xbf16, #tpu.memory_space<vmem>>, vector<1x1x304x3xbf16>
    %39 = vector.shape_cast %38 : vector<1x1x304x3xbf16> to vector<304x3xbf16>
    %c6 = arith.constant 6 : index
    %c0_42 = arith.constant 0 : index
    %c0_43 = arith.constant 0 : index
    %40 = vector.load %arg3[%c6, %c0_42, %c0_43] : memref<9x3x128xbf16, #tpu.memory_space<vmem>>, vector<1x3x128xbf16>
    %41 = vector.shape_cast %40 : vector<1x3x128xbf16> to vector<3x128xbf16>
    %cst_44 = arith.constant dense<0.000000e+00> : vector<304x128xf32>
    %42 = tpu.matmul %39, %41, %cst_44 {dimension_numbers = #tpu.dot_dimension_numbers<[1], [0], [0], [1], [0, 0, 1, 1], [], []>} : vector<304x3xbf16>, vector<3x128xbf16>, vector<304x128xf32> -> vector<304x128xf32>
    %43 = arith.addf %37, %42 : vector<304x128xf32>
    %c0_45 = arith.constant 0 : index
    %c0_46 = arith.constant 0 : index
    %c39 = arith.constant 39 : index
    %c0_47 = arith.constant 0 : index
    %44 = vector.load %arg2[%c0_45, %c0_46, %c39, %c0_47] : memref<1x1x361x3xbf16, #tpu.memory_space<vmem>>, vector<1x1x304x3xbf16>
    %45 = vector.shape_cast %44 : vector<1x1x304x3xbf16> to vector<304x3xbf16>
    %c7 = arith.constant 7 : index
    %c0_48 = arith.constant 0 : index
    %c0_49 = arith.constant 0 : index
    %46 = vector.load %arg3[%c7, %c0_48, %c0_49] : memref<9x3x128xbf16, #tpu.memory_space<vmem>>, vector<1x3x128xbf16>
    %47 = vector.shape_cast %46 : vector<1x3x128xbf16> to vector<3x128xbf16>
    %cst_50 = arith.constant dense<0.000000e+00> : vector<304x128xf32>
    %48 = tpu.matmul %45, %47, %cst_50 {dimension_numbers = #tpu.dot_dimension_numbers<[1], [0], [0], [1], [0, 0, 1, 1], [], []>} : vector<304x3xbf16>, vector<3x128xbf16>, vector<304x128xf32> -> vector<304x128xf32>
    %49 = arith.addf %43, %48 : vector<304x128xf32>
    %c0_51 = arith.constant 0 : index
    %c0_52 = arith.constant 0 : index
    %c40 = arith.constant 40 : index
    %c0_53 = arith.constant 0 : index
    %50 = vector.load %arg2[%c0_51, %c0_52, %c40, %c0_53] : memref<1x1x361x3xbf16, #tpu.memory_space<vmem>>, vector<1x1x304x3xbf16>
    %51 = vector.shape_cast %50 : vector<1x1x304x3xbf16> to vector<304x3xbf16>
    %c8 = arith.constant 8 : index
    %c0_54 = arith.constant 0 : index
    %c0_55 = arith.constant 0 : index
    %52 = vector.load %arg3[%c8, %c0_54, %c0_55] : memref<9x3x128xbf16, #tpu.memory_space<vmem>>, vector<1x3x128xbf16>
    %53 = vector.shape_cast %52 : vector<1x3x128xbf16> to vector<3x128xbf16>
    %cst_56 = arith.constant dense<0.000000e+00> : vector<304x128xf32>
    %54 = tpu.matmul %51, %53, %cst_56 {dimension_numbers = #tpu.dot_dimension_numbers<[1], [0], [0], [1], [0, 0, 1, 1], [], []>} : vector<304x3xbf16>, vector<3x128xbf16>, vector<304x128xf32> -> vector<304x128xf32>
    %55 = arith.addf %49, %54 : vector<304x128xf32>
    %c0_57 = arith.constant 0 : index
    %c0_58 = arith.constant 0 : index
    %56 = vector.load %arg4[%c0_57, %c0_58] : memref<1x128xf32, #tpu.memory_space<vmem>>, vector<1x128xf32>
    %57 = vector.broadcast %56 : vector<1x128xf32> to vector<304x128xf32>
    %58 = arith.addf %55, %57 : vector<304x128xf32>
    %cst_59 = arith.constant 0.000000e+00 : f32
    %59 = vector.broadcast %cst_59 : f32 to vector<304x128xf32>
    %60 = arith.maximumf %58, %59 : vector<304x128xf32>
    %c0_60 = arith.constant 0 : index
    %c0_61 = arith.constant 0 : index
    %61 = vector.load %arg9[%c0_60, %c0_61] : memref<1x128xf32, #tpu.memory_space<vmem>>, vector<1x128xf32>
    %c0_62 = arith.constant 0 : index
    %c0_63 = arith.constant 0 : index
    %62 = vector.load %arg5[%c0_62, %c0_63] : memref<1x304xf32, #tpu.memory_space<vmem>>, vector<1x304xf32>
    %cst_64 = arith.constant dense<0.000000e+00> : vector<1x128xf32>
    %63 = tpu.matmul %62, %60, %cst_64 {dimension_numbers = #tpu.dot_dimension_numbers<[1], [0], [0], [1], [0, 0, 1, 1], [], []>} : vector<1x304xf32>, vector<304x128xf32>, vector<1x128xf32> -> vector<1x128xf32>
    %64 = arith.addf %61, %63 : vector<1x128xf32>
    %c0_65 = arith.constant 0 : index
    %c0_66 = arith.constant 0 : index
    %65 = vector.load %arg9[%c0_65, %c0_66] : memref<1x128xf32, #tpu.memory_space<vmem>>, vector<1x128xf32>
    tpu.vector_store %arg9[%c0_65, %c0_66], %64 {strides = array<i32>} : memref<1x128xf32, #tpu.memory_space<vmem>>, vector<1x128xf32>,
    %c0_i32_67 = arith.constant 0 : i32
    %66 = arith.cmpi eq, %arg1, %c0_i32_67 : i32
    %67 = arith.extui %66 : i1 to i32
    %c0_i32_68 = arith.constant 0 : i32
    %68 = arith.cmpi ne, %67, %c0_i32_68 : i32
    scf.if %68 {
      %c0_69 = arith.constant 0 : index
      %c0_70 = arith.constant 0 : index
      %69 = vector.load %arg9[%c0_69, %c0_70] : memref<1x128xf32, #tpu.memory_space<vmem>>, vector<1x128xf32>
      %70 = arith.truncf %69 : vector<1x128xf32> to vector<1x128xbf16>
      %c0_71 = arith.constant 0 : index
      %c0_72 = arith.constant 0 : index
      %71 = vector.load %arg6[%c0_71, %c0_72] : memref<128x512xbf16, #tpu.memory_space<vmem>>, vector<128x512xbf16>
      %cst_73 = arith.constant dense<0.000000e+00> : vector<1x512xf32>
      %72 = tpu.matmul %70, %71, %cst_73 {dimension_numbers = #tpu.dot_dimension_numbers<[1], [0], [0], [1], [0, 0, 1, 1], [], []>} : vector<1x128xbf16>, vector<128x512xbf16>, vector<1x512xf32> -> vector<1x512xf32>
      %c0_74 = arith.constant 0 : index
      %c0_75 = arith.constant 0 : index
      %73 = vector.load %arg7[%c0_74, %c0_75] : memref<1x512xf32, #tpu.memory_space<vmem>>, vector<1x512xf32>
      %74 = arith.addf %72, %73 : vector<1x512xf32>
      %c0_76 = arith.constant 0 : index
      %c0_77 = arith.constant 0 : index
      %c0_78 = arith.constant 0 : index
      %75 = vector.load %arg8[%c0_76, %c0_77, %c0_78] : memref<1x1x512xf32, #tpu.memory_space<vmem>>, vector<1x1x512xf32>
      %76 = vector.shape_cast %75 : vector<1x1x512xf32> to vector<1x512xf32>
      %77 = vector.shape_cast %74 : vector<1x512xf32> to vector<1x1x512xf32>
      tpu.vector_store %arg8[%c0_76, %c0_77, %c0_78], %77 {strides = array<i32>} : memref<1x1x512xf32, #tpu.memory_space<vmem>>, vector<1x1x512xf32>,
    } else {
    }
    return
  }
  func.func @transform_0(%arg0: i32, %arg1: i32) -> (i32, i32, i32, i32) {
    %c0_i32 = arith.constant 0 : i32
    %c0_i32_0 = arith.constant 0 : i32
    %c0_i32_1 = arith.constant 0 : i32
    return %arg0, %arg1, %c0_i32, %c0_i32_0 : i32, i32, i32, i32
  }
  func.func @transform_1(%arg0: i32, %arg1: i32) -> (i32, i32, i32) {
    %c0_i32 = arith.constant 0 : i32
    %c0_i32_0 = arith.constant 0 : i32
    %c0_i32_1 = arith.constant 0 : i32
    %c0_i32_2 = arith.constant 0 : i32
    return %c0_i32, %c0_i32_0, %c0_i32_1 : i32, i32, i32
  }
  func.func @transform_2(%arg0: i32, %arg1: i32) -> (i32, i32) {
    %c0_i32 = arith.constant 0 : i32
    %c0_i32_0 = arith.constant 0 : i32
    %c0_i32_1 = arith.constant 0 : i32
    return %c0_i32, %c0_i32_0 : i32, i32
  }
  func.func @transform_3(%arg0: i32, %arg1: i32) -> (i32, i32) {
    %c0_i32 = arith.constant 0 : i32
    %c0_i32_0 = arith.constant 0 : i32
    %c0_i32_1 = arith.constant 0 : i32
    return %c0_i32, %c0_i32_0 : i32, i32
  }
  func.func @transform_4(%arg0: i32, %arg1: i32) -> (i32, i32) {
    %c0_i32 = arith.constant 0 : i32
    %c0_i32_0 = arith.constant 0 : i32
    %c0_i32_1 = arith.constant 0 : i32
    return %c0_i32, %c0_i32_0 : i32, i32
  }
  func.func @transform_5(%arg0: i32, %arg1: i32) -> (i32, i32) {
    %c0_i32 = arith.constant 0 : i32
    %c0_i32_0 = arith.constant 0 : i32
    %c0_i32_1 = arith.constant 0 : i32
    return %c0_i32, %c0_i32_0 : i32, i32
  }
  func.func @transform_6(%arg0: i32, %arg1: i32) -> (i32, i32, i32) {
    %c0_i32 = arith.constant 0 : i32
    %c0_i32_0 = arith.constant 0 : i32
    %c0_i32_1 = arith.constant 0 : i32
    return %arg0, %c0_i32, %c0_i32_0 : i32, i32, i32
  }
}

</mosaic_0001>

<bundles_post_ra>
// kernel: _lambda_.1
= control target key start
LH: loop header
LB: loop body
LE: loop exit
PB: predicated region body
PF: predicated region fallthrough
CT: control target
= control target key end

     0   :  { %s4536_s21 = smov 0   ;;  %s4538_s22 = smov 0   ;;  %s6174_s0 = inlined_call_operand.vmem [shape: bf16[2,1,361,3], index: 0, kind: input, shape index: {}]   ;;  %s6175_s1 = inlined_call_operand.vmem [shape: bf16[9,3,128], index: 1, kind: input, shape index: {}]   ;;  %s6176_s2 = inlined_call_operand.vmem [shape: f32[1,128], index: 2, kind: input, shape index: {}]   ;;  %s6177_s3 = inlined_call_operand.vmem [shape: f32[1,304], index: 3, kind: input, shape index: {}]   ;;  %s6178_s4 = inlined_call_operand.vmem [shape: bf16[128,512], index: 4, kind: input, shape index: {}]   ;;  %s6179_s5 = inlined_call_operand.vmem [shape: f32[1,512], index: 5, kind: input, shape index: {}]   ;;  %s6180_s6 = inlined_call_operand.vmem [shape: f32[2,1,512], index: 6, kind: output, shape index: {}]  }
   0x1   :  { %s4540_s23 = smov 0  }
   0x2 LB: > { %s28_s24 = sadd.s32 1, %s4493_s22  ;;  %p3703_p0 = scmp.ge.s32.totalorder %s4497_s23, 1  ;;  %s4497_s23 = sphi %s4540_s23, %s16_s23   ;;  %s4493_s22 = sphi %s4538_s22, %s6345_s22   ;;  %s4489_s21 = sphi %s4536_s21, %s6344_s21  }
   0x3   : > { %p30_p1 = scmp.ge.s32.totalorder %s28_s24, 2  ;;  %p230_p2 = scmp.lt.s32.totalorder %s4497_s23, 3 }
   0x5   : > { %s6347_s24 = smov (%p30_p1, %s28_s24), 0  ;;  %p231_p3 = pnand %p3703_p0, %p230_p2 }
   0x7   : > { %234 = sbr.rel (%p231_p3) target bundleno = 1187 (0x4a3), region = 44 }
   0xc   : > { %v320_v0 = vld [vmem:[%s6175_s1] sm:$0x3]  ;;  %vm637_vm0 = vcmask 1040384   ;;  %vm638_vm1 = vcmask 1041408   ;;  %p263_p4 = scmp.lt.s32.totalorder %s4489_s21, 1  ;;  %v4499_v1 = vmov 65535  }
   0xd   : > { %v639_v2 = vsel %vm637_vm0, 4294967295, %v4499_v1  ;;  %v3706_v3 = vld [vmem:[%s6175_s1 + $0x2] sm:$0x3]  ;;  %vm579_vm2 = vcmask 23552   ;;  %vm422_vm3 = vsmask.f32 7424 }
   0xe   : > { %v4562_v4 = vsel %vm638_vm1, %v639_v2, 0  ;;  %s6349_s21 = smov (!%p263_p4, %s4489_s21), 1  ;;  %vm899_vm4 = vcmask 1046528   ;;  %vm1280_vm5 = vsmask.f32 6400  ;;  %vm1668_vm6 = vcmask 1045504  }
   0xf   : > { %v787_v5 = vand.u32 %v4562_v4, %v320_v0  ;;  %v642_v6 = vand.u32 %v3706_v3, %v4562_v4  ;;  %s4446_s29 = smul.u32 184, %s6349_s21  ;;  %vm1916_vm7 = vsmask.f32 5376  ;;  %vm2347_vm8 = vcmask 1044480   ;;  %s3705_s17 = sshll.u32 %s6349_s21, 2 }
  0x10   : > { %vm2595_vm9 = vsmask.f32 4352  ;;  %vm3288_vm10 = vcmask 392192   ;;  %vm3620_vm11 = vcmask 1042434   ;;  %s275_s20 = scalar_lea.vmem %s6180_s6, %s3705_s17 }
  0x11   : > { %796 = vmatpush.bf16.msra.mxu1 %v787_v5  ;;  %651 = vmatpush.bf16.msra.mxu0 %v642_v6  ;;  %s4572_s8 = scalar_lea.vmem %s6174_s0, %s4446_s29 }
  0x12   : > { %4444 = vmatpush.bf16.msra.mxu2 %v642_v6  ;;  %4445 = vmatpush.bf16.msra.mxu3 %v642_v6  ;;  %v4229_v7 = vld [vmem:[%s4572_s8] sm:$0xff]   ;;  %v4576_v8 = vld [vmem:[%s4572_s8 + $0x8] sm:$0xff]  ;;  %v4589_v14 = vld [vmem:[%s4572_s8 + $0x70] sm:$0xff] }
  0x13   : > { %v4579_v9 = vld [vmem:[%s4572_s8 + $0x40] sm:$0xff]  ;;  %v424_v10 = vshrl.u32 %v4229_v7, 16  ;;  %v426_v11 = vshll.u32 %v4229_v7, 16  ;;  %v4583_v12 = vld [vmem:[%s4572_s8 + $0x48] sm:$0xff]  ;;  %v431_v15 = vshll.u32 %v4576_v8, 16  ;;  %v535_v24 = vshll.u32 %v4589_v14, 16 }
  0x14   : > { %3798 = vmatmul.msk.bf16.vlgmr.msra.gmra.mxu1 %vm579_vm2, %v4229_v7  ;;  %v4586_v13 = vld [vmem:[%s4572_s8 + $0x68] sm:$0xff]  ;;  %v487_v16 = vshll.u32 %v4579_v9, 16  ;;  %v491_v17 = vshrl.u32 %v4579_v9, 16  ;;  %v495_v19 = vshll.u32 %v4583_v12, 16  ;;  %v4610_v34 = vld [vmem:[%s4572_s8 + $0x10] sm:$0xff]  ;;  %v4617_v36 = vld [vmem:[%s4572_s8 + $0x78] sm:$0xff] }
  0x15   : > { %v428_v18 = vrot.slane %v426_v11, 1  ;;  %v527_v20 = vshll.u32 %v4586_v13, 16  ;;  %v531_v21 = vshrl.u32 %v4586_v13, 16  ;;  %v433_v22 = vrot.slane %v431_v15, 1  ;;  %v4614_v35 = vld [vmem:[%s4572_s8 + $0x50] sm:$0xff]  ;;  %v4633_v52 = vld [vmem:[%s4572_s8 + $0x18] sm:$0xff] }
  0x16   : > { %v4597_v23 = vrot.slane %v487_v16, 1  ;;  %v497_v26 = vrot.slane %v495_v19, 1  ;;  %v537_v29 = vrot.slane %v535_v24, 1  ;;  %v435_v37 = vshrl.u32 %v4576_v8, 16  ;;  %v4637_v53 = vld [vmem:[%s4572_s8 + $0x58] sm:$0xff]  ;;  %v4640_v54 = vld [vmem:[%s4572_s8 + $0x80] sm:$0xff] }
  0x17   : > { %v429_v25 = vor.u32 %v428_v18, %v424_v10  ;;  %v4600_v27 = vrot.slane %v527_v20, 1  ;;  %v439_v38 = vshll.u32 %v4610_v34, 16  ;;  %v499_v39 = vshrl.u32 %v4583_v12, 16  ;;  %v4656_v7 = vld [vmem:[%s4572_s8 + $0x20] sm:$0xff]  ;;  %v4663_v11 = vld [vmem:[%s4572_s8 + $0x88] sm:$0xff] }
  0x18   : > { %v493_v28 = vor.u32 %v491_v17, %v4597_v23  ;;  %v503_v40 = vshll.u32 %v4614_v35, 16  ;;  %v539_v41 = vshrl.u32 %v4589_v14, 16  ;;  %v543_v42 = vshll.u32 %v4617_v36, 16  ;;  %v4660_v10 = vld [vmem:[%s4572_s8 + $0x60] sm:$0xff] }
  0x19   : > { %v434_v30 = vsel %vm422_vm3, %v429_v25, %v433_v22  ;;  %v533_v31 = vor.u32 %v531_v21, %v4600_v27  ;;  %v437_v43 = vor.u32 %v435_v37, %v433_v22  ;;  %v441_v44 = vrot.slane %v439_v38, 1  ;;  %v3817_v24 = vld [vmem:[%s6175_s1 + $0x4] sm:$0x3]  ;;  %v4683_v37 = vld [vmem:[%s4572_s8 + $0x28] sm:$0xff]  ;;  %v4687_v38 = vld [vmem:[%s4572_s8 + $0x90] sm:$0xff] }
  0x1a   : > { %3779 = vmatmul.msk.bf16.vlgmr.msra.gmra.mxu0 %vm579_vm2, %v434_v30  ;;  %v498_v32 = vsel %vm422_vm3, %v493_v28, %v497_v26  ;;  %v501_v45 = vor.u32 %v499_v39, %v497_v26  ;;  %v505_v46 = vrot.slane %v503_v40, 1  ;;  %v541_v47 = vor.u32 %v539_v41, %v537_v29 }
  0x1b   : > { %3787 = vmatmul.msk.bf16.vlgmr.msra.gmra.mxu2 %vm579_vm2, %v498_v32  ;;  %v538_v33 = vsel %vm422_vm3, %v533_v31, %v537_v29  ;;  %v545_v48 = vrot.slane %v543_v42, 1  ;;  %v442_v49 = vsel %vm422_vm3, %v437_v43, %v441_v44  ;;  %v443_v55 = vshrl.u32 %v4610_v34, 16 }
  0x1c   : > { %3792 = vmatmul.msk.bf16.vlgmr.msra.gmra.mxu3 %vm579_vm2, %v538_v33  ;;  %v506_v50 = vsel %vm422_vm3, %v501_v45, %v505_v46  ;;  %v447_v56 = vshll.u32 %v4633_v52, 16  ;;  %v507_v57 = vshrl.u32 %v4614_v35, 16  ;;  %v511_v58 = vshll.u32 %v4637_v53, 16 }
  0x1d   : > { %v546_v51 = vsel %vm422_vm3, %v541_v47, %v545_v48  ;;  %v547_v59 = vshrl.u32 %v4617_v36, 16  ;;  %v551_v60 = vshll.u32 %v4640_v54, 16  ;;  %v445_v61 = vor.u32 %v443_v55, %v441_v44 }
  0x1e   : > { %v449_v62 = vrot.slane %v447_v56, 1  ;;  %v509_v63 = vor.u32 %v507_v57, %v505_v46  ;;  %v513_v0 = vrot.slane %v511_v58, 1  ;;  %v451_v15 = vshrl.u32 %v4633_v52, 16  ;;  %v3837_v46 = vld [vmem:[%s6175_s1 + $0x6] sm:$0x3] }
  0x1f   : > { %v549_v1 = vor.u32 %v547_v59, %v545_v48  ;;  %v553_v2 = vrot.slane %v551_v60, 1  ;;  %v455_v16 = vshll.u32 %v4656_v7, 16  ;;  %v515_v17 = vshrl.u32 %v4637_v53, 16  ;;  %v4708_v59 = vld [vmem:[%s4572_s8 + $0x30] sm:$0xff] }
  0x20   : > { %v450_v3 = vsel %vm422_vm3, %v445_v61, %v449_v62  ;;  %v514_v5 = vsel %vm422_vm3, %v509_v63, %v513_v0  ;;  %v519_v18 = vshll.u32 %v4660_v10, 16  ;;  %v555_v19 = vshrl.u32 %v4640_v54, 16  ;;  %v4304_v61 = vld [vmem:[%s4572_s8] sm:$0xf0] }
  0x21   : > { %v554_v6 = vsel %vm422_vm3, %v549_v1, %v553_v2  ;;  %v559_v20 = vshll.u32 %v4663_v11, 16  ;;  %v453_v21 = vor.u32 %v451_v15, %v449_v62  ;;  %v457_v22 = vrot.slane %v455_v16, 1  ;;  %v4305_v62 = vld [vmem:[%s4572_s8] sm:$0xe] }
  0x22   : > { %v517_v25 = vor.u32 %v515_v17, %v513_v0  ;;  %v521_v26 = vrot.slane %v519_v18, 1  ;;  %v997_v28 = vand.u32 %v3817_v24, %v4562_v4  ;;  %v557_v29 = vor.u32 %v555_v19, %v553_v2 }
  0x23   : > { %v561_v30 = vrot.slane %v559_v20, 1  ;;  %v458_v31 = vsel %vm422_vm3, %v453_v21, %v457_v22  ;;  %v459_v39 = vshrl.u32 %v4656_v7, 16  ;;  %v463_v40 = vshll.u32 %v4683_v37, 16 }
  0x24   : > { %3799 = vmatmul.msk.bf16.gmra.mxu1 %vm579_vm2, %v4576_v8  ;;  %1006 = vmatpush.bf16.msrb.mxu2 %v997_v28  ;;  %v522_v32 = vsel %vm422_vm3, %v517_v25, %v521_v26  ;;  %v523_v41 = vshrl.u32 %v4660_v10, 16  ;;  %v563_v42 = vshrl.u32 %v4663_v11, 16  ;;  %v567_v43 = vshll.u32 %v4687_v38, 16 }
  0x25   : > { %v562_v33 = vsel %vm422_vm3, %v557_v29, %v561_v30  ;;  %v461_v44 = vor.u32 %v459_v39, %v457_v22  ;;  %v465_v45 = vrot.slane %v463_v40, 1  ;;  %v1518_v48 = vand.u32 %v3837_v46, %v4562_v4  ;;  %v4736_v29 = vld [vmem:[%s4572_s8 + $0x38] sm:$0xff] }
  0x26   : > { %v525_v47 = vor.u32 %v523_v41, %v521_v26  ;;  %v467_v63 = vshrl.u32 %v4683_v37, 16  ;;  %v571_v0 = vshrl.u32 %v4687_v38, 16  ;;  %v4306_v1 = vor.u32 %v4305_v62, %v4304_v61  ;;  %v4731_v26 = vld [vmem:[%s4572_s8 + $0x10] sm:$0xff] }
  0x27   : > { %1527 = vmatpush.bf16.msrb.mxu3 %v1518_v48  ;;  %v466_v55 = vsel %vm422_vm3, %v461_v44, %v465_v45  ;;  %v901_v18 = vrot.slane %v4576_v8, 1  ;;  %v479_v39 = vshll.u32 %v4736_v29, 16  ;;  %v903_v46 = vrot.slane %v4610_v34, 1 }
  0x28   : > { %v530_v56 = vsel %vm422_vm3, %v525_v47, %v4600_v27  ;;  %v471_v27 = vshll.u32 %v4708_v59, 16  ;;  %v900_v17 = vrot.slane %v4306_v1, 1  ;;  %v483_v61 = vshrl.u32 %v4736_v29, 16 }
  0x2a   : > { %3780 = vmatmul.msk.bf16.gmra.mxu0 %vm579_vm2, %v442_v49  ;;  %v565_v49 = vor.u32 %v563_v42, %v561_v30  ;;  %v473_v15 = vrot.slane %v471_v27, 1  ;;  %v902_v24 = vsel %vm899_vm4, %v900_v17, %v901_v18 }
  0x2b   : > { %3788 = vmatmul.msk.bf16.gmra.mxu2 %vm579_vm2, %v506_v50  ;;  %v569_v50 = vrot.slane %v567_v43, 1 }
  0x2c   : > { %3793 = vmatmul.msk.bf16.gmra.mxu3 %vm579_vm2, %v546_v51  ;;  %v321_v51 = vld [vmem:[%s4572_s8 + $0x98] sm:$0x1] }
  0x2d   : > { %v570_v57 = vsel %vm422_vm3, %v565_v49, %v569_v50  ;;  %v401_v58 = vunpack.c.l.b16 %v321_v51  ;;  %v573_v16 = vor.u32 %v571_v0, %v569_v50  ;;  %v3929_v49 = vld [vmem:[%s6175_s1 + $0x8] sm:$0x3]  ;;  %v905_v0 = vrot.slane %v4633_v52, 1 }
  0x2e   : > { %v1766_v50 = vand.u32 %v3929_v49, %v4562_v4 }
  0x2f   : > { %v4711_v60 = vpack.c.b16 %v401_v58, %v401_v58 }
  0x30   : > { %1775 = vmatpush.bf16.msrb.mxu0 %v1766_v50 }
  0x31   : > { %v575_v2 = vshll.u32 %v4711_v60, 16 }
  0x33   : > { %v577_v19 = vrot.slane %v575_v2, 1 }
  0x34   : > { %3800 = vmatmul.msk.bf16.gmra.mxu1 %vm579_vm2, %v4610_v34 }
  0x35   : > { %v578_v25 = vsel %vm422_vm3, %v573_v16, %v577_v19 }
  0x3a   : > { %3781 = vmatmul.msk.bf16.gmra.mxu0 %vm579_vm2, %v450_v3  ;;  %v1141_v3 = vld [vmem:[%s4572_s8 + $0x8] sm:$0xe] }
  0x3b   : > { %3789 = vmatmul.msk.bf16.gmra.mxu2 %vm579_vm2, %v514_v5  ;;  %v4721_v5 = vld [vmem:[%s4572_s8 + $0xc] sm:$0xf]  ;;  %v1221_v20 = vunpack.c.l.b16 %v1141_v3  ;;  %v906_v3 = vsel %vm899_vm4, %v903_v46, %v905_v0 }
  0x3c   : > { %3794 = vmatmul.msk.bf16.gmra.mxu3 %vm579_vm2, %v554_v6  ;;  %v469_v6 = vor.u32 %v467_v63, %v465_v45  ;;  %v1222_v21 = vunpack.c.l.b16 %v4721_v5  ;;  %v481_v45 = vrot.slane %v479_v39, 1  ;;  %v1662_v5 = vld [vmem:[%s4572_s8 + $0x8] sm:$0xc] }
  0x3d   : > { %v1666_v16 = vunpack.c.l.b16 %v1662_v5 }
  0x3e   : > { %v474_v22 = vsel %vm422_vm3, %v469_v6, %v473_v15  ;;  %v1260_v28 = vpack.c.b16 %v1222_v21, %v1221_v20  ;;  %v485_v27 = vor.u32 %v483_v61, %v481_v45 }
  0x40   : > { %v1282_v8 = vshrl.u32 %v1260_v28, 16  ;;  %v1285_v30 = vshll.u32 %v1260_v28, 16  ;;  %v490_v2 = vsel %vm422_vm3, %v485_v27, %v4597_v23 }
  0x42   : > { %v1284_v40 = vrot.slane %v1282_v8, 1  ;;  %v1287_v41 = vrot.slane %v1285_v30, 2 }
  0x44   : > { %3801 = vmatmul.msk.bf16.gmra.mxu1 %vm579_vm2, %v4633_v52  ;;  %v1288_v47 = vor.u32 %v1287_v41, %v1284_v40  ;;  %v4803_v41 = vld [vmem:[%s4572_s8 + $0x28] sm:$0xff] }
  0x4a   : > { %3782 = vmatmul.msk.bf16.gmra.mxu0 %vm579_vm2, %v458_v31  ;;  %v6194_v31 = vshrl.u32 %v4731_v26, 16 }
  0x4b   : > { %3790 = vmatmul.msk.bf16.gmra.mxu2 %vm579_vm2, %v522_v32  ;;  %v6193_v32 = vshll.u32 %v4731_v26, 16 }
  0x4c   : > { %3795 = vmatmul.msk.bf16.gmra.mxu3 %vm579_vm2, %v562_v33  ;;  %v475_v33 = vshrl.u32 %v4708_v59, 16  ;;  %v1292_v42 = vrot.slane %v6194_v31, 1 }
  0x4d   : > { %v1295_v43 = vrot.slane %v6193_v32, 2 }
  0x4e   : > { %v477_v44 = vor.u32 %v475_v33, %v473_v15  ;;  %v4779_v15 = vld [vmem:[%s4572_s8 + $0x20] sm:$0xff] }
  0x4f   : > { %v1296_v48 = vor.u32 %v1295_v43, %v1292_v42  ;;  %v6190_v52 = vshrl.u32 %v4779_v15, 16  ;;  %v6187_v17 = vshll.u32 %v4779_v15, 16  ;;  %v6185_v42 = vshll.u32 %v4803_v41, 16 }
  0x50   : > { %v482_v51 = vsel %vm422_vm3, %v477_v44, %v481_v45 }
  0x51   : > { %v1310_v19 = vrot.slane %v6190_v52, 1  ;;  %v1313_v20 = vrot.slane %v6187_v17, 2  ;;  %v1322_v49 = vrot.slane %v6185_v42, 2 }
  0x54   : > { %3802 = vmatmul.msk.bf16.gmra.mxu1 %vm579_vm2, %v4656_v7 }
  0x5a   : > { %3783 = vmatmul.msk.bf16.gmra.mxu0 %vm579_vm2, %v466_v55  ;;  %v904_v55 = vsel %vm899_vm4, %v901_v18, %v903_v46  ;;  %v4786_v18 = vpack.c.b16 %v1222_v21, %v1666_v16  ;;  %v1314_v21 = vor.u32 %v1313_v20, %v1310_v19 }
  0x5b   : > { %3791 = vmatmul.msk.bf16.gmra.mxu2 %vm579_vm2, %v530_v56  ;;  %v1297_v56 = vsel %vm1280_vm5, %v1288_v47, %v1296_v48 }
  0x5c   : > { %3796 = vmatmul.msk.bf16.gmra.mxu3 %vm579_vm2, %v570_v57  ;;  %v4758_v57 = vld [vmem:[%s4572_s8 + $0x18] sm:$0xff] }
  0x5d   : > { %v6192_v34 = vshrl.u32 %v4758_v57, 16  ;;  %v6191_v58 = vshll.u32 %v4758_v57, 16  ;;  %v1672_v50 = vrot.slane %v4758_v57, 2 }
  0x5f   : > { %v1301_v62 = vrot.slane %v6192_v34, 1  ;;  %v1304_v63 = vrot.slane %v6191_v58, 2  ;;  %v4927_v58 = vld [vmem:[%s4572_s8 + $0x48] sm:$0xff] }
  0x61   : > { %v1305_v1 = vor.u32 %v1304_v63, %v1301_v62 }
  0x63   : > { %v1306_v6 = vsel %vm1280_vm5, %v1296_v48, %v1305_v1  ;;  %v1315_v40 = vsel %vm1280_vm5, %v1305_v1, %v1314_v21 }
  0x64   : > { %3803 = vmatmul.msk.bf16.gmra.mxu1 %vm579_vm2, %v4683_v37 }
  0x6a   : > { %3784 = vmatmul.msk.bf16.gmra.mxu0 %vm579_vm2, %v474_v22  ;;  %v1669_v22 = vrot.slane %v4786_v18, 2 }
  0x6b   : > { %3818 = vmatmul.msk.bf16.vlgmr.msrb.gmra.mxu2 %vm579_vm2, %v902_v24  ;;  %v1670_v24 = vrot.slane %v4731_v26, 2 }
  0x6c   : > { %3797 = vmatmul.msk.bf16.gmra.mxu3 %vm579_vm2, %v578_v25  ;;  %v907_v25 = vrot.slane %v4656_v7, 1  ;;  %v6186_v7 = vshrl.u32 %v4803_v41, 16 }
  0x6d   : > { %v1671_v8 = vsel %vm1668_vm6, %v1669_v22, %v1670_v24  ;;  %v1673_v63 = vsel %vm1668_vm6, %v1670_v24, %v1672_v50 }
  0x6e   : > { %v908_v39 = vsel %vm899_vm4, %v905_v0, %v907_v25  ;;  %v1319_v48 = vrot.slane %v6186_v7, 1 }
  0x74   : > { %3804 = vmatmul.msk.bf16.gmra.mxu1 %vm579_vm2, %v4708_v59 }
  0x7a   : > { %3785 = vmatmul.msk.bf16.gmra.mxu0 %vm579_vm2, %v482_v51  ;;  %v909_v51 = vrot.slane %v4683_v37, 1 }
  0x7b   : > { %3819 = vmatmul.msk.bf16.gmra.mxu2 %vm579_vm2, %v904_v55  ;;  %v1323_v55 = vor.u32 %v1322_v49, %v1319_v48 }
  0x7c   : > { %3910 = vmatmul.msk.bf16.vlgmr.msrb.gmra.mxu3 %vm579_vm2, %v1297_v56  ;;  %v910_v1 = vsel %vm899_vm4, %v907_v25, %v909_v51  ;;  %v1674_v25 = vrot.slane %v4779_v15, 2 }
  0x84   : > { %3805 = vmatmul.msk.bf16.gmra.mxu1 %vm579_vm2, %v4736_v29 }
  0x8a   : > { %3786 = vmatmul.msk.bf16.gmra.mxu0 %vm579_vm2, %v490_v2  ;;  %v1324_v2 = vsel %vm1280_vm5, %v1314_v21, %v1323_v55  ;;  %v911_v21 = vrot.slane %v4708_v59, 1 }
  0x8b   : > { %3820 = vmatmul.msk.bf16.gmra.mxu2 %vm579_vm2, %v906_v3  ;;  %v4834_v3 = vld [vmem:[%s4572_s8 + $0x30] sm:$0xff] }
  0x8c   : > { %3911 = vmatmul.msk.bf16.gmra.mxu3 %vm579_vm2, %v1306_v6  ;;  %v6184_v37 = vshrl.u32 %v4834_v3, 16  ;;  %v6183_v5 = vshll.u32 %v4834_v3, 16  ;;  %v912_v48 = vsel %vm899_vm4, %v909_v51, %v911_v21 }
  0x8e   : > { %v1328_v22 = vrot.slane %v6184_v37, 1  ;;  %v1331_v24 = vrot.slane %v6183_v5, 2  ;;  %v4896_v5 = vld [vmem:[%s4572_s8 + $0x40] sm:$0xff] }
  0x91   : > { %v798_v23 = vpop.f32.mrf.mxu1 }
  0x94   : > { %3806 = vmatmul.msk.bf16.gmra.mxu1 %vm579_vm2, %v4579_v9 }
  0x97   : > { %v653_v28 = vpop.f32.mrf.mxu0 }
  0x98   : > { %v4798_v30 = vadd.f32 %v798_v23, %v653_v28  ;;  %v1332_v28 = vor.u32 %v1331_v24, %v1328_v22  ;;  %v913_v22 = vrot.slane %v4736_v29, 1  ;;  %v6188_v29 = vshrl.u32 %v4896_v5, 16 }
  0x99   : > { %v800_v33 = vpop.f32.mrf.mxu1 }
  0x9a   : > { %3930 = vmatmul.msk.bf16.vlgmr.msrb.gmra.mxu0 %vm579_vm2, %v1671_v8  ;;  %v1333_v49 = vsel %vm1280_vm5, %v1323_v55, %v1332_v28 }
  0x9b   : > { %3821 = vmatmul.msk.bf16.gmra.mxu2 %vm579_vm2, %v908_v39 }
  0x9c   : > { %3912 = vmatmul.msk.bf16.gmra.mxu3 %vm579_vm2, %v1315_v40  ;;  %v1675_v40 = vsel %vm1668_vm6, %v1672_v50, %v1674_v25 }
  0x9e   : > { %v4810_v43 = vpop.f32.mrf.mxu2 }
  0x9f   : > { %v655_v44 = vpop.f32.mrf.mxu0  ;;  %v4812_v45 = vpop.f32.mrf.mxu3 }
  0xa0   : > { %6225 = vst [vmem:[#allocation3_spill] sm:$0xff] %v4812_v45  ;;  %v4814_v46 = vadd.f32 %v800_v33, %v655_v44 }
  0xa1   : > { %v803_v47 = vpop.f32.mrf.mxu1 }
  0xa4   : > { %3807 = vmatmul.msk.bf16.gmra.mxu1 %vm579_vm2, %v4583_v12 }
  0xa6   : > { %v4824_v56 = vpop.f32.mrf.mxu2 }
  0xa7   : > { %v658_v61 = vpop.f32.mrf.mxu0  ;;  %v4826_v62 = vpop.f32.mrf.mxu3 }
  0xa8   : > { %6226 = vst [vmem:[#allocation4_spill] sm:$0xff] %v4826_v62  ;;  %v4829_v27 = vadd.f32 %v803_v47, %v658_v61  ;;  %v4865_v61 = vld [vmem:[%s4572_s8 + $0x38] sm:$0xff] }
  0xa9   : > { %v805_v0 = vpop.f32.mrf.mxu1  ;;  %v6182_v59 = vshrl.u32 %v4865_v61, 16 }
  0xaa   : > { %3931 = vmatmul.msk.bf16.gmra.mxu0 %vm579_vm2, %v1673_v63  ;;  %v6181_v63 = vshll.u32 %v4865_v61, 16 }
  0xab   : > { %3822 = vmatmul.msk.bf16.gmra.mxu2 %vm579_vm2, %v910_v1 }
  0xac   : > { %3913 = vmatmul.msk.bf16.gmra.mxu3 %vm579_vm2, %v1324_v2  ;;  %v1337_v2 = vrot.slane %v6182_v59, 1 }
  0xae   : > { %v4841_v6 = vpop.f32.mrf.mxu2 }
  0xaf   : > { %v660_v16 = vpop.f32.mrf.mxu0  ;;  %v4843_v23 = vpop.f32.mrf.mxu3 }
  0xb0   : > { %6227 = vst [vmem:[#allocation5_spill] sm:$0xff] %v4843_v23  ;;  %v4845_v19 = vadd.f32 %v805_v0, %v660_v16  ;;  %v1340_v16 = vrot.slane %v6181_v63, 2  ;;  %v914_v63 = vsel %vm899_vm4, %v911_v21, %v913_v22  ;;  %v4987_v23 = vld [vmem:[%s4572_s8 + $0x58] sm:$0xff] }
  0xb1   : > { %v808_v20 = vpop.f32.mrf.mxu1  ;;  %6240 = vst [vmem:[#allocation18_spill] sm:$0xff] %v4987_v23 }
  0xb2   : > { %v1341_v24 = vor.u32 %v1340_v16, %v1337_v2  ;;  %v6189_v2 = vshll.u32 %v4896_v5, 16 }
  0xb4   : > { %3808 = vmatmul.msk.bf16.gmra.mxu1 %vm579_vm2, %v4614_v35  ;;  %v1342_v59 = vsel %vm1280_vm5, %v1332_v28, %v1341_v24 }
  0xb6   : > { %v4855_v8 = vpop.f32.mrf.mxu2 }
  0xb7   : > { %v663_v33 = vpop.f32.mrf.mxu0  ;;  %v4857_v39 = vpop.f32.mrf.mxu3 }
  0xb8   : > { %6228 = vst [vmem:[#allocation6_spill] sm:$0xff] %v4857_v39  ;;  %v4860_v44 = vadd.f32 %v808_v20, %v663_v33  ;;  %v1676_v20 = vrot.slane %v4803_v41, 2 }
  0xb9   : > { %v810_v47 = vpop.f32.mrf.mxu1 }
  0xba   : > { %3932 = vmatmul.msk.bf16.gmra.mxu0 %vm579_vm2, %v1675_v40 }
  0xbb   : > { %3823 = vmatmul.msk.bf16.gmra.mxu2 %vm579_vm2, %v912_v48  ;;  %v1677_v48 = vsel %vm1668_vm6, %v1674_v25, %v1676_v20 }
  0xbc   : > { %3914 = vmatmul.msk.bf16.gmra.mxu3 %vm579_vm2, %v1333_v49 }
  0xbe   : > { %v4872_v50 = vpop.f32.mrf.mxu2 }
  0xbf   : > { %v665_v0 = vpop.f32.mrf.mxu0  ;;  %v4874_v1 = vpop.f32.mrf.mxu3 }
  0xc0   : > { %6229 = vst [vmem:[#allocation7_spill] sm:$0xff] %v4874_v1  ;;  %v4876_v51 = vadd.f32 %v810_v47, %v665_v0 }
  0xc1   : > { %v813_v55 = vpop.f32.mrf.mxu1 }
  0xc4   : > { %3809 = vmatmul.msk.bf16.gmra.mxu1 %vm579_vm2, %v4637_v53 }
  0xc6   : > { %v4886_v33 = vpop.f32.mrf.mxu2 }
  0xc7   : > { %v668_v40 = vpop.f32.mrf.mxu0  ;;  %v4888_v47 = vpop.f32.mrf.mxu3 }
  0xc8   : > { %6230 = vst [vmem:[#allocation8_spill] sm:$0xff] %v4888_v47  ;;  %v4891_v49 = vadd.f32 %v813_v55, %v668_v40  ;;  %v1346_v40 = vrot.slane %v6188_v29, 1 }
  0xc9   : > { %v815_v0 = vpop.f32.mrf.mxu1 }
  0xca   : > { %3933 = vmatmul.msk.bf16.gmra.mxu0 %vm579_vm2, %v1677_v48  ;;  %v915_v48 = vrot.slane %v4579_v9, 1  ;;  %v6195_v9 = vshrl.u32 %v4927_v58, 16 }
  0xcb   : > { %3824 = vmatmul.msk.bf16.gmra.mxu2 %vm579_vm2, %v914_v63  ;;  %v1349_v63 = vrot.slane %v6189_v2, 2 }
  0xcc   : > { %3915 = vmatmul.msk.bf16.gmra.mxu3 %vm579_vm2, %v1342_v59  ;;  %v1678_v59 = vrot.slane %v4834_v3, 2  ;;  %v916_v2 = vsel %vm899_vm4, %v913_v22, %v915_v48 }
  0xcd   : > { %v1350_v37 = vor.u32 %v1349_v63, %v1346_v40  ;;  %v6196_v40 = vshll.u32 %v4927_v58, 16 }
  0xce   : > { %v4903_v25 = vpop.f32.mrf.mxu2  ;;  %v1679_v7 = vsel %vm1668_vm6, %v1676_v20, %v1678_v59 }
  0xcf   : > { %v670_v55 = vpop.f32.mrf.mxu0  ;;  %v4905_v16 = vpop.f32.mrf.mxu3  ;;  %v1351_v52 = vsel %vm1280_vm5, %v1341_v24, %v1350_v37 }
  0xd0   : > { %6231 = vst [vmem:[#allocation9_spill] sm:$0xff] %v4905_v16  ;;  %v4907_v21 = vadd.f32 %v815_v0, %v670_v55  ;;  %v4958_v16 = vld [vmem:[%s4572_s8 + $0x50] sm:$0xff] }
  0xd1   : > { %v818_v28 = vpop.f32.mrf.mxu1  ;;  %6237 = vst [vmem:[#allocation15_spill] sm:$0xff] %v4958_v16 }
  0xd4   : > { %3810 = vmatmul.msk.bf16.gmra.mxu1 %vm579_vm2, %v4660_v10 }
  0xd6   : > { %v4917_v42 = vpop.f32.mrf.mxu2 }
  0xd7   : > { %v673_v0 = vpop.f32.mrf.mxu0  ;;  %v4919_v55 = vpop.f32.mrf.mxu3 }
  0xd8   : > { %6232 = vst [vmem:[#allocation10_spill] sm:$0xff] %v4919_v55  ;;  %v4922_v17 = vadd.f32 %v818_v28, %v673_v0  ;;  %v917_v0 = vrot.slane %v4583_v12, 1  ;;  %v6197_v12 = vshrl.u32 %v4958_v16, 16 }
  0xd9   : > { %v820_v29 = vpop.f32.mrf.mxu1 }
  0xda   : > { %3934 = vmatmul.msk.bf16.gmra.mxu0 %vm579_vm2, %v1679_v7  ;;  %v1355_v7 = vrot.slane %v6195_v9, 1 }
  0xdb   : > { %3825 = vmatmul.msk.bf16.gmra.mxu2 %vm579_vm2, %v916_v2  ;;  %v1358_v2 = vrot.slane %v6196_v40, 2  ;;  %v918_v40 = vsel %vm899_vm4, %v915_v48, %v917_v0 }
  0xdc   : > { %3916 = vmatmul.msk.bf16.gmra.mxu3 %vm579_vm2, %v1351_v52  ;;  %v1680_v52 = vrot.slane %v4865_v61, 2 }
  0xdd   : > { %v1359_v34 = vor.u32 %v1358_v2, %v1355_v7  ;;  %v6198_v7 = vshll.u32 %v4958_v16, 16 }
  0xde   : > { %v4934_v20 = vpop.f32.mrf.mxu2  ;;  %v1681_v31 = vsel %vm1668_vm6, %v1678_v59, %v1680_v52 }
  0xdf   : > { %6233 = vst [vmem:[#allocation11_spill] sm:$0xff] %v4934_v20  ;;  %v675_v28 = vpop.f32.mrf.mxu0  ;;  %v4936_v63 = vpop.f32.mrf.mxu3  ;;  %v1360_v55 = vsel %vm1280_vm5, %v1350_v37, %v1359_v34 }
  0xe0   : > { %6234 = vst [vmem:[#allocation12_spill] sm:$0xff] %v4936_v63  ;;  %v4938_v22 = vadd.f32 %v820_v29, %v675_v28 }
  0xe1   : > { %v823_v24 = vpop.f32.mrf.mxu1 }
  0xe4   : > { %3811 = vmatmul.msk.bf16.gmra.mxu1 %vm579_vm2, %v4586_v13 }
  0xe6   : > { %v4948_v32 = vpop.f32.mrf.mxu2 }
  0xe7   : > { %6235 = vst [vmem:[#allocation13_spill] sm:$0xff] %v4948_v32  ;;  %v678_v29 = vpop.f32.mrf.mxu0  ;;  %v4950_v28 = vpop.f32.mrf.mxu3  ;;  %v5012_v32 = vld [vmem:[%s4572_s8 + $0x60] sm:$0xff] }
  0xe8   : > { %6236 = vst [vmem:[#allocation14_spill] sm:$0xff] %v4950_v28  ;;  %v4953_v63 = vadd.f32 %v823_v24, %v678_v29  ;;  %v919_v28 = vrot.slane %v4614_v35, 1  ;;  %v6199_v35 = vshrl.u32 %v4987_v23, 16 }
  0xe9   : > { %v825_v9 = vpop.f32.mrf.mxu1  ;;  %6241 = vst [vmem:[#allocation19_spill] sm:$0xff] %v5012_v32 }
  0xea   : > { %3935 = vmatmul.msk.bf16.gmra.mxu0 %vm579_vm2, %v1681_v31  ;;  %v1364_v31 = vrot.slane %v6197_v12, 1 }
  0xeb   : > { %3826 = vmatmul.msk.bf16.gmra.mxu2 %vm579_vm2, %v918_v40  ;;  %v1682_v40 = vrot.slane %v4896_v5, 2 }
  0xec   : > { %3917 = vmatmul.msk.bf16.gmra.mxu3 %vm579_vm2, %v1360_v55  ;;  %v1367_v55 = vrot.slane %v6198_v7, 2  ;;  %v920_v7 = vsel %vm899_vm4, %v917_v0, %v919_v28 }
  0xee   : > { %v1008_v59 = vpop.f32.mrf.mxu2 }
  0xef   : > { %v680_v24 = vpop.f32.mrf.mxu0  ;;  %v4965_v2 = vpop.f32.mrf.mxu3  ;;  %v1103_v48 = vadd.f32 %v1008_v59, %v4798_v30 }
  0xf0   : > { %6238 = vst [vmem:[#allocation16_spill] sm:$0xff] %v4965_v2  ;;  %v4968_v29 = vadd.f32 %v825_v9, %v680_v24  ;;  %v1368_v2 = vor.u32 %v1367_v55, %v1364_v31  ;;  %v1683_v24 = vsel %vm1668_vm6, %v1680_v52, %v1682_v40 }
  0xf1   : > { %v828_v37 = vpop.f32.mrf.mxu1 }
  0xf2   : > { %v1369_v39 = vsel %vm1280_vm5, %v1359_v34, %v1368_v2 }
  0xf4   : > { %3812 = vmatmul.msk.bf16.gmra.mxu1 %vm579_vm2, %v4589_v14 }
  0xf6   : > { %v1010_v47 = vpop.f32.mrf.mxu2 }
  0xf7   : > { %v683_v30 = vpop.f32.mrf.mxu0  ;;  %v4978_v9 = vpop.f32.mrf.mxu3  ;;  %v1104_v59 = vadd.f32 %v1010_v47, %v4814_v46  ;;  %v6200_v46 = vshll.u32 %v4987_v23, 16 }
  0xf8   : > { %6239 = vst [vmem:[#allocation17_spill] sm:$0xff] %v4978_v9  ;;  %v4982_v12 = vadd.f32 %v828_v37, %v683_v30  ;;  %v1373_v30 = vrot.slane %v6199_v35, 1 }
  0xf9   : > { %v830_v1 = vpop.f32.mrf.mxu1 }
  0xfa   : > { %3936 = vmatmul.msk.bf16.gmra.mxu0 %vm579_vm2, %v1683_v24  ;;  %v921_v24 = vrot.slane %v4637_v53, 1  ;;  %v6201_v53 = vshrl.u32 %v5012_v32, 16 }
  0xfb   : > { %3827 = vmatmul.msk.bf16.gmra.mxu2 %vm579_vm2, %v920_v7  ;;  %v1684_v7 = vrot.slane %v4927_v58, 2 }
  0xfc   : > { %3918 = vmatmul.msk.bf16.gmra.mxu3 %vm579_vm2, %v1369_v39  ;;  %v1376_v39 = vrot.slane %v6200_v46, 2  ;;  %v922_v46 = vsel %vm899_vm4, %v919_v28, %v921_v24 }
  0xfe   : > { %v1013_v47 = vpop.f32.mrf.mxu2 }
  0xff   : > { %v685_v52 = vpop.f32.mrf.mxu0  ;;  %v1105_v37 = vadd.f32 %v1013_v47, %v4829_v27  ;;  %v1529_v31 = vpop.f32.mrf.mxu3  ;;  %v1377_v27 = vor.u32 %v1376_v39, %v1373_v30 }
 0x100   : > { %v4995_v0 = vadd.f32 %v830_v1, %v685_v52  ;;  %v1624_v34 = vadd.f32 %v1529_v31, %v1103_v48  ;;  %v1685_v31 = vsel %vm1668_vm6, %v1682_v40, %v1684_v7 }
 0x101   : > { %v833_v55 = vpop.f32.mrf.mxu1  ;;  %v1378_v45 = vsel %vm1280_vm5, %v1368_v2, %v1377_v27 }
 0x104   : > { %3813 = vmatmul.msk.bf16.gmra.mxu1 %vm579_vm2, %v4617_v36 }
 0x106   : > { %v1015_v47 = vpop.f32.mrf.mxu2 }
 0x107   : > { %v688_v1 = vpop.f32.mrf.mxu0  ;;  %v1106_v48 = vadd.f32 %v1015_v47, %v4845_v19  ;;  %v1531_v52 = vpop.f32.mrf.mxu3  ;;  %v6202_v19 = vshll.u32 %v5012_v32, 16  ;;  %v1382_v47 = vrot.slane %v6201_v53, 1 }
 0x108   : > { %v5007_v35 = vadd.f32 %v833_v55, %v688_v1  ;;  %v1625_v9 = vadd.f32 %v1531_v52, %v1104_v59 }
 0x109   : > { %v835_v62 = vpop.f32.mrf.mxu1 }
 0x10a   : > { %3937 = vmatmul.msk.bf16.gmra.mxu0 %vm579_vm2, %v1685_v31 }
 0x10b   : > { %3828 = vmatmul.msk.bf16.gmra.mxu2 %vm579_vm2, %v922_v46  ;;  %v1686_v46 = vrot.slane %v4958_v16, 2  ;;  %v5041_v16 = vld [vmem:[%s4572_s8 + $0x68] sm:$0xff] }
 0x10c   : > { %3919 = vmatmul.msk.bf16.gmra.mxu3 %vm579_vm2, %v1378_v45  ;;  %v1385_v45 = vrot.slane %v6202_v19, 2 }
 0x10e   : > { %v1018_v40 = vpop.f32.mrf.mxu2  ;;  %v1386_v1 = vor.u32 %v1385_v45, %v1382_v47 }
 0x10f   : > { %v690_v55 = vpop.f32.mrf.mxu0  ;;  %v1107_v59 = vadd.f32 %v1018_v40, %v4860_v44  ;;  %v1534_v30 = vpop.f32.mrf.mxu3  ;;  %v923_v44 = vrot.slane %v4660_v10, 1  ;;  %v1687_v40 = vsel %vm1668_vm6, %v1684_v7, %v1686_v46  ;;  %v6205_v10 = vshrl.u32 %v5041_v16, 16  ;;  %v3949_v7 = vld [vmem:[%s6175_s1 + $0xa] sm:$0x3] }
 0x110   : > { %v5020_v28 = vadd.f32 %v835_v62, %v690_v55  ;;  %v1626_v2 = vadd.f32 %v1534_v30, %v1105_v37  ;;  %v1387_v20 = vsel %vm1280_vm5, %v1377_v27, %v1386_v1  ;;  %v2064_v47 = vand.u32 %v3949_v7, %v4562_v4 }
 0x111   : > { %v5022_v39 = vpop.f32.mrf.mxu1  ;;  %v924_v19 = vsel %vm899_vm4, %v921_v24, %v923_v44 }
 0x112   : > { %2073 = vmatpush.bf16.msrb.mxu1 %v2064_v47 }
 0x114   : > { %3814 = vmatmul.msk.bf16.gmra.mxu1 %vm579_vm2, %v4640_v54 }
 0x116   : > { %v1020_v62 = vpop.f32.mrf.mxu2 }
 0x117   : > { %v1108_v37 = vadd.f32 %v1020_v62, %v4876_v51  ;;  %v1536_v52 = vpop.f32.mrf.mxu3  ;;  %v1777_v31 = vpop.f32.mrf.mxu0  ;;  %v6206_v51 = vshll.u32 %v5041_v16, 16 }
 0x118   : > { %v1627_v55 = vadd.f32 %v1536_v52, %v1106_v48  ;;  %v5034_v30 = vadd.f32 %v1777_v31, %v1624_v34  ;;  %v925_v31 = vrot.slane %v4586_v13, 1 }
 0x119   : > { %v5036_v53 = vpop.f32.mrf.mxu1  ;;  %v1394_v52 = vrot.slane %v6206_v51, 2 }
 0x11a   : > { %3938 = vmatmul.msk.bf16.gmra.mxu0 %vm579_vm2, %v1687_v40  ;;  %v926_v47 = vsel %vm899_vm4, %v923_v44, %v925_v31 }
 0x11b   : > { %3829 = vmatmul.msk.bf16.gmra.mxu2 %vm579_vm2, %v924_v19 }
 0x11c   : > { %3920 = vmatmul.msk.bf16.gmra.mxu3 %vm579_vm2, %v1387_v20  ;;  %v1391_v20 = vrot.slane %v6205_v10, 1 }
 0x11e   : > { %v1023_v34 = vpop.f32.mrf.mxu2 }
 0x11f   : > { %v1109_v24 = vadd.f32 %v1023_v34, %v4891_v49  ;;  %v1539_v27 = vpop.f32.mrf.mxu3  ;;  %v1779_v48 = vpop.f32.mrf.mxu0  ;;  %v1688_v49 = vrot.slane %v4987_v23, 2  ;;  %v5074_v23 = vld [vmem:[%s4572_s8 + $0x70] sm:$0xff] }
 0x120   : > { %v1628_v45 = vadd.f32 %v1539_v27, %v1107_v59  ;;  %v5053_v62 = vadd.f32 %v1779_v48, %v1625_v9  ;;  %v1395_v59 = vor.u32 %v1394_v52, %v1391_v20  ;;  %v6210_v13 = vshrl.u32 %v5074_v23, 16 }
 0x121   : > { %v5055_v19 = vpop.f32.mrf.mxu1  ;;  %v1689_v27 = vsel %vm1668_vm6, %v1686_v46, %v1688_v49 }
 0x122   : > { %6242 = vst [vmem:[#allocation20_spill] sm:$0xff] %v5053_v62  ;;  %v1396_v62 = vsel %vm1280_vm5, %v1386_v1, %v1395_v59 }
 0x124   : > { %3815 = vmatmul.msk.bf16.gmra.mxu1 %vm579_vm2, %v4663_v11 }
 0x126   : > { %v1025_v9 = vpop.f32.mrf.mxu2 }
 0x127   : > { %v1110_v40 = vadd.f32 %v1025_v9, %v4907_v21  ;;  %v1541_v34 = vpop.f32.mrf.mxu3  ;;  %v1782_v7 = vpop.f32.mrf.mxu0  ;;  %v6209_v21 = vshll.u32 %v5074_v23, 16  ;;  %v1400_v9 = vrot.slane %v6210_v13, 1 }
 0x128   : > { %v1629_v48 = vadd.f32 %v1541_v34, %v1108_v37  ;;  %v5067_v10 = vadd.f32 %v1782_v7, %v1626_v2  ;;  %v1690_v34 = vrot.slane %v5012_v32, 2  ;;  %v1918_v7 = vshrl.u32 %v4786_v18, 16 }
 0x129   : > { %v5069_v51 = vpop.f32.mrf.mxu1 }
 0x12a   : > { %6243 = vst [vmem:[#allocation21_spill] sm:$0xff] %v5067_v10  ;;  %3939 = vmatmul.msk.bf16.gmra.mxu0 %vm579_vm2, %v1689_v27  ;;  %v1920_v13 = vrot.slane %v1918_v7, 2 }
 0x12b   : > { %3830 = vmatmul.msk.bf16.gmra.mxu2 %vm579_vm2, %v926_v47  ;;  %v1691_v47 = vsel %vm1668_vm6, %v1688_v49, %v1690_v34 }
 0x12c   : > { %3921 = vmatmul.msk.bf16.gmra.mxu3 %vm579_vm2, %v1396_v62  ;;  %v1403_v62 = vrot.slane %v6209_v21, 2 }
 0x12e   : > { %v1028_v2 = vpop.f32.mrf.mxu2 }
 0x12f   : > { %v1111_v46 = vadd.f32 %v1028_v2, %v4922_v17  ;;  %v1544_v37 = vpop.f32.mrf.mxu3  ;;  %v1784_v20 = vpop.f32.mrf.mxu0  ;;  %v927_v17 = vrot.slane %v4589_v14, 1 }
 0x130   : > { %v1630_v44 = vadd.f32 %v1544_v37, %v1109_v24  ;;  %v5082_v52 = vadd.f32 %v1784_v20, %v1627_v55  ;;  %v1921_v55 = vshll.u32 %v4786_v18, 16  ;;  %v1404_v24 = vor.u32 %v1403_v62, %v1400_v9 }
 0x131   : > { %v5084_v1 = vpop.f32.mrf.mxu1  ;;  %v928_v21 = vsel %vm899_vm4, %v925_v31, %v927_v17  ;;  %v6245_v18 = vshrl.u32 %v4731_v26, 16  ;;  %v6246_v9 = vshll.u32 %v4731_v26, 16 }
 0x132   : > { %6244 = vst [vmem:[#allocation22_spill] sm:$0xff] %v5082_v52  ;;  %v1923_v52 = vrot.slane %v1921_v55, 3  ;;  %v1405_v49 = vsel %vm1280_vm5, %v1395_v59, %v1404_v24 }
 0x133   : > { %v1925_v10 = vrot.slane %v6245_v18, 2  ;;  %v1926_v62 = vrot.slane %v6246_v9, 3 }
 0x134   : > { %3816 = vmatmul.msk.bf16.gmra.mxu1 %vm579_vm2, %v4687_v38 }
 0x135   : > { %v1927_v31 = vor.u32 %v1926_v62, %v1925_v10 }
 0x136   : > { %v1030_v27 = vpop.f32.mrf.mxu2 }
 0x137   : > { %v1112_v2 = vadd.f32 %v1030_v27, %v4938_v22  ;;  %v1546_v37 = vpop.f32.mrf.mxu3  ;;  %v1787_v20 = vpop.f32.mrf.mxu0  ;;  %v5109_v22 = vld [vmem:[%s4572_s8 + $0x78] sm:$0xff] }
 0x138   : > { %v1631_v38 = vadd.f32 %v1546_v37, %v1110_v40  ;;  %v5099_v32 = vadd.f32 %v1787_v20, %v1628_v45  ;;  %v1924_v45 = vor.u32 %v1923_v52, %v1920_v13  ;;  %v6216_v40 = vshrl.u32 %v5109_v22, 16 }
 0x139   : > { %v5101_v14 = vpop.f32.mrf.mxu1  ;;  %v6213_v7 = vshll.u32 %v5109_v22, 16  ;;  %v929_v52 = vrot.slane %v4617_v36, 1  ;;  %v6248_v36 = vshll.u32 %v4758_v57, 16 }
 0x13a   : > { %3940 = vmatmul.msk.bf16.gmra.mxu0 %vm579_vm2, %v1691_v47  ;;  %v1409_v10 = vrot.slane %v6216_v40, 1 }
 0x13b   : > { %3831 = vmatmul.msk.bf16.gmra.mxu2 %vm579_vm2, %v928_v21  ;;  %v1928_v21 = vsel %vm1916_vm7, %v1924_v45, %v1927_v31  ;;  %v1412_v13 = vrot.slane %v6213_v7, 2  ;;  %v930_v45 = vsel %vm899_vm4, %v927_v17, %v929_v52 }
 0x13c   : > { %3922 = vmatmul.msk.bf16.gmra.mxu3 %vm579_vm2, %v1405_v49 }
 0x13e   : > { %v1033_v55 = vpop.f32.mrf.mxu2 }
 0x13f   : > { %v1113_v26 = vadd.f32 %v1033_v55, %v4953_v63  ;;  %v1549_v27 = vpop.f32.mrf.mxu3  ;;  %v1789_v59 = vpop.f32.mrf.mxu0  ;;  %v1692_v63 = vrot.slane %v5041_v16, 2 }
 0x140   : > { %v1632_v37 = vadd.f32 %v1549_v27, %v1111_v46  ;;  %v5117_v20 = vadd.f32 %v1789_v59, %v1629_v48  ;;  %v1413_v46 = vor.u32 %v1412_v13, %v1409_v10  ;;  %v1930_v10 = vrot.slane %v6248_v36, 3 }
 0x141   : > { %v5119_v47 = vpop.f32.mrf.mxu1  ;;  %v1693_v49 = vsel %vm1668_vm6, %v1690_v34, %v1692_v63  ;;  %v931_v36 = vrot.slane %v4640_v54, 1  ;;  %v6250_v54 = vshll.u32 %v4779_v15, 16 }
 0x142   : > { %v1414_v13 = vsel %vm1280_vm5, %v1404_v24, %v1413_v46 }
 0x144   : > { %3950 = vmatmul.msk.bf16.vlgmr.msrb.gmra.mxu1 %vm579_vm2, %v1928_v21  ;;  %v6247_v21 = vshrl.u32 %v4758_v57, 16 }
 0x146   : > { %v1035_v48 = vpop.f32.mrf.mxu2  ;;  %v1929_v7 = vrot.slane %v6247_v21, 2 }
 0x147   : > { %v1114_v18 = vadd.f32 %v1035_v48, %v4968_v29  ;;  %v1551_v9 = vpop.f32.mrf.mxu3  ;;  %v1792_v62 = vpop.f32.mrf.mxu0  ;;  %v5142_v29 = vld [vmem:[%s4572_s8 + $0x80] sm:$0xff] }
 0x148   : > { %v1633_v55 = vadd.f32 %v1551_v9, %v1112_v2  ;;  %v5132_v27 = vadd.f32 %v1792_v62, %v1630_v44  ;;  %v1931_v44 = vor.u32 %v1930_v10, %v1929_v7  ;;  %v6214_v34 = vshrl.u32 %v5142_v29, 16 }
 0x149   : > { %v5134_v59 = vpop.f32.mrf.mxu1  ;;  %v6215_v17 = vshll.u32 %v5142_v29, 16 }
 0x14a   : > { %3941 = vmatmul.msk.bf16.gmra.mxu0 %vm579_vm2, %v1693_v49  ;;  %v1932_v49 = vsel %vm1916_vm7, %v1927_v31, %v1931_v44 }
 0x14b   : > { %3832 = vmatmul.msk.bf16.gmra.mxu2 %vm579_vm2, %v930_v45  ;;  %v1418_v45 = vrot.slane %v6214_v34, 1  ;;  %v1421_v7 = vrot.slane %v6215_v17, 2 }
 0x14c   : > { %3923 = vmatmul.msk.bf16.gmra.mxu3 %vm579_vm2, %v1414_v13 }
 0x14e   : > { %v1038_v2 = vpop.f32.mrf.mxu2 }
 0x14f   : > { %v1115_v48 = vadd.f32 %v1038_v2, %v4982_v12  ;;  %v1554_v57 = vpop.f32.mrf.mxu3  ;;  %v1794_v9 = vpop.f32.mrf.mxu0  ;;  %v1694_v12 = vrot.slane %v5074_v23, 2 }
 0x150   : > { %v1634_v62 = vadd.f32 %v1554_v57, %v1113_v26  ;;  %v5150_v24 = vadd.f32 %v1794_v9, %v1631_v38  ;;  %v1422_v26 = vor.u32 %v1421_v7, %v1418_v45  ;;  %v932_v57 = vsel %vm899_vm4, %v929_v52, %v931_v36 }
 0x151   : > { %v5152_v21 = vpop.f32.mrf.mxu1  ;;  %v1695_v31 = vsel %vm1668_vm6, %v1692_v63, %v1694_v12  ;;  %v1934_v45 = vrot.slane %v6250_v54, 3  ;;  %v933_v54 = vrot.slane %v4663_v11, 1  ;;  %v6253_v11 = vshll.u32 %v4803_v41, 16 }
 0x152   : > { %v1423_v7 = vsel %vm1280_vm5, %v1413_v46, %v1422_v26 }
 0x154   : > { %3951 = vmatmul.msk.bf16.gmra.mxu1 %vm579_vm2, %v1932_v49  ;;  %v6249_v49 = vshrl.u32 %v4779_v15, 16 }
 0x156   : > { %v1040_v38 = vpop.f32.mrf.mxu2  ;;  %v1933_v40 = vrot.slane %v6249_v49, 2 }
 0x157   : > { %v1116_v10 = vadd.f32 %v1040_v38, %v4995_v0  ;;  %v1556_v13 = vpop.f32.mrf.mxu3  ;;  %v1797_v2 = vpop.f32.mrf.mxu0  ;;  %v5175_v0 = vld [vmem:[%s4572_s8 + $0x88] sm:$0xff] }
 0x158   : > { %v1635_v9 = vadd.f32 %v1556_v13, %v1114_v18  ;;  %v5165_v34 = vadd.f32 %v1797_v2, %v1632_v37  ;;  %v1935_v37 = vor.u32 %v1934_v45, %v1933_v40  ;;  %v6218_v63 = vshrl.u32 %v5175_v0, 16 }
 0x159   : > { %v5167_v17 = vpop.f32.mrf.mxu1  ;;  %v6217_v52 = vshll.u32 %v5175_v0, 16 }
 0x15a   : > { %3942 = vmatmul.msk.bf16.gmra.mxu0 %vm579_vm2, %v1695_v31  ;;  %v1936_v31 = vsel %vm1916_vm7, %v1931_v44, %v1935_v37 }
 0x15b   : > { %3833 = vmatmul.msk.bf16.gmra.mxu2 %vm579_vm2, %v932_v57  ;;  %v1427_v57 = vrot.slane %v6218_v63, 1  ;;  %v1430_v40 = vrot.slane %v6217_v52, 2  ;;  %v6252_v63 = vshrl.u32 %v4803_v41, 16 }
 0x15c   : > { %3924 = vmatmul.msk.bf16.gmra.mxu3 %vm579_vm2, %v1423_v7 }
 0x15e   : > { %v1043_v18 = vpop.f32.mrf.mxu2 }
 0x15f   : > { %v1117_v38 = vadd.f32 %v1043_v18, %v5007_v35  ;;  %v1559_v15 = vpop.f32.mrf.mxu3  ;;  %v1799_v13 = vpop.f32.mrf.mxu0  ;;  %v1696_v35 = vrot.slane %v5109_v22, 2 }
 0x160   : > { %v1636_v2 = vadd.f32 %v1559_v15, %v1115_v48  ;;  %v5183_v46 = vadd.f32 %v1799_v13, %v1633_v55  ;;  %v1431_v48 = vor.u32 %v1430_v40, %v1427_v57  ;;  %v934_v15 = vsel %vm899_vm4, %v931_v36, %v933_v54  ;;  %v5210_v40 = vld [vmem:[%s4572_s8 + $0x90] sm:$0xff] }
 0x161   : > { %v5185_v49 = vpop.f32.mrf.mxu1  ;;  %v1697_v44 = vsel %vm1668_vm6, %v1694_v12, %v1696_v35  ;;  %v1938_v57 = vrot.slane %v6253_v11, 3  ;;  %v3969_v12 = vld [vmem:[%s6175_s1 + $0xc] sm:$0x3]  ;;  %v839_v36 = vadd.f32 %v5022_v39, %v4810_v43  ;;  %v6220_v41 = vshrl.u32 %v5210_v40, 16  ;;  %v3989_v43 = vld [vmem:[%s6175_s1 + $0xe] sm:$0x3] }
 0x162   : > { %6251 = vst [vmem:[#allocation23_spill] sm:$0xff] %v5183_v46  ;;  %v1937_v46 = vrot.slane %v6252_v63, 2 }
 0x163   : > { %v1436_v39 = vrot.slane %v6220_v41, 1 }
 0x164   : > { %3952 = vmatmul.msk.bf16.gmra.mxu1 %vm579_vm2, %v1936_v31 }
 0x166   : > { %v1045_v55 = vpop.f32.mrf.mxu2 }
 0x167   : > { %v1118_v45 = vadd.f32 %v1045_v55, %v5020_v28  ;;  %v1561_v7 = vpop.f32.mrf.mxu3  ;;  %v1802_v18 = vpop.f32.mrf.mxu0  ;;  %v1432_v28 = vsel %vm1280_vm5, %v1422_v26, %v1431_v48  ;;  %v6219_v26 = vshll.u32 %v5210_v40, 16 }
 0x168   : > { %v5198_v13 = vadd.f32 %v1561_v7, %v1116_v10  ;;  %v5200_v52 = vadd.f32 %v1802_v18, %v1634_v62  ;;  %v1939_v62 = vor.u32 %v1938_v57, %v1937_v46  ;;  %v2445_v10 = vand.u32 %v3969_v12, %v4562_v4 }
 0x169   : > { %v5202_v31 = vpop.f32.mrf.mxu1  ;;  %v1439_v57 = vrot.slane %v6219_v26, 2 }
 0x16a   : > { %3943 = vmatmul.msk.bf16.gmra.mxu0 %vm579_vm2, %v1697_v44  ;;  %2454 = vmatpush.bf16.msra.mxu2 %v2445_v10  ;;  %v1940_v11 = vsel %vm1916_vm7, %v1935_v37, %v1939_v62  ;;  %v841_v37 = vadd.f32 %v5036_v53, %v4824_v56  ;;  %v6256_v56 = vshll.u32 %v4834_v3, 16 }
 0x16b   : > { %3834 = vmatmul.msk.bf16.gmra.mxu2 %vm579_vm2, %v934_v15 }
 0x16c   : > { %3925 = vmatmul.msk.bf16.gmra.mxu3 %vm579_vm2, %v1432_v28  ;;  %v2833_v28 = vand.u32 %v3989_v43, %v4562_v4  ;;  %v1942_v53 = vrot.slane %v6256_v56, 3  ;;  %v1700_v56 = vrot.slane %v5175_v0, 2 }
 0x16e   : > { %v1048_v63 = vpop.f32.mrf.mxu2  ;;  %2842 = vmatpush.bf16.msra.mxu3 %v2833_v28  ;;  %v6255_v28 = vshrl.u32 %v4834_v3, 16 }
 0x16f   : > { %v1119_v55 = vadd.f32 %v1048_v63, %v839_v36  ;;  %v1564_v7 = vpop.f32.mrf.mxu3  ;;  %v1804_v18 = vpop.f32.mrf.mxu0  ;;  %v1440_v36 = vor.u32 %v1439_v57, %v1436_v39  ;;  %v4009_v39 = vld [vmem:[%s6175_s1 + $0x10] sm:$0x3]  ;;  %v5258_v57 = vld [vmem:[%s4572_s8 + $0x98] sm:$0xff] }
 0x170   : > { %v1638_v46 = vadd.f32 %v1564_v7, %v1117_v38  ;;  %v5223_v44 = vadd.f32 %v1804_v18, %v1635_v9  ;;  %v1698_v9 = vrot.slane %v5142_v29, 2  ;;  %v4474_v38 = vld [vmem:[%s4572_s8 + $0x90] sm:$0xff] }
 0x171   : > { %v5225_v15 = vpop.f32.mrf.mxu1  ;;  %v935_v12 = vrot.slane %v4474_v38, 1  ;;  %v1941_v38 = vrot.slane %v6255_v28, 2 }
 0x172   : > { %6254 = vst [vmem:[#allocation24_spill] sm:$0xff] %v5223_v44  ;;  %v1699_v26 = vsel %vm1668_vm6, %v1696_v35, %v1698_v9  ;;  %v1441_v35 = vsel %vm1280_vm5, %v1431_v48, %v1440_v36  ;;  %v6221_v48 = vshll.u32 %v5258_v57, 16 }
 0x173   : > { %v936_v43 = vsel %vm899_vm4, %v933_v54, %v935_v12  ;;  %v3056_v54 = vand.u32 %v4009_v39, %v4562_v4  ;;  %v1943_v3 = vor.u32 %v1942_v53, %v1941_v38  ;;  %v1179_v38 = vld [vmem:[%s4572_s8 + $0xa0] sm:$0x3] }
 0x174   : > { %3953 = vmatmul.msk.bf16.gmra.mxu1 %vm579_vm2, %v1940_v11 }
 0x175   : > { %3065 = vmatpush.bf16.msra.mxu0 %v3056_v54  ;;  %v1944_v28 = vsel %vm1916_vm7, %v1939_v62, %v1943_v3  ;;  %v1259_v62 = vunpack.c.l.b16 %v1179_v38 }
 0x176   : > { %v1050_v10 = vpop.f32.mrf.mxu2 }
 0x177   : > { %v1120_v63 = vadd.f32 %v1050_v10, %v841_v37  ;;  %v1566_v7 = vpop.f32.mrf.mxu3  ;;  %v1807_v18 = vpop.f32.mrf.mxu0 }
 0x178   : > { %v5243_v41 = vadd.f32 %v1566_v7, %v1118_v45  ;;  %v5245_v11 = vadd.f32 %v1807_v18, %v1636_v2  ;;  %v844_v2 = vadd.f32 %v5055_v19, %v4841_v6  ;;  %v6222_v45 = vshrl.u32 %v5258_v57, 16 }
 0x179   : > { %v5247_v44 = vpop.f32.mrf.mxu1  ;;  %v1448_v19 = vrot.slane %v6221_v48, 2 }
 0x17a   : > { %3944 = vmatmul.msk.bf16.gmra.mxu0 %vm579_vm2, %v1699_v26  ;;  %v1445_v6 = vrot.slane %v6222_v45, 1 }
 0x17b   : > { %3835 = vmatmul.msk.bf16.gmra.mxu2 %vm579_vm2, %v936_v43 }
 0x17c   : > { %3926 = vmatmul.msk.bf16.gmra.mxu3 %vm579_vm2, %v1441_v35  ;;  %v1449_v53 = vor.u32 %v1448_v19, %v1445_v6  ;;  %v2208_v6 = vld [vmem:[%s4572_s8 + $0x10] sm:$0x8]  ;;  %v5300_v19 = vld [vmem:[%s4572_s8 + $0x14] sm:$0xf] }
 0x17e   : > { %v1053_v37 = vpop.f32.mrf.mxu2  ;;  %v1450_v38 = vsel %vm1280_vm5, %v1440_v36, %v1449_v53 }
 0x17f   : > { %v1121_v10 = vadd.f32 %v1053_v37, %v844_v2  ;;  %v1569_v7 = vpop.f32.mrf.mxu3  ;;  %v1809_v4 = vpop.f32.mrf.mxu0  ;;  %v1701_v37 = vsel %vm1668_vm6, %v1698_v9, %v1700_v56  ;;  %v5303_v9 = vpack.c.b16 %v1259_v62, %v1259_v62 }
 0x180   : > { %v5268_v18 = vadd.f32 %v1569_v7, %v1119_v55  ;;  %v5271_v26 = vadd.f32 %v1809_v4, %v5198_v13  ;;  %v937_v55 = vrot.slane %v4711_v60, 1  ;;  %v846_v13 = vadd.f32 %v5069_v51, %v4855_v8 }
 0x181   : > { %v5273_v43 = vpop.f32.mrf.mxu1  ;;  %v6258_v60 = vshrl.u32 %v4865_v61, 16  ;;  %v6259_v8 = vshll.u32 %v4865_v61, 16  ;;  %v849_v61 = vadd.f32 %v5084_v1, %v4872_v50  ;;  %v1455_v36 = vshll.u32 %v5303_v9, 16  ;;  %v5322_v50 = vld [vmem:[%s4572_s8 + $0x18] sm:$0xff]  }
 0x182   : > { %v938_v7 = vsel %vm899_vm4, %v935_v12, %v937_v55  ;;  %v6223_v12 = vunpack.c.l.b16 %v5300_v19  ;;  %v1452_v55 = vshrl.u32 %v5303_v9, 16 }
 0x183   : > { %v1945_v45 = vrot.slane %v6258_v60, 2  ;;  %v1946_v51 = vrot.slane %v6259_v8, 3  ;;  %v1457_v8 = vrot.slane %v1455_v36, 2 }
 0x184   : > { %3954 = vmatmul.msk.bf16.gmra.mxu1 %vm579_vm2, %v1944_v28  ;;  %v1454_v1 = vrot.slane %v1452_v55, 1 }
 0x186   : > { %v1055_v39 = vpop.f32.mrf.mxu2 }
 0x187   : > { %v1122_v35 = vadd.f32 %v1055_v39, %v846_v13  ;;  %v1571_v54 = vpop.f32.mrf.mxu3  ;;  %v1812_v2 = vpop.f32.mrf.mxu0 }
 0x188   : > { %v5288_v4 = vadd.f32 %v1571_v54, %v1120_v63  ;;  %v5290_v28 = vadd.f32 %v1812_v2, %v1638_v46  ;;  %v2288_v46 = vunpack.c.l.b16 %v2208_v6  ;;  %v1947_v63 = vor.u32 %v1946_v51, %v1945_v45 }
 0x189   : > { %v5292_v48 = vpop.f32.mrf.mxu1  ;;  %v1702_v51 = vrot.slane %v5210_v40, 2 }
 0x18a   : > { %6257 = vst [vmem:[#allocation25_spill] sm:$0xff] %v5290_v28  ;;  %3945 = vmatmul.msk.bf16.gmra.mxu0 %vm579_vm2, %v1701_v37  ;;  %v2327_v2 = vpack.c.b16 %v6223_v12, %v2288_v46  ;;  %v1948_v45 = vsel %vm1916_vm7, %v1943_v3, %v1947_v63  ;;  %v6261_v12 = vshrl.u32 %v4896_v5, 16 }
 0x18b   : > { %3836 = vmatmul.msk.bf16.gmra.mxu2 %vm579_vm2, %v938_v7 }
 0x18c   : > { %3927 = vmatmul.msk.bf16.gmra.mxu3 %vm579_vm2, %v1450_v38  ;;  %v2348_v6 = vrot.slane %v2327_v2, 3  ;;  %v2349_v38 = vrot.slane %v5322_v50, 3 }
 0x18e   : > { %v1058_v13 = vpop.f32.mrf.mxu2  ;;  %v2350_v55 = vsel %vm2347_vm8, %v2348_v6, %v2349_v38 }
 0x18f   : > { %v1123_v62 = vadd.f32 %v1058_v13, %v849_v61  ;;  %v1574_v39 = vpop.f32.mrf.mxu3  ;;  %v1814_v54 = vpop.f32.mrf.mxu0 }
 0x190   : > { %v1642_v37 = vadd.f32 %v1574_v39, %v1121_v10  ;;  %v5316_v7 = vadd.f32 %v1814_v54, %v5243_v41  ;;  %v851_v41 = vadd.f32 %v5101_v14, %v4886_v33  ;;  %v1458_v10 = vor.u32 %v1457_v8, %v1454_v1 }
 0x191   : > { %v5318_v60 = vpop.f32.mrf.mxu1  ;;  %v1703_v39 = vsel %vm1668_vm6, %v1700_v56, %v1702_v51  ;;  %v6262_v33 = vshll.u32 %v4896_v5, 16  ;;  %v854_v56 = vadd.f32 %v5119_v47, %v4903_v25  ;;  %v2600_v8 = vshll.u32 %v2327_v2, 16  ;;  %v4308_v47 = vld [vmem:[%s4572_s8 + $0x20] sm:$0xff]  }
 0x192   : > { %6260 = vst [vmem:[#allocation26_spill] sm:$0xff] %v5316_v7  ;;  %v1949_v7 = vrot.slane %v6261_v12, 2  ;;  %v1459_v1 = vsel %vm1280_vm5, %v1449_v53, %v1458_v10  ;;  %v2605_v12 = vshrl.u32 %v5322_v50, 16  ;;  %v2608_v5 = vshll.u32 %v5322_v50, 16 }
 0x193   : > { %v1950_v14 = vrot.slane %v6262_v33, 3  ;;  %v1704_v33 = vrot.slane %v5258_v57, 2 }
 0x194   : > { %3955 = vmatmul.msk.bf16.gmra.mxu1 %vm579_vm2, %v1948_v45 }
 0x196   : > { %v1060_v46 = vpop.f32.mrf.mxu2 }
 0x197   : > { %v1124_v61 = vadd.f32 %v1060_v46, %v851_v41  ;;  %v1576_v13 = vpop.f32.mrf.mxu3  ;;  %v1817_v3 = vpop.f32.mrf.mxu0 }
 0x198   : > { %v1643_v36 = vadd.f32 %v1576_v13, %v1122_v35  ;;  %v5332_v54 = vadd.f32 %v1817_v3, %v5268_v18  ;;  %v1951_v18 = vor.u32 %v1950_v14, %v1949_v7  ;;  %v2597_v35 = vshrl.u32 %v2327_v2, 16 }
 0x199   : > { %v5334_v45 = vpop.f32.mrf.mxu1  ;;  %v2607_v2 = vrot.slane %v2605_v12, 3  ;;  %v2351_v14 = vrot.slane %v4308_v47, 3 }
 0x19a   : > { %3946 = vmatmul.msk.bf16.gmra.mxu0 %vm579_vm2, %v1703_v39  ;;  %v1952_v25 = vsel %vm1916_vm7, %v1947_v63, %v1951_v18  ;;  %v2599_v7 = vrot.slane %v2597_v35, 3  ;;  %v2602_v39 = vrot.slane %v2600_v8, 4  ;;  %v1705_v35 = vsel %vm1668_vm6, %v1702_v51, %v1704_v33 }
 0x19b   : > { %3970 = vmatmul.msk.bf16.vlgmr.msra.gmra.mxu2 %vm579_vm2, %v2350_v55  ;;  %v2610_v55 = vrot.slane %v2608_v5, 4  ;;  %v2352_v8 = vsel %vm2347_vm8, %v2349_v38, %v2351_v14 }
 0x19c   : > { %3928 = vmatmul.msk.bf16.gmra.mxu3 %vm579_vm2, %v1459_v1  ;;  %v2603_v1 = vor.u32 %v2602_v39, %v2599_v7  ;;  %v2617_v39 = vshll.u32 %v4308_v47, 16 }
 0x19e   : > { %v1063_v6 = vpop.f32.mrf.mxu2 }
 0x19f   : > { %v1125_v41 = vadd.f32 %v1063_v6, %v854_v56  ;;  %v1579_v53 = vpop.f32.mrf.mxu3  ;;  %v1819_v10 = vpop.f32.mrf.mxu0 }
 0x1a0   : > { %v1644_v46 = vadd.f32 %v1579_v53, %v1123_v62  ;;  %v5349_v13 = vadd.f32 %v1819_v10, %v5288_v4  ;;  %v856_v62 = vadd.f32 %v5134_v59, %v4917_v42  ;;  %v2611_v4 = vor.u32 %v2610_v55, %v2607_v2 }
 0x1a1   : > { %v5351_v3 = vpop.f32.mrf.mxu1  ;;  %v6264_v42 = vshll.u32 %v4927_v58, 16 }
 0x1a2   : > { %v2612_v7 = vsel %vm2595_vm9, %v2603_v1, %v2611_v4 }
 0x1a3   : > { %v1954_v59 = vrot.slane %v6264_v42, 3 }
 0x1a4   : > { %3956 = vmatmul.msk.bf16.gmra.mxu1 %vm579_vm2, %v1952_v25  ;;  %v6263_v25 = vshrl.u32 %v4927_v58, 16 }
 0x1a6   : > { %v1065_v56 = vpop.f32.mrf.mxu2  ;;  %v1953_v28 = vrot.slane %v6263_v25, 2  ;;  %v2619_v25 = vrot.slane %v2617_v39, 4 }
 0x1a7   : > { %v1126_v6 = vadd.f32 %v1065_v56, %v856_v62  ;;  %v1581_v53 = vpop.f32.mrf.mxu3  ;;  %v1822_v63 = vpop.f32.mrf.mxu0 }
 0x1a8   : > { %v1645_v12 = vadd.f32 %v1581_v53, %v1124_v61  ;;  %v5361_v5 = vadd.f32 %v1822_v63, %v1642_v37  ;;  %v1955_v51 = vor.u32 %v1954_v59, %v1953_v28  ;;  %v6265_v37 = vld [vmem:[#allocation11_spill] sm:$0xff]  ;;  %v2614_v61 = vshrl.u32 %v4308_v47, 16  ;;  %v6267_v47 = vld [vmem:[#allocation13_spill] sm:$0xff] }
 0x1a9   : > { %v5363_v10 = vpop.f32.mrf.mxu1  ;;  %v859_v38 = vadd.f32 %v5152_v21, %v6265_v37  ;;  %v1706_v21 = vrot.slane %v5303_v9, 2  ;;  %v861_v42 = vadd.f32 %v5167_v17, %v6267_v47 }
 0x1aa   : > { %3947 = vmatmul.msk.bf16.gmra.mxu0 %vm579_vm2, %v1705_v35  ;;  %v1956_v63 = vsel %vm1916_vm7, %v1951_v18, %v1955_v51  ;;  %v4309_v35 = vld [vmem:[%s4572_s8 + $0x28] sm:$0xff]  }
 0x1ab   : > { %3971 = vmatmul.msk.bf16.gmra.mxu2 %vm579_vm2, %v2352_v8  ;;  %v2616_v8 = vrot.slane %v2614_v61, 3  ;;  %v2353_v28 = vrot.slane %v4309_v35, 3 }
 0x1ac   : > { %3990 = vmatmul.msk.bf16.vlgmr.msra.gmra.mxu3 %vm579_vm2, %v2612_v7 }
 0x1ad   : > { %v2620_v59 = vor.u32 %v2619_v25, %v2616_v8  ;;  %v2354_v18 = vsel %vm2347_vm8, %v2351_v14, %v2353_v28  ;;  %v2626_v25 = vshll.u32 %v4309_v35, 16 }
 0x1ae   : > { %v1068_v2 = vpop.f32.mrf.mxu2 }
 0x1af   : > { %v1127_v55 = vadd.f32 %v1068_v2, %v859_v38  ;;  %v1584_v62 = vpop.f32.mrf.mxu3  ;;  %v1824_v58 = vpop.f32.mrf.mxu0  ;;  %v1707_v38 = vsel %vm1668_vm6, %v1704_v33, %v1706_v21  ;;  %v2621_v8 = vsel %vm2595_vm9, %v2611_v4, %v2620_v59 }
 0x1b0   : > { %v1646_v56 = vadd.f32 %v1584_v62, %v1125_v41  ;;  %v5375_v53 = vadd.f32 %v1824_v58, %v1643_v36  ;;  %v6268_v62 = vld [vmem:[#allocation15_spill] sm:$0xff] }
 0x1b1   : > { %v5377_v1 = vpop.f32.mrf.mxu1  ;;  %v6269_v9 = vshrl.u32 %v6268_v62, 16 }
 0x1b2   : > { %6266 = vst [vmem:[#allocation11_spill] sm:$0xff] %v5375_v53  ;;  %v6284_v53 = vld [vmem:[#allocation22_spill] sm:$0xff] }
 0x1b3   : > { %v1957_v58 = vrot.slane %v6269_v9, 2 }
 0x1b4   : > { %3957 = vmatmul.msk.bf16.gmra.mxu1 %vm579_vm2, %v1956_v63  ;;  %v6270_v63 = vshll.u32 %v6268_v62, 16  ;;  %v4310_v62 = vld [vmem:[%s4572_s8 + $0x30] sm:$0xff]  }
 0x1b6   : > { %v1070_v7 = vpop.f32.mrf.mxu2  ;;  %v1958_v17 = vrot.slane %v6270_v63, 3  ;;  %v6272_v63 = vld [vmem:[#allocation4_spill] sm:$0xff] }
 0x1b7   : > { %v1128_v41 = vadd.f32 %v1070_v7, %v861_v42  ;;  %v1586_v36 = vpop.f32.mrf.mxu3  ;;  %v1827_v37 = vpop.f32.mrf.mxu0 }
 0x1b8   : > { %v1647_v2 = vadd.f32 %v1586_v36, %v1126_v6  ;;  %v5387_v61 = vadd.f32 %v1827_v37, %v1644_v46  ;;  %v1959_v33 = vor.u32 %v1958_v17, %v1957_v58  ;;  %v6271_v46 = vld [vmem:[#allocation3_spill] sm:$0xff]  ;;  %v2623_v6 = vshrl.u32 %v4309_v35, 16 }
 0x1b9   : > { %v5389_v39 = vpop.f32.mrf.mxu1  ;;  %v864_v14 = vadd.f32 %v5185_v49, %v6271_v46  ;;  %v2628_v58 = vrot.slane %v2626_v25, 4  ;;  %v4234_v49 = vunpack.c.l.b16 %v5322_v50  ;;  %v2355_v35 = vrot.slane %v4310_v62, 3 }
 0x1ba   : > { %3948 = vmatmul.msk.bf16.gmra.mxu0 %vm579_vm2, %v1707_v38  ;;  %v1960_v38 = vsel %vm1916_vm7, %v1955_v51, %v1959_v33  ;;  %v2625_v9 = vrot.slane %v2623_v6, 3  ;;  %v866_v17 = vadd.f32 %v5202_v31, %v6272_v63  ;;  %v2635_v63 = vshll.u32 %v4310_v62, 16 }
 0x1bb   : > { %3972 = vmatmul.msk.bf16.gmra.mxu2 %vm579_vm2, %v2354_v18 }
 0x1bc   : > { %3991 = vmatmul.msk.bf16.gmra.mxu3 %vm579_vm2, %v2621_v8  ;;  %v6273_v8 = vunpack.c.l.b16 %v5300_v19 }
 0x1be   : > { %v1073_v21 = vpop.f32.mrf.mxu2  ;;  %v2979_v46 = vpack.c.b16 %v4234_v49, %v6273_v8  ;;  %v2632_v49 = vshrl.u32 %v4310_v62, 16  ;;  %v6280_v62 = vld [vmem:[#allocation6_spill] sm:$0xff] }
 0x1bf   : > { %v1129_v47 = vadd.f32 %v1073_v21, %v864_v14  ;;  %v1589_v42 = vpop.f32.mrf.mxu3  ;;  %v1829_v7 = vpop.f32.mrf.mxu0 }
 0x1c0   : > { %v1648_v36 = vadd.f32 %v1589_v42, %v1127_v55  ;;  %v5401_v37 = vadd.f32 %v1829_v7, %v1645_v12  ;;  %v2629_v55 = vor.u32 %v2628_v58, %v2625_v9  ;;  %v6274_v42 = vld [vmem:[#allocation18_spill] sm:$0xff]  ;;  %v6277_v9 = vld [vmem:[#allocation20_spill] sm:$0xff] }
 0x1c1   : > { %v2075_v4 = vpop.f32.mrf.mxu1  ;;  %v6275_v7 = vshrl.u32 %v6274_v42, 16 }
 0x1c2   : > { %v5406_v18 = vadd.f32 %v2075_v4, %v5034_v30  ;;  %v2356_v30 = vsel %vm2347_vm8, %v2353_v28, %v2355_v35  ;;  %v2630_v19 = vsel %vm2595_vm9, %v2620_v59, %v2629_v55  ;;  %v6278_v28 = vld [vmem:[#allocation5_spill] sm:$0xff] }
 0x1c3   : > { %v1961_v4 = vrot.slane %v6275_v7, 2 }
 0x1c4   : > { %3958 = vmatmul.msk.bf16.gmra.mxu1 %vm579_vm2, %v1960_v38  ;;  %v6276_v38 = vshll.u32 %v6274_v42, 16  ;;  %v6279_v42 = vld [vmem:[#allocation21_spill] sm:$0xff] }
 0x1c6   : > { %v1075_v12 = vpop.f32.mrf.mxu2  ;;  %v1962_v31 = vrot.slane %v6276_v38, 3  ;;  %v2637_v38 = vrot.slane %v2635_v63, 4 }
 0x1c7   : > { %v1130_v51 = vadd.f32 %v1075_v12, %v866_v17  ;;  %v1591_v14 = vpop.f32.mrf.mxu3  ;;  %v1832_v21 = vpop.f32.mrf.mxu0 }
 0x1c8   : > { %v1649_v6 = vadd.f32 %v1591_v14, %v1128_v41  ;;  %v5415_v25 = vadd.f32 %v1832_v21, %v1646_v56  ;;  %v1963_v56 = vor.u32 %v1962_v31, %v1961_v4  ;;  %v869_v41 = vadd.f32 %v5225_v15, %v6278_v28 }
 0x1c9   : > { %v2077_v50 = vpop.f32.mrf.mxu1  ;;  %v2634_v4 = vrot.slane %v2632_v49, 3  ;;  %v871_v31 = vadd.f32 %v5247_v44, %v6280_v62  ;;  %v6281_v49 = vld [vmem:[#allocation19_spill] sm:$0xff] }
 0x1ca   : > { %v5422_v58 = vadd.f32 %v2077_v50, %v6277_v9  ;;  %4010 = vmatmul.msk.bf16.vlgmr.msra.gmra.mxu0 %vm579_vm2, %v2979_v46  ;;  %v1964_v46 = vsel %vm1916_vm7, %v1959_v33, %v1963_v56  ;;  %v6282_v63 = vshrl.u32 %v6281_v49, 16 }
 0x1cb   : > { %3973 = vmatmul.msk.bf16.gmra.mxu2 %vm579_vm2, %v2356_v30  ;;  %v4311_v30 = vld [vmem:[%s4572_s8 + $0x38] sm:$0xff]   ;;  %v2638_v9 = vor.u32 %v2637_v38, %v2634_v4 }
 0x1cc   : > { %3992 = vmatmul.msk.bf16.gmra.mxu3 %vm579_vm2, %v2630_v19  ;;  %v2357_v15 = vrot.slane %v4311_v30, 3  ;;  %v2641_v38 = vshrl.u32 %v4311_v30, 16  ;;  %v2644_v62 = vshll.u32 %v4311_v30, 16  ;;  %v6287_v30 = vld [vmem:[#allocation8_spill] sm:$0xff] }
 0x1cd   : > { %v2639_v4 = vsel %vm2595_vm9, %v2629_v55, %v2638_v9 }
 0x1ce   : > { %v1078_v17 = vpop.f32.mrf.mxu2  ;;  %v2358_v33 = vsel %vm2347_vm8, %v2355_v35, %v2357_v15  ;;  %v6285_v35 = vld [vmem:[#allocation7_spill] sm:$0xff] }
 0x1cf   : > { %v1131_v12 = vadd.f32 %v1078_v17, %v869_v41  ;;  %v1594_v8 = vpop.f32.mrf.mxu3  ;;  %v1834_v14 = vpop.f32.mrf.mxu0 }
 0x1d0   : > { %v1650_v21 = vadd.f32 %v1594_v8, %v1129_v47  ;;  %v5430_v59 = vadd.f32 %v1834_v14, %v1647_v2  ;;  %v4412_v47 = vld [vmem:[%s4572_s8 + $0x1c] sm:$0xff]  }
 0x1d1   : > { %v2080_v50 = vpop.f32.mrf.mxu1 }
 0x1d2   : > { %v5435_v7 = vadd.f32 %v2080_v50, %v6279_v42  ;;  %v1965_v50 = vrot.slane %v6282_v63, 2  ;;  %v2643_v63 = vrot.slane %v2641_v38, 3  ;;  %v6289_v38 = vshrl.u32 %v5041_v16, 16 }
 0x1d4   : > { %3959 = vmatmul.msk.bf16.gmra.mxu1 %vm579_vm2, %v1964_v46  ;;  %v6283_v46 = vshll.u32 %v6281_v49, 16 }
 0x1d6   : > { %v1080_v19 = vpop.f32.mrf.mxu2  ;;  %v1966_v42 = vrot.slane %v6283_v46, 3  ;;  %v876_v46 = vadd.f32 %v5292_v48, %v6287_v30 }
 0x1d7   : > { %v1132_v2 = vadd.f32 %v1080_v19, %v871_v31  ;;  %v1596_v28 = vpop.f32.mrf.mxu3  ;;  %v1837_v41 = vpop.f32.mrf.mxu0 }
 0x1d8   : > { %v1651_v17 = vadd.f32 %v1596_v28, %v1130_v51  ;;  %v5442_v8 = vadd.f32 %v1837_v41, %v1648_v36  ;;  %v1967_v36 = vor.u32 %v1966_v42, %v1965_v50  ;;  %v874_v51 = vadd.f32 %v5273_v43, %v6285_v35 }
 0x1d9   : > { %v2082_v14 = vpop.f32.mrf.mxu1  ;;  %v2646_v50 = vrot.slane %v2644_v62, 4  ;;  %v1969_v62 = vrot.slane %v6289_v38, 2 }
 0x1da   : > { %v5449_v44 = vadd.f32 %v2082_v14, %v6284_v53  ;;  %4011 = vmatmul.msk.bf16.gmra.mxu0 %vm579_vm2, %v4412_v47  ;;  %v1968_v47 = vsel %vm1916_vm7, %v1963_v56, %v1967_v36 }
 0x1db   : > { %3974 = vmatmul.msk.bf16.gmra.mxu2 %vm579_vm2, %v2358_v33  ;;  %v4312_v33 = vld [vmem:[%s4572_s8 + $0x40] sm:$0xff]   ;;  %v2647_v42 = vor.u32 %v2646_v50, %v2643_v63 }
 0x1dc   : > { %3993 = vmatmul.msk.bf16.gmra.mxu3 %vm579_vm2, %v2639_v4  ;;  %v2359_v43 = vrot.slane %v4312_v33, 3  ;;  %v2650_v63 = vshrl.u32 %v4312_v33, 16  ;;  %v2653_v50 = vshll.u32 %v4312_v33, 16  ;;  %v6293_v33 = vld [vmem:[#allocation10_spill] sm:$0xff] }
 0x1de   : > { %v1083_v31 = vpop.f32.mrf.mxu2  ;;  %v2360_v56 = vsel %vm2347_vm8, %v2357_v15, %v2359_v43  ;;  %v6291_v15 = vld [vmem:[#allocation9_spill] sm:$0xff]  ;;  %v2655_v38 = vrot.slane %v2653_v50, 4 }
 0x1df   : > { %v1133_v19 = vadd.f32 %v1083_v31, %v874_v51  ;;  %v1599_v53 = vpop.f32.mrf.mxu3  ;;  %v1839_v28 = vpop.f32.mrf.mxu0 }
 0x1e0   : > { %v1652_v41 = vadd.f32 %v1599_v53, %v1131_v12  ;;  %v5457_v55 = vadd.f32 %v1839_v28, %v1649_v6  ;;  %v4414_v12 = vld [vmem:[%s4572_s8 + $0x24] sm:$0xff]   ;;  %v6290_v28 = vshll.u32 %v5041_v16, 16 }
 0x1e1   : > { %v2085_v14 = vpop.f32.mrf.mxu1 }
 0x1e2   : > { %6286 = vst [vmem:[#allocation13_spill] sm:$0xff] %v5457_v55  ;;  %v5462_v49 = vadd.f32 %v2085_v14, %v5099_v32  ;;  %v1970_v14 = vrot.slane %v6290_v28, 3 }
 0x1e4   : > { %3960 = vmatmul.msk.bf16.gmra.mxu1 %vm579_vm2, %v1968_v47  ;;  %v2648_v47 = vsel %vm2595_vm9, %v2638_v9, %v2647_v42 }
 0x1e6   : > { %v1085_v4 = vpop.f32.mrf.mxu2 }
 0x1e7   : > { %v1134_v6 = vadd.f32 %v1085_v4, %v876_v46  ;;  %v1601_v35 = vpop.f32.mrf.mxu3  ;;  %v1842_v51 = vpop.f32.mrf.mxu0 }
 0x1e8   : > { %v1653_v31 = vadd.f32 %v1601_v35, %v1132_v2  ;;  %v5469_v53 = vadd.f32 %v1842_v51, %v1650_v21  ;;  %v1971_v21 = vor.u32 %v1970_v14, %v1969_v62  ;;  %v879_v2 = vadd.f32 %v5318_v60, %v6291_v15  ;;  %v4313_v51 = vld [vmem:[%s4572_s8 + $0x48] sm:$0xff]  }
 0x1e9   : > { %v2087_v32 = vpop.f32.mrf.mxu1  ;;  %v2361_v60 = vrot.slane %v4313_v51, 3  ;;  %v881_v62 = vadd.f32 %v5334_v45, %v6293_v33 }
 0x1ea   : > { %6288 = vst [vmem:[#allocation15_spill] sm:$0xff] %v5469_v53  ;;  %v5476_v48 = vadd.f32 %v2087_v32, %v5117_v20  ;;  %4012 = vmatmul.msk.bf16.gmra.mxu0 %vm579_vm2, %v4414_v12  ;;  %v1972_v12 = vsel %vm1916_vm7, %v1967_v36, %v1971_v21  ;;  %v2652_v32 = vrot.slane %v2650_v63, 3  ;;  %v6295_v63 = vshrl.u32 %v5074_v23, 16 }
 0x1eb   : > { %3975 = vmatmul.msk.bf16.gmra.mxu2 %vm579_vm2, %v2360_v56  ;;  %v2362_v36 = vsel %vm2347_vm8, %v2359_v43, %v2361_v60  ;;  %v6297_v43 = vld [vmem:[#allocation12_spill] sm:$0xff] }
 0x1ec   : > { %3994 = vmatmul.msk.bf16.gmra.mxu3 %vm579_vm2, %v2648_v47  ;;  %v2656_v28 = vor.u32 %v2655_v38, %v2652_v32  ;;  %v1973_v50 = vrot.slane %v6295_v63, 2  ;;  %v2662_v32 = vshll.u32 %v4313_v51, 16 }
 0x1ee   : > { %v1088_v16 = vpop.f32.mrf.mxu2 }
 0x1ef   : > { %v1135_v30 = vadd.f32 %v1088_v16, %v879_v2  ;;  %v1604_v20 = vpop.f32.mrf.mxu3  ;;  %v1844_v46 = vpop.f32.mrf.mxu0 }
 0x1f0   : > { %v1654_v4 = vadd.f32 %v1604_v20, %v1133_v19  ;;  %v5484_v9 = vadd.f32 %v1844_v46, %v1651_v17  ;;  %v4416_v19 = vld [vmem:[%s4572_s8 + $0x2c] sm:$0xff]   ;;  %v6296_v20 = vshll.u32 %v5074_v23, 16 }
 0x1f1   : > { %v2090_v35 = vpop.f32.mrf.mxu1 }
 0x1f2   : > { %6292 = vst [vmem:[#allocation3_spill] sm:$0xff] %v5484_v9  ;;  %v5489_v56 = vadd.f32 %v2090_v35, %v5132_v27  ;;  %v1974_v46 = vrot.slane %v6296_v20, 3  ;;  %v2657_v35 = vsel %vm2595_vm9, %v2647_v42, %v2656_v28 }
 0x1f4   : > { %3961 = vmatmul.msk.bf16.gmra.mxu1 %vm579_vm2, %v1972_v12  ;;  %v2659_v12 = vshrl.u32 %v4313_v51, 16  ;;  %v6299_v51 = vld [vmem:[#allocation14_spill] sm:$0xff] }
 0x1f5   : > { %v886_v63 = vadd.f32 %v5363_v10, %v6299_v51 }
 0x1f6   : > { %v1090_v14 = vpop.f32.mrf.mxu2 }
 0x1f7   : > { %v1136_v17 = vadd.f32 %v1090_v14, %v881_v62  ;;  %v1606_v47 = vpop.f32.mrf.mxu3  ;;  %v1847_v15 = vpop.f32.mrf.mxu0 }
 0x1f8   : > { %v1655_v2 = vadd.f32 %v1606_v47, %v1134_v6  ;;  %v5496_v16 = vadd.f32 %v1847_v15, %v1652_v41  ;;  %v1975_v41 = vor.u32 %v1974_v46, %v1973_v50  ;;  %v884_v6 = vadd.f32 %v5351_v3, %v6297_v43  ;;  %v4314_v47 = vld [vmem:[%s4572_s8 + $0x50] sm:$0xff]  }
 0x1f9   : > { %v2092_v27 = vpop.f32.mrf.mxu1  ;;  %v2363_v3 = vrot.slane %v4314_v47, 3 }
 0x1fa   : > { %6294 = vst [vmem:[#allocation4_spill] sm:$0xff] %v5496_v16  ;;  %v5503_v45 = vadd.f32 %v2092_v27, %v5150_v24  ;;  %4013 = vmatmul.msk.bf16.gmra.mxu0 %vm579_vm2, %v4416_v19  ;;  %v1976_v19 = vsel %vm1916_vm7, %v1971_v21, %v1975_v41  ;;  %v2664_v27 = vrot.slane %v2662_v32, 4  ;;  %v2246_v16 = vld [vmem:[%s4572_s8 + $0xa8] sm:$0x7] }
 0x1fb   : > { %3976 = vmatmul.msk.bf16.gmra.mxu2 %vm579_vm2, %v2362_v36  ;;  %v2661_v36 = vrot.slane %v2659_v12, 3  ;;  %v2364_v21 = vsel %vm2347_vm8, %v2361_v60, %v2363_v3  ;;  %v6301_v12 = vshrl.u32 %v5109_v22, 16  ;;  %v6304_v60 = vld [vmem:[#allocation16_spill] sm:$0xff] }
 0x1fc   : > { %3995 = vmatmul.msk.bf16.gmra.mxu3 %vm579_vm2, %v2657_v35 }
 0x1fd   : > { %v2665_v50 = vor.u32 %v2664_v27, %v2661_v36  ;;  %v1977_v32 = vrot.slane %v6301_v12, 2  ;;  %v2671_v36 = vshll.u32 %v4314_v47, 16 }
 0x1fe   : > { %v1093_v23 = vpop.f32.mrf.mxu2 }
 0x1ff   : > { %v1137_v38 = vadd.f32 %v1093_v23, %v884_v6  ;;  %v1609_v24 = vpop.f32.mrf.mxu3  ;;  %v1849_v33 = vpop.f32.mrf.mxu0  ;;  %v6302_v23 = vshll.u32 %v5109_v22, 16  ;;  %v2673_v12 = vrot.slane %v2671_v36, 4 }
 0x200   : > { %v1656_v62 = vadd.f32 %v1609_v24, %v1135_v30  ;;  %v5511_v42 = vadd.f32 %v1849_v33, %v1653_v31  ;;  %v4418_v30 = vld [vmem:[%s4572_s8 + $0x34] sm:$0xff]   ;;  %v6303_v33 = vld [vmem:[#allocation23_spill] sm:$0xff] }
 0x201   : > { %v2095_v14 = vpop.f32.mrf.mxu1  ;;  %v1978_v24 = vrot.slane %v6302_v23, 3 }
 0x202   : > { %6298 = vst [vmem:[#allocation18_spill] sm:$0xff] %v5511_v42  ;;  %v5516_v15 = vadd.f32 %v2095_v14, %v5165_v34  ;;  %v2666_v14 = vsel %vm2595_vm9, %v2656_v28, %v2665_v50 }
 0x204   : > { %3962 = vmatmul.msk.bf16.gmra.mxu1 %vm579_vm2, %v1976_v19  ;;  %v2668_v19 = vshrl.u32 %v4314_v47, 16  ;;  %v6306_v47 = vld [vmem:[#allocation17_spill] sm:$0xff] }
 0x206   : > { %v1095_v20 = vpop.f32.mrf.mxu2 }
 0x207   : > { %v1138_v31 = vadd.f32 %v1095_v20, %v886_v63  ;;  %v1611_v46 = vpop.f32.mrf.mxu3  ;;  %v1852_v35 = vpop.f32.mrf.mxu0 }
 0x208   : > { %v1657_v43 = vadd.f32 %v1611_v46, %v1136_v17  ;;  %v5523_v6 = vadd.f32 %v1852_v35, %v1654_v4  ;;  %v1979_v4 = vor.u32 %v1978_v24, %v1977_v32  ;;  %v889_v17 = vadd.f32 %v5377_v1, %v6304_v60  ;;  %v4315_v35 = vld [vmem:[%s4572_s8 + $0x58] sm:$0xff]  }
 0x209   : > { %v2097_v34 = vpop.f32.mrf.mxu1  ;;  %v2365_v1 = vrot.slane %v4315_v35, 3  ;;  %v891_v32 = vadd.f32 %v5389_v39, %v6306_v47 }
 0x20a   : > { %6300 = vst [vmem:[#allocation20_spill] sm:$0xff] %v5523_v6  ;;  %v5530_v10 = vadd.f32 %v2097_v34, %v6303_v33  ;;  %4014 = vmatmul.msk.bf16.gmra.mxu0 %vm579_vm2, %v4418_v30  ;;  %v1980_v30 = vsel %vm1916_vm7, %v1975_v41, %v1979_v4  ;;  %v2670_v34 = vrot.slane %v2668_v19, 3  ;;  %v6308_v19 = vshrl.u32 %v5142_v29, 16 }
 0x20b   : > { %3977 = vmatmul.msk.bf16.gmra.mxu2 %vm579_vm2, %v2364_v21  ;;  %v2366_v41 = vsel %vm2347_vm8, %v2363_v3, %v2365_v1  ;;  %v2677_v3 = vshrl.u32 %v4315_v35, 16 }
 0x20c   : > { %3996 = vmatmul.msk.bf16.gmra.mxu3 %vm579_vm2, %v2666_v14  ;;  %v2674_v23 = vor.u32 %v2673_v12, %v2670_v34  ;;  %v1981_v36 = vrot.slane %v6308_v19, 2 }
 0x20e   : > { %v1098_v22 = vpop.f32.mrf.mxu2 }
 0x20f   : > { %v1139_v27 = vadd.f32 %v1098_v22, %v889_v17  ;;  %v1614_v51 = vpop.f32.mrf.mxu3  ;;  %v1854_v63 = vpop.f32.mrf.mxu0  ;;  %v6309_v22 = vshll.u32 %v5142_v29, 16 }
 0x210   : > { %v1658_v20 = vadd.f32 %v1614_v51, %v1137_v38  ;;  %v5538_v28 = vadd.f32 %v1854_v63, %v1655_v2  ;;  %v4420_v38 = vld [vmem:[%s4572_s8 + $0x3c] sm:$0xff]   ;;  %v6310_v63 = vld [vmem:[#allocation24_spill] sm:$0xff] }
 0x211   : > { %v2100_v46 = vpop.f32.mrf.mxu1  ;;  %v1982_v51 = vrot.slane %v6309_v22, 3 }
 0x212   : > { %6305 = vst [vmem:[#allocation5_spill] sm:$0xff] %v5538_v28  ;;  %v5543_v21 = vadd.f32 %v2100_v46, %v5200_v52  ;;  %v2675_v46 = vsel %vm2595_vm9, %v2665_v50, %v2674_v23  ;;  %v2589_v28 = vld [vmem:[%s4572_s8 + $0xa8] sm:$0xf] }
 0x214   : > { %3963 = vmatmul.msk.bf16.gmra.mxu1 %vm579_vm2, %v1980_v30 }
 0x216   : > { %v1100_v24 = vpop.f32.mrf.mxu2 }
 0x217   : > { %v1140_v2 = vadd.f32 %v1100_v24, %v891_v32  ;;  %v1616_v33 = vpop.f32.mrf.mxu3  ;;  %v1857_v14 = vpop.f32.mrf.mxu0 }
 0x218   : > { %v1659_v60 = vadd.f32 %v1616_v33, %v1138_v31  ;;  %v5550_v17 = vadd.f32 %v1857_v14, %v1656_v62  ;;  %v1983_v62 = vor.u32 %v1982_v51, %v1981_v36  ;;  %v2680_v31 = vshll.u32 %v4315_v35, 16  ;;  %v4422_v36 = vld [vmem:[%s4572_s8 + $0x44] sm:$0xff]  }
 0x219   : > { %v2102_v52 = vpop.f32.mrf.mxu1  ;;  %v2679_v14 = vrot.slane %v2677_v3, 3  ;;  %v6314_v3 = vshll.u32 %v5175_v0, 16 }
 0x21a   : > { %6307 = vst [vmem:[#allocation21_spill] sm:$0xff] %v5550_v17  ;;  %v5557_v39 = vadd.f32 %v2102_v52, %v6310_v63  ;;  %4015 = vmatmul.msk.bf16.gmra.mxu0 %vm579_vm2, %v4420_v38  ;;  %v1984_v50 = vsel %vm1916_vm7, %v1979_v4, %v1983_v62  ;;  %v4316_v38 = vld [vmem:[%s4572_s8 + $0x60] sm:$0xff]  }
 0x21b   : > { %3978 = vmatmul.msk.bf16.gmra.mxu2 %vm579_vm2, %v2366_v41  ;;  %v2682_v41 = vrot.slane %v2680_v31, 4  ;;  %v2367_v35 = vrot.slane %v4316_v38, 3  ;;  %v1986_v31 = vrot.slane %v6314_v3, 3 }
 0x21c   : > { %3997 = vmatmul.msk.bf16.gmra.mxu3 %vm579_vm2, %v2675_v46 }
 0x21d   : > { %v2683_v52 = vor.u32 %v2682_v41, %v2679_v14  ;;  %v4317_v41 = vld [vmem:[%s4572_s8 + $0x68] sm:$0xff]  }
 0x21e   : > { %v2456_v30 = vpop.f32.mrf.mxu2 }
 0x21f   : > { %v1619_v34 = vpop.f32.mrf.mxu3  ;;  %v1859_v29 = vpop.f32.mrf.mxu0  ;;  %v2551_v12 = vadd.f32 %v2456_v30, %v5406_v18 }
 0x220   : > { %v1660_v47 = vadd.f32 %v1619_v34, %v1139_v27  ;;  %v5564_v32 = vadd.f32 %v1859_v29, %v1657_v43  ;;  %v2368_v27 = vsel %vm2347_vm8, %v2365_v1, %v2367_v35  ;;  %v2684_v34 = vsel %vm2595_vm9, %v2674_v23, %v2683_v52 }
 0x221   : > { %v2105_v24 = vpop.f32.mrf.mxu1  ;;  %v2689_v1 = vshll.u32 %v4316_v38, 16 }
 0x222   : > { %6311 = vst [vmem:[#allocation6_spill] sm:$0xff] %v5564_v32  ;;  %v5569_v33 = vadd.f32 %v2105_v24, %v5245_v11  ;;  %v6313_v11 = vshrl.u32 %v5175_v0, 16 }
 0x224   : > { %3964 = vmatmul.msk.bf16.gmra.mxu1 %vm579_vm2, %v1984_v50  ;;  %v1985_v46 = vrot.slane %v6313_v11, 2 }
 0x226   : > { %v2458_v19 = vpop.f32.mrf.mxu2 }
 0x227   : > { %v1621_v22 = vpop.f32.mrf.mxu3  ;;  %v1862_v18 = vpop.f32.mrf.mxu0  ;;  %v2552_v43 = vadd.f32 %v2458_v19, %v5422_v58  ;;  %v1987_v58 = vor.u32 %v1986_v31, %v1985_v46 }
 0x228   : > { %v1661_v51 = vadd.f32 %v1621_v22, %v1140_v2  ;;  %v5575_v4 = vadd.f32 %v1862_v18, %v1658_v20  ;;  %v2686_v20 = vshrl.u32 %v4316_v38, 16  ;;  %v2369_v22 = vrot.slane %v4317_v41, 3 }
 0x229   : > { %v2107_v63 = vpop.f32.mrf.mxu1  ;;  %v1988_v23 = vsel %vm1916_vm7, %v1983_v62, %v1987_v58  ;;  %v6317_v62 = vshrl.u32 %v5210_v40, 16 }
 0x22a   : > { %6312 = vst [vmem:[#allocation19_spill] sm:$0xff] %v5575_v4  ;;  %v5582_v30 = vadd.f32 %v2107_v63, %v5271_v26  ;;  %4016 = vmatmul.msk.bf16.gmra.mxu0 %vm579_vm2, %v4422_v36  ;;  %v2688_v19 = vrot.slane %v2686_v20, 3  ;;  %v2691_v36 = vrot.slane %v2689_v1, 4  ;;  %v5745_v4 = vld [vmem:[%s4572_s8 + $0xa0] sm:$0xff]  }
 0x22b   : > { %3979 = vmatmul.msk.bf16.gmra.mxu2 %vm579_vm2, %v2368_v27  ;;  %v4424_v27 = vld [vmem:[%s4572_s8 + $0x4c] sm:$0xff]   ;;  %v1989_v31 = vrot.slane %v6317_v62, 2  ;;  %6324 = vst [vmem:[#allocation12_spill] sm:$0xff] %v5745_v4 }
 0x22c   : > { %3998 = vmatmul.msk.bf16.gmra.mxu3 %vm579_vm2, %v2684_v34  ;;  %v2692_v38 = vor.u32 %v2691_v36, %v2688_v19  ;;  %v6318_v34 = vshll.u32 %v5210_v40, 16  ;;  %v4318_v36 = vld [vmem:[%s4572_s8 + $0x70] sm:$0xff]  }
 0x22e   : > { %v2461_v2 = vpop.f32.mrf.mxu2  ;;  %v1990_v20 = vrot.slane %v6318_v34, 3  ;;  %v2693_v1 = vsel %vm2595_vm9, %v2683_v52, %v2692_v38 }
 0x22f   : > { %v1864_v29 = vpop.f32.mrf.mxu0  ;;  %v2553_v0 = vadd.f32 %v2461_v2, %v5435_v7  ;;  %v2844_v24 = vpop.f32.mrf.mxu3 }
 0x230   : > { %v5589_v26 = vadd.f32 %v1864_v29, %v1659_v60  ;;  %v2939_v50 = vadd.f32 %v2844_v24, %v2551_v12  ;;  %v2370_v60 = vsel %vm2347_vm8, %v2367_v35, %v2369_v22  ;;  %v2698_v35 = vshll.u32 %v4317_v41, 16 }
 0x231   : > { %v5591_v14 = vpop.f32.mrf.mxu1 }
 0x232   : > { %6315 = vst [vmem:[#allocation22_spill] sm:$0xff] %v5589_v26 }
 0x234   : > { %3965 = vmatmul.msk.bf16.gmra.mxu1 %vm579_vm2, %v1988_v23 }
 0x236   : > { %v2463_v18 = vpop.f32.mrf.mxu2 }
 0x237   : > { %v1867_v63 = vpop.f32.mrf.mxu0  ;;  %v2554_v7 = vadd.f32 %v2463_v18, %v5449_v44  ;;  %v2846_v11 = vpop.f32.mrf.mxu3  ;;  %v1991_v44 = vor.u32 %v1990_v20, %v1989_v31  ;;  %v6321_v20 = vshrl.u32 %v5258_v57, 16 }
 0x238   : > { %v5599_v12 = vadd.f32 %v1867_v63, %v1660_v47  ;;  %v2940_v46 = vadd.f32 %v2846_v11, %v2552_v43  ;;  %v2695_v47 = vshrl.u32 %v4317_v41, 16  ;;  %v2700_v63 = vrot.slane %v2698_v35, 4 }
 0x239   : > { %v5601_v3 = vpop.f32.mrf.mxu1  ;;  %v1992_v52 = vsel %vm1916_vm7, %v1987_v58, %v1991_v44  ;;  %v2371_v41 = vrot.slane %v4318_v36, 3 }
 0x23a   : > { %6316 = vst [vmem:[#allocation7_spill] sm:$0xff] %v5599_v12  ;;  %4017 = vmatmul.msk.bf16.gmra.mxu0 %vm579_vm2, %v4424_v27  ;;  %v2697_v27 = vrot.slane %v2695_v47, 3  ;;  %v6322_v47 = vshll.u32 %v5258_v57, 16  ;;  %v4438_v12 = vld [vmem:[%s4572_s8 + $0x84] sm:$0xff]  }
 0x23b   : > { %3980 = vmatmul.msk.bf16.gmra.mxu2 %vm579_vm2, %v2370_v60  ;;  %v2372_v31 = vsel %vm2347_vm8, %v2369_v22, %v2371_v41  ;;  %v2704_v22 = vshrl.u32 %v4318_v36, 16 }
 0x23c   : > { %3999 = vmatmul.msk.bf16.gmra.mxu3 %vm579_vm2, %v2693_v1  ;;  %v2701_v11 = vor.u32 %v2700_v63, %v2697_v27  ;;  %v1993_v1 = vrot.slane %v6321_v20, 2  ;;  %v1994_v35 = vrot.slane %v6322_v47, 3 }
 0x23e   : > { %v2466_v43 = vpop.f32.mrf.mxu2 }
 0x23f   : > { %v1869_v2 = vpop.f32.mrf.mxu0  ;;  %v2555_v29 = vadd.f32 %v2466_v43, %v5462_v49  ;;  %v2849_v24 = vpop.f32.mrf.mxu3  ;;  %v4426_v49 = vld [vmem:[%s4572_s8 + $0x54] sm:$0xff]   ;;  %v2702_v43 = vsel %vm2595_vm9, %v2692_v38, %v2701_v11 }
 0x240   : > { %v5612_v40 = vadd.f32 %v1869_v2, %v1661_v51  ;;  %v2941_v23 = vadd.f32 %v2849_v24, %v2553_v0  ;;  %v1910_v2 = vld [vmem:[%s4572_s8 + $0xa0] sm:$0x7] }
 0x241   : > { %v2115_v19 = vpop.f32.mrf.mxu1 }
 0x242   : > { %6319 = vst [vmem:[#allocation8_spill] sm:$0xff] %v5612_v40  ;;  %v5617_v18 = vadd.f32 %v2115_v19, %v5332_v54 }
 0x244   : > { %3966 = vmatmul.msk.bf16.gmra.mxu1 %vm579_vm2, %v1992_v52 }
 0x246   : > { %v2468_v60 = vpop.f32.mrf.mxu2 }
 0x247   : > { %v2556_v51 = vadd.f32 %v2468_v60, %v5476_v48  ;;  %v2851_v62 = vpop.f32.mrf.mxu3  ;;  %v3067_v0 = vpop.f32.mrf.mxu0  ;;  %v1995_v48 = vor.u32 %v1994_v35, %v1993_v1 }
 0x248   : > { %v2942_v58 = vadd.f32 %v2851_v62, %v2554_v7  ;;  %v5623_v34 = vadd.f32 %v3067_v0, %v2939_v50  ;;  %v1914_v50 = vunpack.c.l.b16 %v1910_v2  ;;  %v2707_v7 = vshll.u32 %v4318_v36, 16 }
 0x249   : > { %v5625_v54 = vpop.f32.mrf.mxu1  ;;  %v1996_v60 = vsel %vm1916_vm7, %v1991_v44, %v1995_v48 }
 0x24a   : > { %6320 = vst [vmem:[#allocation9_spill] sm:$0xff] %v5623_v34  ;;  %4018 = vmatmul.msk.bf16.gmra.mxu0 %vm579_vm2, %v4426_v49  ;;  %v4319_v49 = vld [vmem:[%s4572_s8 + $0x78] sm:$0xff]   ;;  %v1915_v62 = vpack.c.b16 %v1914_v50, %v1914_v50  ;;  %v2709_v20 = vrot.slane %v2707_v7, 4 }
 0x24b   : > { %3981 = vmatmul.msk.bf16.gmra.mxu2 %vm579_vm2, %v2372_v31  ;;  %v2706_v31 = vrot.slane %v2704_v22, 3  ;;  %v2373_v36 = vrot.slane %v4319_v49, 3  ;;  %v6326_v34 = vld [vmem:[#allocation25_spill] sm:$0xff] }
 0x24c   : > { %4000 = vmatmul.msk.bf16.gmra.mxu3 %vm579_vm2, %v2702_v43  ;;  %v2001_v1 = vshll.u32 %v1915_v62, 16 }
 0x24d   : > { %v2710_v47 = vor.u32 %v2709_v20, %v2706_v31  ;;  %v2374_v44 = vsel %vm2347_vm8, %v2371_v41, %v2373_v36 }
 0x24e   : > { %v2471_v24 = vpop.f32.mrf.mxu2  ;;  %v2003_v7 = vrot.slane %v2001_v1, 3  ;;  %v4320_v1 = vld [vmem:[%s4572_s8 + $0x80] sm:$0xff]  }
 0x24f   : > { %v2557_v19 = vadd.f32 %v2471_v24, %v5489_v56  ;;  %v2854_v52 = vpop.f32.mrf.mxu3  ;;  %v3069_v57 = vpop.f32.mrf.mxu0  ;;  %v1998_v56 = vshrl.u32 %v1915_v62, 16 }
 0x250   : > { %v2943_v27 = vadd.f32 %v2854_v52, %v2555_v29  ;;  %v5637_v38 = vadd.f32 %v3069_v57, %v2940_v46  ;;  %v4428_v29 = vld [vmem:[%s4572_s8 + $0x5c] sm:$0xff]   ;;  %v2711_v52 = vsel %vm2595_vm9, %v2701_v11, %v2710_v47  ;;  %v2713_v57 = vshrl.u32 %v4319_v49, 16 }
 0x251   : > { %v2120_v63 = vpop.f32.mrf.mxu1  ;;  %v2000_v22 = vrot.slane %v1998_v56, 2 }
 0x252   : > { %v5642_v0 = vadd.f32 %v2120_v63, %v5361_v5  ;;  %v2716_v63 = vshll.u32 %v4319_v49, 16  ;;  %v2375_v49 = vrot.slane %v4320_v1, 3 }
 0x254   : > { %3967 = vmatmul.msk.bf16.gmra.mxu1 %vm579_vm2, %v1996_v60 }
 0x256   : > { %v2473_v35 = vpop.f32.mrf.mxu2 }
 0x257   : > { %v2558_v46 = vadd.f32 %v2473_v35, %v5503_v45  ;;  %v2856_v43 = vpop.f32.mrf.mxu3  ;;  %v3072_v2 = vpop.f32.mrf.mxu0  ;;  %v2004_v45 = vor.u32 %v2003_v7, %v2000_v22  ;;  %v2715_v35 = vrot.slane %v2713_v57, 3 }
 0x258   : > { %v2944_v50 = vadd.f32 %v2856_v43, %v2556_v51  ;;  %v5648_v24 = vadd.f32 %v3072_v2, %v2941_v23 }
 0x259   : > { %v5650_v5 = vpop.f32.mrf.mxu1  ;;  %v2005_v20 = vsel %vm1916_vm7, %v1995_v48, %v2004_v45  ;;  %v2722_v45 = vshrl.u32 %v4320_v1, 16 }
 0x25a   : > { %4019 = vmatmul.msk.bf16.gmra.mxu0 %vm579_vm2, %v4428_v29  ;;  %v2718_v29 = vrot.slane %v2716_v63, 4 }
 0x25b   : > { %3982 = vmatmul.msk.bf16.gmra.mxu2 %vm579_vm2, %v2374_v44 }
 0x25c   : > { %4001 = vmatmul.msk.bf16.gmra.mxu3 %vm579_vm2, %v2711_v52  ;;  %v2719_v43 = vor.u32 %v2718_v29, %v2715_v35 }
 0x25e   : > { %v2476_v41 = vpop.f32.mrf.mxu2  ;;  %v2720_v52 = vsel %vm2595_vm9, %v2710_v47, %v2719_v43  ;;  %v4321_v47 = vld [vmem:[%s4572_s8 + $0x88] sm:$0xff]  }
 0x25f   : > { %v2559_v23 = vadd.f32 %v2476_v41, %v5516_v15  ;;  %v2859_v51 = vpop.f32.mrf.mxu3  ;;  %v3074_v60 = vpop.f32.mrf.mxu0  ;;  %v4430_v15 = vld [vmem:[%s4572_s8 + $0x64] sm:$0xff]  }
 0x260   : > { %v2945_v62 = vadd.f32 %v2859_v51, %v2557_v19  ;;  %v5657_v31 = vadd.f32 %v3074_v60, %v2942_v58  ;;  %v2724_v60 = vrot.slane %v2722_v45, 3 }
 0x261   : > { %v2125_v11 = vpop.f32.mrf.mxu1 }
 0x262   : > { %v5661_v56 = vadd.f32 %v2125_v11, %v5387_v61  ;;  %v2376_v61 = vsel %vm2347_vm8, %v2373_v36, %v2375_v49 }
 0x264   : > { %3968 = vmatmul.msk.bf16.gmra.mxu1 %vm579_vm2, %v2005_v20  ;;  %v2377_v20 = vrot.slane %v4321_v47, 3 }
 0x266   : > { %v5665_v2 = vpop.f32.mrf.mxu2 }
 0x267   : > { %v2861_v44 = vpop.f32.mrf.mxu3  ;;  %v3077_v19 = vpop.f32.mrf.mxu0 }
 0x268   : > { %v2946_v58 = vadd.f32 %v2861_v44, %v2558_v46  ;;  %v5668_v22 = vadd.f32 %v3077_v19, %v2943_v27  ;;  %v2725_v46 = vshll.u32 %v4320_v1, 16 }
 0x269   : > { %v2127_v7 = vpop.f32.mrf.mxu1 }
 0x26a   : > { %v5672_v48 = vadd.f32 %v2127_v7, %v5401_v37  ;;  %4020 = vmatmul.msk.bf16.gmra.mxu0 %vm579_vm2, %v4430_v15  ;;  %v2727_v11 = vrot.slane %v2725_v46, 4  ;;  %v4432_v15 = vld [vmem:[%s4572_s8 + $0x6c] sm:$0xff]  }
 0x26b   : > { %3983 = vmatmul.msk.bf16.gmra.mxu2 %vm579_vm2, %v2376_v61  ;;  %v2731_v61 = vshrl.u32 %v4321_v47, 16 }
 0x26c   : > { %4002 = vmatmul.msk.bf16.gmra.mxu3 %vm579_vm2, %v2720_v52  ;;  %v2728_v35 = vor.u32 %v2727_v11, %v2724_v60  ;;  %v2734_v52 = vshll.u32 %v4321_v47, 16  ;;  %v4434_v47 = vld [vmem:[%s4572_s8 + $0x74] sm:$0xff]  }
 0x26e   : > { %v5678_v27 = vpop.f32.mrf.mxu2  ;;  %v2729_v7 = vsel %vm2595_vm9, %v2719_v43, %v2728_v35  ;;  %v4322_v43 = vld [vmem:[%s4572_s8 + $0x90] sm:$0xff]  }
 0x26f   : > { %v2864_v57 = vpop.f32.mrf.mxu3  ;;  %v3079_v63 = vpop.f32.mrf.mxu0  ;;  %v2379_v60 = vrot.slane %v4322_v43, 3 }
 0x270   : > { %v2947_v41 = vadd.f32 %v2864_v57, %v2559_v23  ;;  %v5680_v36 = vadd.f32 %v3079_v63, %v2944_v50  ;;  %v2378_v23 = vsel %vm2347_vm8, %v2375_v49, %v2377_v20  ;;  %v2733_v63 = vrot.slane %v2731_v61, 3 }
 0x271   : > { %v2130_v37 = vpop.f32.mrf.mxu1  ;;  %v2743_v61 = vshll.u32 %v4322_v43, 16 }
 0x272   : > { %v5683_v51 = vadd.f32 %v2130_v37, %v5415_v25  ;;  %v2736_v37 = vrot.slane %v2734_v52, 4 }
 0x274   : > { %v2737_v11 = vor.u32 %v2736_v37, %v2733_v63 }
 0x276   : > { %v5686_v29 = vpop.f32.mrf.mxu2 }
 0x277   : > { %v5689_v1 = vpop.f32.mrf.mxu3  ;;  %v3082_v44 = vpop.f32.mrf.mxu0 }
 0x278   : > { %v5691_v19 = vadd.f32 %v3082_v44, %v2945_v62 }
 0x279   : > { %v2132_v50 = vpop.f32.mrf.mxu1 }
 0x27a   : > { %v5695_v25 = vadd.f32 %v2132_v50, %v5430_v59  ;;  %4021 = vmatmul.msk.bf16.gmra.mxu0 %vm579_vm2, %v4432_v15 }
 0x27b   : > { %3984 = vmatmul.msk.bf16.gmra.mxu2 %vm579_vm2, %v2378_v23 }
 0x27c   : > { %4003 = vmatmul.msk.bf16.gmra.mxu3 %vm579_vm2, %v2729_v7  ;;  %v2740_v7 = vshrl.u32 %v4322_v43, 16 }
 0x27e   : > { %v5701_v62 = vpop.f32.mrf.mxu2  ;;  %v2742_v63 = vrot.slane %v2740_v7, 3 }
 0x27f   : > { %v5703_v45 = vpop.f32.mrf.mxu3  ;;  %v3084_v46 = vpop.f32.mrf.mxu0 }
 0x280   : > { %v5705_v49 = vadd.f32 %v3084_v46, %v2946_v58  ;;  %v2380_v58 = vsel %vm2347_vm8, %v2377_v20, %v2379_v60  ;;  %v2745_v20 = vrot.slane %v2743_v61, 4 }
 0x281   : > { %v2135_v59 = vpop.f32.mrf.mxu1 }
 0x282   : > { %v5708_v57 = vadd.f32 %v2135_v59, %v5442_v8  ;;  %v2738_v8 = vsel %vm2595_vm9, %v2728_v35, %v2737_v11  ;;  %v2746_v35 = vor.u32 %v2745_v20, %v2742_v63 }
 0x284   : > { %6323 = vst [vmem:[#allocation10_spill] sm:$0xff] %v5708_v57  ;;  %v2747_v17 = vsel %vm2595_vm9, %v2737_v11, %v2746_v35  ;;  %v2383_v11 = vrot.slane %v5745_v4, 3 }
 0x286   : > { %v5711_v15 = vpop.f32.mrf.mxu2 }
 0x287   : > { %v5714_v44 = vpop.f32.mrf.mxu3  ;;  %v3087_v50 = vpop.f32.mrf.mxu0 }
 0x288   : > { %v5716_v23 = vadd.f32 %v3087_v50, %v2947_v41  ;;  %v4323_v41 = vld [vmem:[%s4572_s8 + $0x98] sm:$0xff]  }
 0x289   : > { %v2381_v37 = vrot.slane %v4323_v41, 3  ;;  %v2749_v7 = vshrl.u32 %v4323_v41, 16  ;;  %v2752_v61 = vshll.u32 %v4323_v41, 16 }
 0x28a   : > { %4022 = vmatmul.msk.bf16.gmra.mxu0 %vm579_vm2, %v4434_v47  ;;  %v4436_v47 = vld [vmem:[%s4572_s8 + $0x7c] sm:$0xff]  }
 0x28b   : > { %3985 = vmatmul.msk.bf16.gmra.mxu2 %vm579_vm2, %v2380_v58  ;;  %v2382_v43 = vsel %vm2347_vm8, %v2379_v60, %v2381_v37  ;;  %v2751_v40 = vrot.slane %v2749_v7, 3  ;;  %v2754_v60 = vrot.slane %v2752_v61, 4  ;;  %v2384_v53 = vsel %vm2347_vm8, %v2381_v37, %v2383_v11 }
 0x28c   : > { %4004 = vmatmul.msk.bf16.gmra.mxu3 %vm579_vm2, %v2738_v8  ;;  %v2326_v7 = vunpack.c.l.b16 %v2246_v16  ;;  %v6325_v16 = vld [vmem:[#allocation11_spill] sm:$0xff] }
 0x28d   : > { %v2755_v26 = vor.u32 %v2754_v60, %v2751_v40  ;;  %v2761_v40 = vshll.u32 %v5745_v4, 16  ;;  %v2189_v42 = vadd.f32 %v5650_v5, %v6325_v16 }
 0x28e   : > { %v5723_v52 = vpop.f32.mrf.mxu2 }
 0x28f   : > { %v5725_v46 = vpop.f32.mrf.mxu3  ;;  %v5727_v59 = vpop.f32.mrf.mxu0  ;;  %v2756_v9 = vsel %vm2595_vm9, %v2746_v35, %v2755_v26 }
 0x296   : > { %v5730_v50 = vpop.f32.mrf.mxu2 }
 0x297   : > { %v5733_v58 = vpop.f32.mrf.mxu3  ;;  %v5735_v8 = vpop.f32.mrf.mxu0 }
 0x29a   : > { %4023 = vmatmul.msk.bf16.gmra.mxu0 %vm579_vm2, %v4436_v47  ;;  %v2187_v47 = vadd.f32 %v5625_v54, %v5349_v13  ;;  %v2758_v13 = vshrl.u32 %v5745_v4, 16  ;;  %v5768_v4 = vunpack.c.l.b16 %v2589_v28  ;;  %v6327_v28 = vld [vmem:[#allocation26_spill] sm:$0xff] }
 0x29b   : > { %3986 = vmatmul.msk.bf16.gmra.mxu2 %vm579_vm2, %v2382_v43 }
 0x29c   : > { %4005 = vmatmul.msk.bf16.gmra.mxu3 %vm579_vm2, %v2747_v17  ;;  %v2594_v5 = vpack.c.b16 %v5768_v4, %v5768_v4 }
 0x29e   : > { %v2496_v63 = vpop.f32.mrf.mxu2 }
 0x29f   : > { %v2879_v20 = vpop.f32.mrf.mxu3  ;;  %v5742_v32 = vpop.f32.mrf.mxu0  ;;  %v2567_v54 = vadd.f32 %v2496_v63, %v5617_v18  ;;  %v4440_v63 = vld [vmem:[%s4572_s8 + $0x8c] sm:$0xff]  }
 0x2a6   : > { %v2498_v43 = vpop.f32.mrf.mxu2 }
 0x2a7   : > { %v2568_v17 = vadd.f32 %v2498_v43, %v2187_v47  ;;  %v2881_v55 = vpop.f32.mrf.mxu3  ;;  %v3097_v41 = vpop.f32.mrf.mxu0  ;;  %v2760_v43 = vrot.slane %v2758_v13, 3 }
 0x2aa   : > { %4024 = vmatmul.msk.bf16.gmra.mxu0 %vm579_vm2, %v4438_v12  ;;  %v2346_v12 = vpack.c.b16 %v2326_v7, %v2326_v7 }
 0x2ab   : > { %3987 = vmatmul.msk.bf16.gmra.mxu2 %vm579_vm2, %v2384_v53  ;;  %v2763_v53 = vrot.slane %v2761_v40, 4 }
 0x2ac   : > { %4006 = vmatmul.msk.bf16.gmra.mxu3 %vm579_vm2, %v2756_v9  ;;  %v2385_v9 = vrot.slane %v2346_v12, 3  ;;  %v2563_v12 = vadd.f32 %v5701_v62, %v5569_v33 }
 0x2ad   : > { %v5766_v6 = vor.u32 %v2763_v53, %v2760_v43 }
 0x2ae   : > { %v2501_v61 = vpop.f32.mrf.mxu2  ;;  %v2386_v13 = vsel %vm2347_vm8, %v2383_v11, %v2385_v9  ;;  %v2562_v9 = vadd.f32 %v5686_v29, %v5557_v39  ;;  %v2951_v16 = vadd.f32 %v5725_v46, %v2563_v12  ;;  %v2560_v46 = vadd.f32 %v5665_v2, %v5530_v10 }
 0x2af   : > { %v2569_v37 = vadd.f32 %v2501_v61, %v5642_v0  ;;  %v2884_v35 = vpop.f32.mrf.mxu3  ;;  %v3099_v60 = vpop.f32.mrf.mxu0  ;;  %v2765_v40 = vsel %vm2595_vm9, %v2755_v26, %v5766_v6  ;;  %v2767_v26 = vshrl.u32 %v2594_v5, 16 }
 0x2b0   : > { %v5761_v47 = vadd.f32 %v2884_v35, %v2567_v54  ;;  %v2184_v54 = vadd.f32 %v5591_v14, %v6326_v34  ;;  %v2185_v35 = vadd.f32 %v5601_v3, %v6327_v28  ;;  %v2564_v14 = vadd.f32 %v5711_v15, %v5582_v30 }
 0x2b1   : > { %v3174_v29 = vadd.f32 %v3097_v41, %v2951_v16 }
 0x2b2   : > { %v2566_v34 = vadd.f32 %v5730_v50, %v2185_v35  ;;  %v2952_v3 = vadd.f32 %v5733_v58, %v2564_v14  ;;  %v2561_v58 = vadd.f32 %v5678_v27, %v5543_v21  ;;  %v2948_v27 = vadd.f32 %v5689_v1, %v2560_v46 }
 0x2b4   : > { %v3175_v33 = vadd.f32 %v3099_v60, %v2952_v3  ;;  %v3171_v10 = vadd.f32 %v5727_v59, %v2948_v27 }
 0x2b6   : > { %v2503_v18 = vpop.f32.mrf.mxu2 }
 0x2b7   : > { %v2570_v57 = vadd.f32 %v2503_v18, %v2189_v42  ;;  %v2886_v0 = vpop.f32.mrf.mxu3  ;;  %v3102_v61 = vpop.f32.mrf.mxu0  ;;  %v2565_v42 = vadd.f32 %v5723_v52, %v2184_v54  ;;  %v2954_v52 = vadd.f32 %v2881_v55, %v2566_v34  ;;  %v2769_v18 = vrot.slane %v2767_v26, 3 }
 0x2b8   : > { %v5773_v7 = vadd.f32 %v2886_v0, %v2568_v17  ;;  %v2770_v17 = vshll.u32 %v2594_v5, 16  ;;  %v4442_v5 = vld [vmem:[%s4572_s8 + $0x94] sm:$0xff]  }
 0x2b9   : > { %v2953_v11 = vadd.f32 %v2879_v20, %v2565_v42  ;;  %v5798_v20 = vld [vmem:[%s6176_s2] ss:$0 sm:$0xff] }
 0x2ba   : > { %4025 = vmatmul.msk.bf16.gmra.mxu0 %vm579_vm2, %v4440_v63  ;;  %v2772_v39 = vrot.slane %v2770_v17, 4  ;;  %v3216_v41 = vadd.f32 %v5798_v20, %v3174_v29  ;;  %v3212_v59 = vadd.f32 %v5798_v20, %v5716_v23  ;;  %v3211_v12 = vadd.f32 %v5798_v20, %v5705_v49 }
 0x2bb   : > { %3988 = vmatmul.msk.bf16.gmra.mxu2 %vm579_vm2, %v2386_v13  ;;  %v3176_v43 = vadd.f32 %v3102_v61, %v2953_v11  ;;  %v3217_v61 = vadd.f32 %v5798_v20, %v3175_v33  ;;  %v3210_v23 = vadd.f32 %v5798_v20, %v5691_v19  ;;  %v3207_v19 = vadd.f32 %v5798_v20, %v5657_v31 }
 0x2bc   : > { %4007 = vmatmul.msk.bf16.gmra.mxu3 %vm579_vm2, %v2765_v40  ;;  %v2773_v54 = vor.u32 %v2772_v39, %v2769_v18  ;;  %v3254_v34 = vmax.f32 %v3216_v41, 0.0 }
 0x2bd   : > { %v3218_v63 = vadd.f32 %v5798_v20, %v3176_v43  ;;  %v3248_v49 = vmax.f32 %v3210_v23, 0.0  ;;  %v3245_v39 = vmax.f32 %v3207_v19, 0.0 }
 0x2be   : > { %v2506_v53 = vpop.f32.mrf.mxu2  ;;  %v2774_v42 = vsel %vm2595_vm9, %v5766_v6, %v2773_v54 }
 0x2bf   : > { %v2571_v30 = vadd.f32 %v2506_v53, %v5661_v56  ;;  %v2889_v15 = vpop.f32.mrf.mxu3  ;;  %v3104_v50 = vpop.f32.mrf.mxu0  ;;  %v2950_v56 = vadd.f32 %v5714_v44, %v2562_v9  ;;  %v3256_v13 = vmax.f32 %v3218_v63, 0.0  ;;  %v3250_v53 = vmax.f32 %v3212_v59, 0.0  ;;  %v6329_v63 = vld [vmem:[#allocation10_spill] sm:$0xff] }
 0x2c0   : > { %v5801_v62 = vadd.f32 %v2889_v15, %v2569_v37  ;;  %v3177_v55 = vadd.f32 %v3104_v50, %v2954_v52  ;;  %v2949_v37 = vadd.f32 %v5703_v45, %v2561_v58  ;;  %v3249_v9 = vmax.f32 %v3211_v12, 0.0 }
 0x2c1   : > { %v3173_v60 = vadd.f32 %v5742_v32, %v2950_v56  ;;  %v3208_v15 = vadd.f32 %v5798_v20, %v5668_v22  ;;  %v3206_v22 = vadd.f32 %v5798_v20, %v5648_v24  ;;  %v6328_v56 = vld [vmem:[#allocation9_spill] sm:$0xff] }
 0x2c2   : > { %v3219_v0 = vadd.f32 %v5798_v20, %v3177_v55  ;;  %v3172_v44 = vadd.f32 %v5735_v8, %v2949_v37  ;;  %v3255_v8 = vmax.f32 %v3217_v61, 0.0  ;;  %v3204_v31 = vadd.f32 %v5798_v20, %v6328_v56 }
 0x2c3   : > { %v3215_v28 = vadd.f32 %v5798_v20, %v3173_v60  ;;  %v3246_v18 = vmax.f32 %v3208_v15, 0.0  ;;  %v3244_v29 = vmax.f32 %v3206_v22, 0.0 }
 0x2c4   : > { %v3257_v21 = vmax.f32 %v3219_v0, 0.0  ;;  %v3214_v14 = vadd.f32 %v5798_v20, %v3172_v44 }
 0x2c6   : > { %3291 = vmatpush.msra.mxu1 %v3257_v21  ;;  %v2508_v40 = vpop.f32.mrf.mxu2  ;;  %v3242_v21 = vmax.f32 %v3204_v31, 0.0  ;;  %v6332_v31 = vld [vmem:[#allocation18_spill] sm:$0xff] }
 0x2c7   : > { %v2572_v2 = vadd.f32 %v2508_v40, %v5672_v48  ;;  %v2891_v45 = vpop.f32.mrf.mxu3  ;;  %v3107_v32 = vpop.f32.mrf.mxu0  ;;  %v3213_v48 = vadd.f32 %v5798_v20, %v3171_v10 }
 0x2c8   : > { %v2958_v35 = vadd.f32 %v2891_v45, %v2570_v57  ;;  %v5821_v1 = vadd.f32 %v3107_v32, %v5761_v47  ;;  %3292 = vmatpush.msra.mxu1 %v3256_v13  ;;  %v3253_v57 = vmax.f32 %v3215_v28, 0.0  ;;  %v3252_v47 = vmax.f32 %v3214_v14, 0.0 }
 0x2c9   : > { %v3251_v43 = vmax.f32 %v3213_v48, 0.0 }
 0x2ca   : > { %4026 = vmatmul.msk.bf16.gmra.mxu0 %vm579_vm2, %v4442_v5  ;;  %3293 = vmatpush.msra.mxu1 %v3255_v8  ;;  %v2137_v5 = vpop.f32.mrf.mxu1 }
 0x2cc   : > { %4008 = vmatmul.msk.bf16.gmra.mxu3 %vm579_vm2, %v2774_v42  ;;  %3294 = vmatpush.msra.mxu1 %v3254_v34 }
 0x2ce   : > { %3295 = vmatpush.msra.mxu1 %v3253_v57  ;;  %v2511_v11 = vpop.f32.mrf.mxu2 }
 0x2cf   : > { %v2573_v6 = vadd.f32 %v2511_v11, %v5683_v51  ;;  %v2894_v26 = vpop.f32.mrf.mxu3  ;;  %v3109_v17 = vpop.f32.mrf.mxu0  ;;  %v3209_v51 = vadd.f32 %v5798_v20, %v5680_v36 }
 0x2d0   : > { %v2959_v3 = vadd.f32 %v2894_v26, %v2571_v30  ;;  %v5835_v52 = vadd.f32 %v3109_v17, %v5773_v7  ;;  %3296 = vmatpush.msra.mxu1 %v3252_v47  ;;  %v4443_v7 = vld [vmem:[%s4572_s8 + $0x9c] sm:$0xff]  }
 0x2d1   : > { %v3247_v36 = vmax.f32 %v3209_v51, 0.0 }
 0x2d2   : > { %3297 = vmatpush.msra.mxu1 %v3251_v43 }
 0x2d4   : > { %3298 = vmatpush.msra.mxu1 %v3250_v53 }
 0x2d6   : > { %3299 = vmatpush.msra.mxu1 %v3249_v9  ;;  %v2513_v30 = vpop.f32.mrf.mxu2 }
 0x2d7   : > { %v2574_v50 = vadd.f32 %v2513_v30, %v5695_v25  ;;  %v2896_v16 = vpop.f32.mrf.mxu3  ;;  %v3112_v33 = vpop.f32.mrf.mxu0  ;;  %v3205_v25 = vadd.f32 %v5798_v20, %v5637_v38  ;;  %v6330_v38 = vld [vmem:[#allocation12_spill] sm:$0xff] }
 0x2d8   : > { %v2960_v55 = vadd.f32 %v2896_v16, %v2572_v2  ;;  %v5848_v58 = vadd.f32 %v3112_v33, %v5801_v62  ;;  %3300 = vmatpush.msra.mxu1 %v3248_v49  ;;  %v4303_v27 = vunpack.c.h.b16 %v6330_v38  ;;  %v6335_v38 = vld [vmem:[#allocation3_spill] sm:$0xff] }
 0x2d9   : > { %v3243_v61 = vmax.f32 %v3205_v25, 0.0  ;;  %v6331_v25 = vld [vmem:[#allocation20_spill] sm:$0xff] }
 0x2da   : > { %4027 = vmatmul.msk.bf16.gmra.mxu0 %vm579_vm2, %v4443_v7  ;;  %3301 = vmatpush.msra.mxu1 %v3247_v36  ;;  %v2997_v54 = vpack.c.b16 %v5768_v4, %v4303_v27  ;;  %v2140_v4 = vpop.f32.mrf.mxu1 }
 0x2dc   : > { %3302 = vmatpush.msra.mxu1 %v3246_v18 }
 0x2de   : > { %3303 = vmatpush.msra.mxu1 %v3245_v39  ;;  %v2516_v62 = vpop.f32.mrf.mxu2 }
 0x2df   : > { %v2575_v0 = vadd.f32 %v2516_v62, %v6329_v63  ;;  %v2899_v46 = vpop.f32.mrf.mxu3  ;;  %v3114_v37 = vpop.f32.mrf.mxu0  ;;  %v6333_v62 = vld [vmem:[#allocation5_spill] sm:$0xff] }
 0x2e0   : > { %v2961_v24 = vadd.f32 %v2899_v46, %v2573_v6  ;;  %v5858_v60 = vadd.f32 %v3114_v37, %v2958_v35  ;;  %3304 = vmatpush.msra.mxu1 %v3244_v29  ;;  %v6334_v46 = vld [vmem:[#allocation4_spill] sm:$0xff] }
 0x2e2   : > { %3305 = vmatpush.msra.mxu1 %v3243_v61  ;;  %v2142_v59 = vpop.f32.mrf.mxu1 }
 0x2e3   : > { %v2197_v27 = vadd.f32 %v2142_v59, %v6335_v38 }
 0x2e4   : > { %3306 = vmatpush.msra.mxu1 %v3242_v21 }
 0x2e6   : > { %v2518_v28 = vpop.f32.mrf.mxu2 }
 0x2e7   : > { %v2901_v44 = vpop.f32.mrf.mxu3  ;;  %v3117_v41 = vpop.f32.mrf.mxu0 }
 0x2e8   : > { %v2962_v13 = vadd.f32 %v2901_v44, %v2574_v50  ;;  %v5862_v40 = vadd.f32 %v3117_v41, %v2959_v3 }
 0x2ea   : > { %4028 = vmatmul.msk.bf16.gmra.mxu0 %vm579_vm2, %v2997_v54  ;;  %v2145_v17 = vpop.f32.mrf.mxu1 }
 0x2eb   : > { %v2198_v37 = vadd.f32 %v2145_v17, %v6334_v46 }
 0x2ee   : > { %v2521_v14 = vpop.f32.mrf.mxu2 }
 0x2ef   : > { %v2904_v10 = vpop.f32.mrf.mxu3  ;;  %v3119_v2 = vpop.f32.mrf.mxu0 }
 0x2f0   : > { %v2963_v45 = vadd.f32 %v2904_v10, %v2575_v0  ;;  %v5865_v32 = vadd.f32 %v3119_v2, %v2960_v55  ;;  %v6336_v10 = vld [vmem:[#allocation15_spill] sm:$0xff] }
 0x2f1   : > { %v2196_v2 = vadd.f32 %v2140_v4, %v6336_v10 }
 0x2f2   : > { %v2147_v23 = vpop.f32.mrf.mxu1  ;;  %v3225_v38 = vadd.f32 %v5798_v20, %v5865_v32 }
 0x2f3   : > { %v2199_v29 = vadd.f32 %v2147_v23, %v6332_v31 }
 0x2f4   : > { %v3263_v32 = vmax.f32 %v3225_v38, 0.0 }
 0x2f6   : > { %v2523_v47 = vpop.f32.mrf.mxu2 }
 0x2f7   : > { %v5867_v35 = vpop.f32.mrf.mxu3  ;;  %v3122_v8 = vpop.f32.mrf.mxu0 }
 0x2f8   : > { %v5869_v42 = vadd.f32 %v3122_v8, %v2961_v24 }
 0x2fa   : > { %v2150_v49 = vpop.f32.mrf.mxu1 }
 0x2fb   : > { %v2200_v39 = vadd.f32 %v2150_v49, %v6331_v25 }
 0x2fe   : > { %v2526_v12 = vpop.f32.mrf.mxu2 }
 0x2ff   : > { %v2909_v34 = vpop.f32.mrf.mxu3  ;;  %v3124_v48 = vpop.f32.mrf.mxu0  ;;  %v2579_v54 = vadd.f32 %v2526_v12, %v2198_v37 }
 0x300   : > { %v5871_v57 = vadd.f32 %v3124_v48, %v2962_v13  ;;  %v2578_v48 = vadd.f32 %v2523_v47, %v2197_v27 }
 0x302   : > { %v2152_v16 = vpop.f32.mrf.mxu1  ;;  %v3227_v46 = vadd.f32 %v5798_v20, %v5871_v57 }
 0x303   : > { %v2201_v63 = vadd.f32 %v2152_v16, %v6333_v62 }
 0x304   : > { %v3265_v27 = vmax.f32 %v3227_v46, 0.0  ;;  %v6341_v46 = vld [vmem:[#allocation19_spill] sm:$0xff] }
 0x306   : > { %v2528_v51 = vpop.f32.mrf.mxu2 }
 0x307   : > { %v2911_v11 = vpop.f32.mrf.mxu3  ;;  %v3127_v6 = vpop.f32.mrf.mxu0  ;;  %v2580_v24 = vadd.f32 %v2528_v51, %v2199_v29  ;;  %v2577_v51 = vadd.f32 %v2521_v14, %v2196_v2 }
 0x308   : > { %v5873_v26 = vadd.f32 %v3127_v6, %v2963_v45 }
 0x30a   : > { %v5875_v36 = vpop.f32.mrf.mxu1 }
 0x30e   : > { %v2531_v30 = vpop.f32.mrf.mxu2 }
 0x30f   : > { %v3129_v3 = vpop.f32.mrf.mxu0  ;;  %v2914_v43 = vpop.f32.mrf.mxu3  ;;  %v2581_v0 = vadd.f32 %v2531_v30, %v2200_v39  ;;  %v6337_v30 = vld [vmem:[#allocation13_spill] sm:$0xff] }
 0x310   : > { %v2967_v6 = vadd.f32 %v2914_v43, %v2579_v54  ;;  %v2195_v17 = vadd.f32 %v2137_v5, %v6337_v30  ;;  %v3224_v54 = vadd.f32 %v5798_v20, %v5862_v40  ;;  %v3222_v40 = vadd.f32 %v5798_v20, %v5848_v58  ;;  %v4152_v58 = vld [vmem:[%s6178_s4 + $0xe8] sm:$0xf] }
 0x312   : > { %v5887_v45 = vpop.f32.mrf.mxu1  ;;  %v3262_v2 = vmax.f32 %v3224_v54, 0.0  ;;  %v6342_v54 = vld [vmem:[#allocation6_spill] sm:$0xff] }
 0x316   : > { %v2533_v33 = vpop.f32.mrf.mxu2 }
 0x317   : > { %v3132_v53 = vpop.f32.mrf.mxu0  ;;  %v2916_v9 = vpop.f32.mrf.mxu3  ;;  %v2582_v61 = vadd.f32 %v2533_v33, %v2201_v63  ;;  %v2576_v33 = vadd.f32 %v2518_v28, %v2195_v17 }
 0x318   : > { %v2968_v44 = vadd.f32 %v2916_v9, %v2580_v24  ;;  %v3226_v24 = vadd.f32 %v5798_v20, %v5869_v42  ;;  %v5927_v42 = vld [vmem:[%s6177_s3] sm:$0x7] }
 0x319   : > { %v3283_v10 = vperm.slane %v5927_v42, 0 }
 0x31a   : > { %v5902_v31 = vpop.f32.mrf.mxu1 }
 0x31b   : > { %3307 = vmatmul.f32.vlgmr.msra.gmra.mxu1 %v3283_v10 }
 0x31e   : > { %v5877_v22 = vpop.f32.mrf.mxu2 }
 0x31f   : > { %v3134_v15 = vpop.f32.mrf.mxu0  ;;  %v2919_v7 = vpop.f32.mrf.mxu3 }
 0x320   : > { %v2969_v21 = vadd.f32 %v2919_v7, %v2581_v0  ;;  %v2966_v7 = vadd.f32 %v2911_v11, %v2578_v48 }
 0x326   : > { %v5890_v16 = vpop.f32.mrf.mxu2 }
 0x327   : > { %v3137_v50 = vpop.f32.mrf.mxu0  ;;  %v2921_v19 = vpop.f32.mrf.mxu3 }
 0x328   : > { %v2970_v41 = vadd.f32 %v2921_v19, %v2582_v61  ;;  %v3190_v59 = vadd.f32 %v3137_v50, %v2967_v6  ;;  %v2965_v19 = vadd.f32 %v2909_v34, %v2577_v51  ;;  %v4136_v51 = vld [vmem:[%s6178_s4 + $0xc8] sm:$0xf] }
 0x32a   : > { %v3188_v5 = vadd.f32 %v3132_v53, %v2965_v19  ;;  %v3232_v14 = vadd.f32 %v5798_v20, %v3190_v59  ;;  %v4223_v59 = vld [vmem:[%s6178_s4 + $0xd4] sm:$0xf0]  ;;  %v4120_v19 = vld [vmem:[%s6178_s4 + $0xa8] sm:$0xf] }
 0x32c   : > { %v3230_v34 = vadd.f32 %v5798_v20, %v3188_v5  ;;  %v6338_v5 = vld [vmem:[#allocation7_spill] sm:$0xff] }
 0x32e   : > { %v5905_v29 = vpop.f32.mrf.mxu2  ;;  %v3268_v63 = vmax.f32 %v3230_v34, 0.0 }
 0x32f   : > { %v3139_v55 = vpop.f32.mrf.mxu0  ;;  %v5880_v56 = vpop.f32.mrf.mxu3 }
 0x330   : > { %v3191_v23 = vadd.f32 %v3139_v55, %v2968_v44  ;;  %v2964_v55 = vadd.f32 %v5867_v35, %v2576_v33  ;;  %v3264_v44 = vmax.f32 %v3226_v24, 0.0  ;;  %v4137_v33 = vor.u32 %v4223_v59, %v4136_v51 }
 0x332   : > { %v3233_v47 = vadd.f32 %v5798_v20, %v3191_v23  ;;  %v3187_v50 = vadd.f32 %v3129_v3, %v2964_v55  ;;  %v3228_v3 = vadd.f32 %v5798_v20, %v5873_v26  ;;  %v3220_v23 = vadd.f32 %v5798_v20, %v5821_v1 }
 0x334   : > { %v3271_v28 = vmax.f32 %v3233_v47, 0.0  ;;  %v3229_v35 = vadd.f32 %v5798_v20, %v3187_v50  ;;  %v3266_v61 = vmax.f32 %v3228_v3, 0.0  ;;  %v4215_v50 = vld [vmem:[%s6178_s4 + $0x94] sm:$0xf0] }
 0x336   : > { %v3267_v37 = vmax.f32 %v3229_v35, 0.0  ;;  %v2543_v26 = vpop.f32.mrf.mxu2 }
 0x337   : > { %v3142_v18 = vpop.f32.mrf.mxu0  ;;  %v5894_v4 = vpop.f32.mrf.mxu3 }
 0x338   : > { %v3192_v13 = vadd.f32 %v3142_v18, %v2969_v21  ;;  %v3189_v18 = vadd.f32 %v3134_v15, %v2966_v7  ;;  %v3270_v15 = vmax.f32 %v3232_v14, 0.0  ;;  %v2162_v21 = vpop.f32.mrf.mxu1 }
 0x33a   : > { %v3234_v12 = vadd.f32 %v5798_v20, %v3192_v13  ;;  %v3231_v39 = vadd.f32 %v5798_v20, %v3189_v18  ;;  %v3223_v13 = vadd.f32 %v5798_v20, %v5858_v60  ;;  %v3260_v60 = vmax.f32 %v3222_v40, 0.0  ;;  %v4219_v18 = vld [vmem:[%s6178_s4 + $0xb4] sm:$0xf0] }
 0x33b   : > { %v4121_v55 = vor.u32 %v4219_v18, %v4120_v19  ;;  %v3285_v18 = vperm.slane %v5927_v42, 2 }
 0x33c   : > { %v3272_v25 = vmax.f32 %v3234_v12, 0.0  ;;  %v3269_v53 = vmax.f32 %v3231_v39, 0.0  ;;  %v3261_v48 = vmax.f32 %v3223_v13, 0.0  ;;  %v3284_v12 = vperm.slane %v5927_v42, 1  ;;  %v4112_v42 = vld [vmem:[%s6178_s4 + $0xa0] sm:$0xf] }
 0x33e   : > { %v2546_v30 = vpop.f32.mrf.mxu2 }
 0x33f   : > { %v3144_v8 = vpop.f32.mrf.mxu0  ;;  %v5908_v62 = vpop.f32.mrf.mxu3 }
 0x340   : > { %v3193_v49 = vadd.f32 %v3144_v8, %v2970_v41  ;;  %v3221_v8 = vadd.f32 %v5798_v20, %v5835_v52  ;;  %v2165_v6 = vpop.f32.mrf.mxu1  ;;  %v4227_v52 = vld [vmem:[%s6178_s4 + $0xf4] sm:$0xf0] }
 0x341   : > { %v4153_v1 = vor.u32 %v4227_v52, %v4152_v58  ;;  %v2206_v14 = vadd.f32 %v2165_v6, %v6338_v5 }
 0x342   : > { %v3235_v9 = vadd.f32 %v5798_v20, %v3193_v49  ;;  %v3259_v49 = vmax.f32 %v3221_v8, 0.0 }
 0x343   : > { %3586 = vmatpush.bf16.msrb.mxu3 %v4153_v1 }
 0x344   : > { %v3273_v43 = vmax.f32 %v3235_v9, 0.0  ;;  %v3258_v9 = vmax.f32 %v3220_v23, 0.0 }
 0x346   : > { %3311 = vmatpush.msrb.mxu2 %v3273_v43  ;;  %v2548_v39 = vpop.f32.mrf.mxu2 }
 0x347   : > { %v5899_v11 = vpop.f32.mrf.mxu0  ;;  %v2931_v57 = vpop.f32.mrf.mxu3  ;;  %3587 = vmatpush.bf16.msrb.mxu3 %v4137_v33  ;;  %v4144_v33 = vld [vmem:[%s6178_s4 + $0xe0] sm:$0xf] }
 0x348   : > { %3312 = vmatpush.msrb.mxu2 %v3272_v25  ;;  %v2167_v47 = vpop.f32.mrf.mxu1  ;;  %v4104_v25 = vld [vmem:[%s6178_s4 + $0x88] sm:$0xf] }
 0x34a   : > { %3313 = vmatpush.msrb.mxu2 %v3271_v28  ;;  %v6339_v28 = vld [vmem:[#allocation22_spill] sm:$0xff] }
 0x34b   : > { %v2205_v34 = vadd.f32 %v2162_v21, %v6339_v28  ;;  %3588 = vmatpush.bf16.msrb.mxu3 %v4121_v55  ;;  %v4211_v21 = vld [vmem:[%s6178_s4 + $0x74] sm:$0xf0]  ;;  %v4222_v55 = vld [vmem:[%s6178_s4 + $0xcc] sm:$0xf0] }
 0x34c   : > { %3314 = vmatpush.msrb.mxu2 %v3270_v15  ;;  %v6340_v15 = vld [vmem:[#allocation8_spill] sm:$0xff] }
 0x34d   : > { %v2207_v35 = vadd.f32 %v2167_v47, %v6340_v15  ;;  %v2586_v24 = vadd.f32 %v2543_v26, %v2205_v34  ;;  %v4080_v34 = vld [vmem:[%s6178_s4 + $0x60] sm:$0xf]  ;;  %v4210_v15 = vld [vmem:[%s6178_s4 + $0x6c] sm:$0xf0] }
 0x34e   : > { %3315 = vmatpush.msrb.mxu2 %v3269_v53  ;;  %v2587_v53 = vadd.f32 %v2546_v30, %v2206_v14  ;;  %v4218_v14 = vld [vmem:[%s6178_s4 + $0xac] sm:$0xf0] }
 0x34f   : > { %v5912_v0 = vpop.f32.mrf.mxu0  ;;  %v2934_v7 = vpop.f32.mrf.mxu3 }
 0x350   : > { %3316 = vmatpush.msrb.mxu2 %v3268_v63  ;;  %v4105_v63 = vor.u32 %v4215_v50, %v4104_v25  ;;  %v2975_v38 = vadd.f32 %v2934_v7, %v2587_v53  ;;  %v4113_v25 = vor.u32 %v4218_v14, %v4112_v42  ;;  %v4096_v50 = vld [vmem:[%s6178_s4 + $0x80] sm:$0xf]  ;;  %v4201_v42 = vld [vmem:[%s6178_s4 + $0x2c] sm:$0xf]  ;;  %v4058_v14 = vld [vmem:[%s6178_s4 + $0x38] sm:$0xf0] }
 0x351   : > { %v4064_v53 = vld [vmem:[%s6178_s4 + $0x40] sm:$0xf] }
 0x352   : > { %3317 = vmatpush.msrb.mxu2 %v3267_v37  ;;  %v2204_v37 = vadd.f32 %v5902_v31, %v6341_v46  ;;  %v6343_v31 = vld [vmem:[#allocation21_spill] sm:$0xff]  ;;  %3589 = vmatpush.bf16.msrb.mxu3 %v4105_v63  ;;  %v4048_v46 = vld [vmem:[%s6178_s4 + $0x20] sm:$0xf] }
 0x353   : > { %v2202_v26 = vadd.f32 %v5875_v36, %v6343_v31  ;;  %v4216_v31 = vld [vmem:[%s6178_s4 + $0xa4] sm:$0xf] }
 0x354   : > { %3318 = vmatpush.msrb.mxu2 %v3266_v61  ;;  %v2588_v61 = vadd.f32 %v2548_v39, %v2207_v35  ;;  %v2585_v13 = vadd.f32 %v5905_v29, %v2204_v37  ;;  %v4207_v29 = vld [vmem:[%s6178_s4 + $0x54] sm:$0xf0]  ;;  %v4214_v39 = vld [vmem:[%s6178_s4 + $0x8c] sm:$0xf0]  ;;  %v4081_v35 = vor.u32 %v4210_v15, %v4080_v34 }
 0x355   : > { %v4097_v28 = vor.u32 %v4214_v39, %v4096_v50  ;;  %v4202_v37 = vld [vmem:[%s6178_s4 + $0x2c] sm:$0xf0]  ;;  %v4197_v39 = vld [vmem:[%s6178_s4 + $0xc] sm:$0xf] }
 0x356   : > { %3319 = vmatpush.msrb.mxu2 %v3265_v27  ;;  %v4088_v27 = vld [vmem:[%s6178_s4 + $0x68] sm:$0xf]  ;;  %v2973_v6 = vadd.f32 %v5908_v62, %v2585_v13 }
 0x357   : > { %v5922_v41 = vpop.f32.mrf.mxu0  ;;  %v2936_v3 = vpop.f32.mrf.mxu3  ;;  %v4089_v8 = vor.u32 %v4211_v21, %v4088_v27  ;;  %v4500_v21 = vmov 0.0  }
 0x358   : > { %3320 = vmatpush.msrb.mxu2 %v3264_v44  ;;  %v2203_v44 = vadd.f32 %v5887_v45, %v6342_v54  ;;  %v2976_v10 = vadd.f32 %v2936_v3, %v2588_v61  ;;  %v4072_v45 = vld [vmem:[%s6178_s4 + $0x48] sm:$0xf]  ;;  %v4206_v3 = vld [vmem:[%s6178_s4 + $0x4c] sm:$0xf0]  ;;  %v4032_v61 = vld [vmem:[%s6178_s4] sm:$0xf] }
 0x359   : > { %3590 = vmatpush.bf16.msrb.mxu3 %v4089_v8  ;;  %v4073_v30 = vor.u32 %v4207_v29, %v4072_v45  ;;  %v4065_v63 = vor.u32 %v4206_v3, %v4064_v53  ;;  %281 = vst [vmem:[#allocation2] sm:$0x1] %v4500_v21  ;;  %v4224_v54 = vld [vmem:[%s6178_s4 + $0xe4] sm:$0xf]  ;;  %v3390_v21 = vld [vmem:[%s6179_s5] sm:$0xf] }
 0x35a   : > { %3321 = vmatpush.msrb.mxu2 %v3263_v32  ;;  %v2974_v32 = vadd.f32 %v2931_v57, %v2586_v24  ;;  %v2583_v57 = vadd.f32 %v5877_v22, %v2202_v26  ;;  %v4056_v22 = vld [vmem:[%s6178_s4 + $0x28] sm:$0xf]  ;;  %v4049_v24 = vor.u32 %v4202_v37, %v4048_v46  ;;  %v4114_v26 = vld [vmem:[%s6178_s4 + $0xb0] sm:$0xf0]  ;;  %v4212_v8 = vld [vmem:[%s6178_s4 + $0x84] sm:$0xf] }
 0x35b   : > { %v4208_v45 = vld [vmem:[%s6178_s4 + $0x64] sm:$0xf] }
 0x35c   : > { %3322 = vmatpush.msrb.mxu2 %v3262_v2 }
 0x35d   : > { %3591 = vmatpush.bf16.msrb.mxu3 %v4073_v30 }
 0x35e   : > { %3323 = vmatpush.msrb.mxu2 %v3261_v48  ;;  %v2584_v48 = vadd.f32 %v5890_v16, %v2203_v44  ;;  %v4146_v44 = vld [vmem:[%s6178_s4 + $0xf0] sm:$0xf0] }
 0x35f   : > { %v3154_v17 = vpop.f32.mrf.mxu0  ;;  %v4149_v13 = vor.u32 %v4224_v54, %v4146_v44  ;;  %v3553_v44 = vperm.slane %v3390_v21, 1 }
 0x360   : > { %3324 = vmatpush.msrb.mxu2 %v3260_v60  ;;  %v3197_v23 = vadd.f32 %v3154_v17, %v2974_v32  ;;  %v2972_v36 = vadd.f32 %v5894_v4, %v2584_v48  ;;  %v2971_v17 = vadd.f32 %v5880_v56, %v2583_v57  ;;  %v4203_v4 = vld [vmem:[%s6178_s4 + $0x34] sm:$0xf0]  ;;  %v4220_v32 = vld [vmem:[%s6178_s4 + $0xc4] sm:$0xf]  ;;  %v4098_v48 = vld [vmem:[%s6178_s4 + $0x90] sm:$0xf0] }
 0x361   : > { %v4057_v56 = vor.u32 %v4203_v4, %v4056_v22  ;;  %v4082_v57 = vld [vmem:[%s6178_s4 + $0x70] sm:$0xf0]  ;;  %v4213_v22 = vld [vmem:[%s6178_s4 + $0x8c] sm:$0xf]  ;;  %v3280_v53 = vld [vmem:[#allocation2] sm:$0x1] }
 0x362   : > { %3325 = vmatpush.msrb.mxu2 %v3259_v49  ;;  %v3196_v49 = vadd.f32 %v5922_v41, %v2973_v6  ;;  %v3195_v58 = vadd.f32 %v5912_v0, %v2972_v36  ;;  %v3239_v52 = vadd.f32 %v5798_v20, %v3197_v23  ;;  %v3194_v41 = vadd.f32 %v5899_v11, %v2971_v17  ;;  %v4226_v11 = vld [vmem:[%s6178_s4 + $0xec] sm:$0xf0]  ;;  %v4225_v23 = vld [vmem:[%s6178_s4 + $0xec] sm:$0xf]  ;;  %v4066_v17 = vld [vmem:[%s6178_s4 + $0x50] sm:$0xf0] }
 0x363   : > { %3592 = vmatpush.bf16.msrb.mxu3 %v4057_v56  ;;  %v4101_v6 = vor.u32 %v4212_v8, %v4098_v48  ;;  %v4085_v36 = vor.u32 %v4208_v45, %v4082_v57  ;;  %v3624_v48 = vlaneseq }
 0x364   : > { %3326 = vmatpush.msrb.mxu2 %v3258_v9  ;;  %v3238_v7 = vadd.f32 %v5798_v20, %v3196_v49  ;;  %v3237_v0 = vadd.f32 %v5798_v20, %v3195_v58  ;;  %v3277_v59 = vmax.f32 %v3239_v52, 0.0  ;;  %v4221_v49 = vld [vmem:[%s6178_s4 + $0xcc] sm:$0xf] }
 0x365   : > { %3327 = vmatmul.f32.vlgmr.msrb.gmra.mxu2 %v3284_v12  ;;  %v3236_v12 = vadd.f32 %v5798_v20, %v3194_v41  ;;  %v4217_v52 = vld [vmem:[%s6178_s4 + $0xac] sm:$0xf]  ;;  %v4106_v41 = vld [vmem:[%s6178_s4 + $0x98] sm:$0xf0]  ;;  %vm3626_vm12 = vcmp.lt.s32.totalorder %v3624_v48, 512 }
 0x366   : > { %v3276_v9 = vmax.f32 %v3238_v7, 0.0  ;;  %v3275_v19 = vmax.f32 %v3237_v0, 0.0  ;;  %3573 = vmatpush.bf16.msra.mxu2 %v4149_v13  ;;  %v4200_v7 = vld [vmem:[%s6178_s4 + $0x24] sm:$0xf]  ;;  %v4109_v0 = vor.u32 %v4213_v22, %v4106_v41  ;;  %v3554_v13 = vperm.slane %v3390_v21, 2 }
 0x367   : > { %v3157_v43 = vpop.f32.mrf.mxu0  ;;  %v3274_v47 = vmax.f32 %v3236_v12, 0.0  ;;  %v4199_v12 = vld [vmem:[%s6178_s4 + $0x14] sm:$0xf0] }
 0x368   : > { %v3198_v40 = vadd.f32 %v3157_v43, %v2975_v38  ;;  %v4145_v43 = vor.u32 %v4226_v11, %v4144_v33  ;;  %v4198_v38 = vld [vmem:[%s6178_s4 + $0xc] sm:$0xf0]  ;;  %v4034_v11 = vld [vmem:[%s6178_s4 + $0x10] sm:$0xf0] }
 0x369   : > { %v4033_v27 = vor.u32 %v4198_v38, %v4032_v61 }
 0x36a   : > { %v3240_v16 = vadd.f32 %v5798_v20, %v3198_v40 }
 0x36c   : > { %v3278_v1 = vmax.f32 %v3240_v16, 0.0  ;;  %v4138_v16 = vld [vmem:[%s6178_s4 + $0xd8] sm:$0xf0] }
 0x36d   : > { %v4141_v30 = vor.u32 %v4221_v49, %v4138_v16 }
 0x36f   : > { %v3159_v2 = vpop.f32.mrf.mxu0 }
 0x370   : > { %v3199_v60 = vadd.f32 %v3159_v2, %v2976_v10  ;;  %v4130_v10 = vld [vmem:[%s6178_s4 + $0xd0] sm:$0xf0]  ;;  %v4117_v2 = vor.u32 %v4216_v31, %v4114_v26  ;;  %v3552_v31 = vperm.slane %v3390_v21, 0 }
 0x371   : > { %v4133_v40 = vor.u32 %v4220_v32, %v4130_v10  ;;  %v3555_v32 = vperm.slane %v3390_v21, 3 }
 0x372   : > { %v3241_v62 = vadd.f32 %v5798_v20, %v3199_v60  ;;  %v4128_v20 = vld [vmem:[%s6178_s4 + $0xc0] sm:$0xf]  ;;  %v4154_v60 = vld [vmem:[%s6178_s4 + $0xf8] sm:$0xf0] }
 0x373   : > { %v4129_v5 = vor.u32 %v4222_v55, %v4128_v20  ;;  %3574 = vmatpush.bf16.msra.mxu2 %v4133_v40  ;;  %v4157_v29 = vor.u32 %v4225_v23, %v4154_v60  ;;  %v4205_v20 = vld [vmem:[%s6178_s4 + $0x4c] sm:$0xf]  ;;  %v4074_v55 = vld [vmem:[%s6178_s4 + $0x58] sm:$0xf0] }
 0x374   : > { %v3279_v51 = vmax.f32 %v3241_v62, 0.0  ;;  %v4204_v62 = vld [vmem:[%s6178_s4 + $0x44] sm:$0xf] }
 0x375   : > { %v4069_v58 = vor.u32 %v4204_v62, %v4066_v17 }
 0x376   : > { %3341 = vmatpush.msrb.mxu1 %v3279_v51  ;;  %v4122_v51 = vld [vmem:[%s6178_s4 + $0xb8] sm:$0xf0] }
 0x377   : > { %3575 = vmatpush.bf16.msra.mxu2 %v4117_v2  ;;  %v4125_v4 = vor.u32 %v4217_v52, %v4122_v51 }
 0x378   : > { %3342 = vmatpush.msrb.mxu1 %v3278_v1  ;;  %v4050_v1 = vld [vmem:[%s6178_s4 + $0x30] sm:$0xf0] }
 0x379   : > { %v4053_v56 = vor.u32 %v4200_v7, %v4050_v1 }
 0x37a   : > { %3343 = vmatpush.msrb.mxu1 %v3277_v59  ;;  %v4040_v59 = vld [vmem:[%s6178_s4 + $0x8] sm:$0xf] }
 0x37b   : > { %3576 = vmatpush.bf16.msra.mxu2 %v4101_v6  ;;  %v4041_v33 = vor.u32 %v4199_v12, %v4040_v59 }
 0x37c   : > { %3344 = vmatpush.msrb.mxu1 %v3276_v9  ;;  %v4196_v9 = vld [vmem:[%s6178_s4 + $0x4] sm:$0xf] }
 0x37d   : > { %3593 = vmatpush.bf16.msrb.mxu3 %v4041_v33 }
 0x37e   : > { %3345 = vmatpush.msrb.mxu1 %v3275_v19  ;;  %v4037_v19 = vor.u32 %v4196_v9, %v4034_v11 }
 0x37f   : > { %3577 = vmatpush.bf16.msra.mxu2 %v4085_v36 }
 0x380   : > { %3346 = vmatpush.msrb.mxu1 %v3274_v47  ;;  %v4090_v47 = vld [vmem:[%s6178_s4 + $0x78] sm:$0xf0] }
 0x381   : > { %4029 = vmatmul.msk.f32.vlgmr.msrb.gmra.mxu1 %vm3288_vm10, %v3285_v18  ;;  %v4209_v18 = vld [vmem:[%s6178_s4 + $0x6c] sm:$0xf] }
 0x382   : > { %3560 = vmatpush.bf16.msra.mxu1 %v4145_v43  ;;  %v4093_v43 = vor.u32 %v4209_v18, %v4090_v47 }
 0x383   : > { %3578 = vmatpush.bf16.msra.mxu2 %v4069_v58 }
 0x386   : > { %3561 = vmatpush.bf16.msra.mxu1 %v4129_v5  ;;  %v4077_v5 = vor.u32 %v4205_v20, %v4074_v55 }
 0x387   : > { %3579 = vmatpush.bf16.msra.mxu2 %v4053_v56 }
 0x38a   : > { %3562 = vmatpush.bf16.msra.mxu1 %v4113_v25  ;;  %v4061_v25 = vor.u32 %v4201_v42, %v4058_v14 }
 0x38b   : > { %3580 = vmatpush.bf16.msra.mxu2 %v4037_v19 }
 0x38e   : > { %3563 = vmatpush.bf16.msra.mxu1 %v4097_v28  ;;  %v4042_v28 = vld [vmem:[%s6178_s4 + $0x18] sm:$0xf0] }
 0x38f   : > { %v4045_v34 = vor.u32 %v4197_v39, %v4042_v28 }
 0x392   : > { %3564 = vmatpush.bf16.msra.mxu1 %v4081_v35 }
 0x396   : > { %3565 = vmatpush.bf16.msra.mxu1 %v4065_v63 }
 0x398   : > { %v3308_v50 = vpop.f32.mrf.mxu1 }
 0x39a   : > { %3566 = vmatpush.bf16.msra.mxu1 %v4049_v24 }
 0x39e   : > { %3567 = vmatpush.bf16.msra.mxu1 %v4033_v27 }
 0x3a2   : > { %3599 = vmatpush.bf16.msrb.mxu1 %v4157_v29 }
 0x3a6   : > { %3600 = vmatpush.bf16.msrb.mxu1 %v4141_v30 }
 0x3aa   : > { %3601 = vmatpush.bf16.msrb.mxu1 %v4125_v4 }
 0x3ae   : > { %3602 = vmatpush.bf16.msrb.mxu1 %v4109_v0 }
 0x3b2   : > { %3603 = vmatpush.bf16.msrb.mxu1 %v4093_v43 }
 0x3b6   : > { %3604 = vmatpush.bf16.msrb.mxu1 %v4077_v5 }
 0x3ba   : > { %3605 = vmatpush.bf16.msrb.mxu1 %v4061_v25 }
 0x3be   : > { %3606 = vmatpush.bf16.msrb.mxu1 %v4045_v34 }
 0x3e8   : > { %v3328_v15 = vpop.f32.mrf.mxu2 }
 0x3e9   : > { %v3329_v35 = vadd.f32 %v3328_v15, %v3308_v50 }
 0x3fe   : > { %v3348_v3 = vpop.f32.mrf.mxu1 }
 0x3ff   : > { %v3349_v63 = vadd.f32 %v3348_v3, %v3329_v35 }
 0x401   : > { %v3351_v46 = vadd.f32 %v3349_v63, %v3280_v53 }
 0x403   : > { %3352 = vst [vmem:[#allocation2] sm:$0x1] %v3351_v46 }
 0x40a   : > { %v3356_v37 = vld [vmem:[#allocation2] sm:$0x1] }
 0x40b   : > { %v3357_v24 = vpack.c.bf16 %v3356_v37, %v3356_v37 }
 0x40d   : > { %3568 = vmatmul.bf16.vlgmr.msra.gmra.mxu1 %v3357_v24  ;;  %3581 = vmatmul.bf16.vlgmr.msra.gmra.mxu2 %v3357_v24 }
 0x40e   : > { %3594 = vmatmul.bf16.vlgmr.msrb.gmra.mxu3 %v3357_v24 }
 0x41d   : > { %3607 = vmatmul.bf16.vlgmr.msrb.gmra.mxu1 %v3357_v24 }
 0x48a   : > { %v3569_v61 = vpop.f32.mrf.mxu1 }
 0x48b   : > { %v3570_v60 = vadd.f32 %v3569_v61, %v3552_v31 }
 0x490   : > { %v3582_v38 = vpop.f32.mrf.mxu2 }
 0x491   : > { %v3595_v27 = vpop.f32.mrf.mxu3  ;;  %v3583_v10 = vadd.f32 %v3582_v38, %v3553_v44 }
 0x492   : > { %v3571_v54 = vpop.f32.mrf.mxu1  ;;  %v3596_v26 = vadd.f32 %v3595_v27, %v3554_v13 }
 0x493   : > { %v3616_v23 = vrot.slane %v3583_v10, 7 }
 0x494   : > { %v3617_v29 = vrot.slane %v3596_v26, 6 }
 0x495   : > { %v3619_v57 = vsel %vm637_vm0, %v3570_v60, %v3616_v23 }
 0x498   : > { %v3584_v40 = vpop.f32.mrf.mxu2 }
 0x499   : > { %v3597_v2 = vpop.f32.mrf.mxu3 }
 0x49a   : > { %v3608_v8 = vpop.f32.mrf.mxu1 }
 0x49b   : > { %v3609_v6 = vadd.f32 %v3608_v8, %v3555_v32 }
 0x49d   : > { %v3618_v45 = vrot.slane %v3609_v6, 5 }
 0x49f   : > { %v3621_v36 = vsel %vm3620_vm11, %v3617_v29, %v3618_v45 }
 0x4a0   : > { %v3622_v49 = vsel %vm638_vm1, %v3619_v57, %v3621_v36 }
 0x4a1   : > { %3628 = vst.msk [vmem:[%s275_s20] sm:$0xf] %vm3626_vm12, %v3622_v49 }
 0x4a2   : > { %v3610_v16 = vpop.f32.mrf.mxu1 }
 0x4a3 PF: > { %s16_s23 = sadd.s32 1, %s4497_s23   ;;  %s6344_s21 = smov %s4493_s22 }
 0x4a4   : > { %p13_p5 = scmp.ge.s32.totalorder %s16_s23, 4   ;;  %s6345_s22 = smov %s6347_s24 }
 0x4a6   :  { %15 = sbr.rel (!%p13_p5) target bundleno = 2 (0x2), region = 90 }

</bundles_post_ra>
